<compile_context>
chip_gen: v6e
topology: v6e:2x2x1
jax: 0.10.0
libtpu: 0.0.40
codegen_flags: <defaults>
</compile_context>

<pallas_src>
from functools import partial

import jax
import jax.numpy as jnp
from jax import lax
from jax.experimental import pallas as pl
from jax.experimental.pallas import tpu as pltpu


# --------------------------- fused per-batch attention kernel --------------------------- #

def _fused_attention_kernel(x_ref, wlc_ref, blc_ref, wq_ref, bq_ref, wk_ref,
                            wv_ref, bv_ref, o_ref, pad_ref, *, num_heads):
    # x_ref  : (1, H, W, C)  NHWC block, one batch element (C on the lane axis)
    # wlc_ref: (3, 3, C)     depthwise local_conv taps (lane-aligned per-channel vectors)
    # blc_ref: (1, C)        local_conv bias
    # wq_ref : (C, C)        q weight, [in, out] layout, qk-scale folded in
    # bq_ref : (1, C)        q bias, qk-scale folded in
    # wk_ref : (C, C)        k weight, [in, out] layout (k bias dropped: softmax-invariant)
    # wv_ref : (C, C)        v weight, [out, in] layout -> v produced pre-transposed (d, N)
    # bv_ref : (C, 1)        v bias (transposed layout, broadcasts along lanes)
    # o_ref  : (1, C, N)     output, already transposed so the final NCHW reshape is free
    # pad_ref: VMEM scratch (H+2, W+2, C) f32 for the zero-padded depthwise conv
    H = x_ref.shape[1]
    W = x_ref.shape[2]
    C = x_ref.shape[3]
    N = H * W
    d = C // num_heads
    f32 = jnp.float32
    dt = x_ref.dtype

    # ----- kv = local_conv(x) + bias + x  (3x3 depthwise, 'SAME' zero padding) -----
    x_raw = x_ref[0]                                   # (H, W, C), native dtype
    xin = x_raw.astype(f32)

    # Zero only the 1-element border strips every step (interior is fully
    # overwritten below).  Correct on every generation even when the "parallel"
    # batch axis is sharded across TensorCores (each core has its own scratch,
    # so a program_id==0 guard would leave one core's border uninitialized).
    pad_ref[0:1, :, :] = jnp.zeros((1, W + 2, C), f32)
    pad_ref[H + 1:H + 2, :, :] = jnp.zeros((1, W + 2, C), f32)
    pad_ref[:, 0:1, :] = jnp.zeros((H + 2, 1, C), f32)
    pad_ref[:, W + 1:W + 2, :] = jnp.zeros((H + 2, 1, C), f32)
    pad_ref[1:H + 1, 1:W + 1, :] = xin

    w_lc = wlc_ref[...].astype(f32)                    # (3, 3, C)
    kv = xin + blc_ref[...].astype(f32)[None]          # residual + bias fold into the init
    for di in range(3):                                # 9 static taps: per-channel VPU FMAs;
        for dj in range(3):                            # shifts only on H (major) / W (sublane)
            kv = kv + pad_ref[di:di + H, dj:dj + W, :] * w_lc[di, dj][None, None, :]

    # ----- token views (layout-preserving reshapes: W%8==0, C=128) -----
    x_tok = x_raw.reshape(N, C)                        # (N, C) native dtype for the MXU
    kv_tok = kv.reshape(N, C).astype(dt)               # f32 conv accumulation -> native dtype

    # ----- full-width 1x1-conv projections on the MXU (all heads at once) -----
    q_all = jnp.dot(x_tok, wq_ref[...], preferred_element_type=f32) + bq_ref[...].astype(f32)
    k_all = jnp.dot(kv_tok, wk_ref[...], preferred_element_type=f32)
    # v pre-transposed: v_t[o, n] = sum_c wv[o, c] * kv[n, c]   (NT contraction)
    v_t = (lax.dot_general(wv_ref[...], kv_tok, (((1,), (1,)), ((), ())),
                           preferred_element_type=f32)
           + bv_ref[...].astype(f32))                  # (C, N)

    q_all = q_all.astype(dt)                           # bf16 operands in a real model;
    k_all = k_all.astype(dt)                           # no-ops for the f32 demo
    v_t = v_t.astype(dt)

    # ----- per-head softmax attention (static unroll over heads) -----
    for h in range(num_heads):
        q_h = q_all[:, h * d:(h + 1) * d]              # (N, d)
        k_h = k_all[:, h * d:(h + 1) * d]              # (N, d)
        v_h = v_t[h * d:(h + 1) * d, :]                # (d, N), sublane-aligned slice

        s = lax.dot_general(q_h, k_h, (((1,), (1,)), ((), ())),
                            preferred_element_type=f32)        # (N, N); scale pre-folded
        s = s - jnp.max(s, axis=-1, keepdims=True)
        p = jnp.exp(s)
        # softmax denominator via EUP reciprocal instead of an (N,N) divide
        inv = pl.reciprocal(jnp.sum(p, axis=-1, keepdims=True), approx=True)   # (N, 1)
        p = (p * inv).astype(dt)

        # out^T directly as an NT contraction -> (d, N): lane-dense store
        out_t = lax.dot_general(v_h, p, (((1,), (1,)), ((), ())),
                                preferred_element_type=f32)     # (d, N)
        o_ref[0, h * d:(h + 1) * d, :] = out_t.astype(o_ref.dtype)


def _fused_attention(x_nhwc, w_lc, b_lc, wq, bq, wk, wv, bv, *, num_heads):
    B, H, W, C = x_nhwc.shape
    N = H * W
    d = C // num_heads
    bpe = jnp.dtype(x_nhwc.dtype).itemsize

    cost = pl.CostEstimate(
        flops=int(2 * B * (3 * N * C * C + num_heads * 2 * N * N * d + 9 * H * W * C)),
        transcendentals=int(B * num_heads * N * N),
        bytes_accessed=int(bpe * (2 * B * N * C) + 4 * (3 * C * C + 14 * C)),
    )

    return pl.pallas_call(
        partial(_fused_attention_kernel, num_heads=num_heads),
        out_shape=jax.ShapeDtypeStruct((B, C, N), x_nhwc.dtype),
        grid_spec=pltpu.PrefetchScalarGridSpec(
            num_scalar_prefetch=0,
            grid=(B,),
            in_specs=[
                pl.BlockSpec((1, H, W, C), lambda b: (b, 0, 0, 0)),
                pl.BlockSpec((3, 3, C), lambda b: (0, 0, 0)),
                pl.BlockSpec((1, C), lambda b: (0, 0)),
                pl.BlockSpec((C, C), lambda b: (0, 0)),
                pl.BlockSpec((1, C), lambda b: (0, 0)),
                pl.BlockSpec((C, C), lambda b: (0, 0)),
                pl.BlockSpec((C, C), lambda b: (0, 0)),
                pl.BlockSpec((C, 1), lambda b: (0, 0)),
            ],
            out_specs=pl.BlockSpec((1, C, N), lambda b: (b, 0, 0)),
            scratch_shapes=[pltpu.VMEM((H + 2, W + 2, C), jnp.float32)],
        ),
        compiler_params=pltpu.CompilerParams(dimension_semantics=("parallel",)),
        cost_estimate=cost,
    )(x_nhwc, w_lc, b_lc, wq, bq, wk, wv, bv)


# ----------------------------------- forward pass --------------------------------------- #

def attention_forward(params, x, num_heads=2, qk_scale=None):
    """x: (B, C, H, W) NCHW, same as the PyTorch module.  sr_ratio=1 path."""
    B, C, H, W = x.shape
    assert C % num_heads == 0
    d = C // num_heads
    scale = float(qk_scale) if qk_scale is not None else float(d) ** (-0.5)

    # channels-last so C sits on the 128-wide lane axis everywhere
    x_nhwc = jnp.transpose(x, (0, 2, 3, 1))                       # (B, H, W, C)

    w_lc = jnp.transpose(params['w_lc'][:, 0], (1, 2, 0))         # (C,1,3,3) -> (3,3,C)
    b_lc = params['b_lc'].reshape(1, C)
    # qk scale folded into the q projection weights/bias (no (N,N) scaling in-kernel)
    wq = (params['wq'] * scale).T                                 # (C_in, C_out)
    bq = (params['bq'] * scale).reshape(1, C)
    # k projection: bias dropped (adds a per-row constant to the logits -> softmax no-op)
    wk = params['wkv'][:C].T                                      # (C_in, C_out)
    # v projection kept in [out, in] layout so v is produced pre-transposed (d, N)
    wv = params['wkv'][C:]                                        # (C_out, C_in)
    bv = params['bkv'][C:].reshape(C, 1)

    out = _fused_attention(x_nhwc, w_lc, b_lc, wq, bq, wk, wv, bv,
                           num_heads=num_heads)                   # (B, C, N)
    # (h,d)->C was assembled in-kernel; N->(H,W) merge is a free reshape (matches
    # the PyTorch (attn @ v).transpose(-1,-2).reshape(B, C, H, W))
    return out.reshape(B, C, H, W)


# ------------------------------------ reference ----------------------------------------- #

def attention_ref(params, x, num_heads=2, qk_scale=None):
    B, C, H, W = x.shape
    d = C // num_heads
    N = H * W
    scale = qk_scale if qk_scale is not None else d ** (-0.5)
    q = jnp.einsum('oc,bchw->bohw', params['wq'], x) + params['bq'][None, :, None, None]
    kv = x                                                        # sr = Identity
    lc = lax.conv_general_dilated(
        kv, params['w_lc'], (1, 1), 'SAME',
        dimension_numbers=('NCHW', 'OIHW', 'NCHW'), feature_group_count=C)
    kv = lc + params['b_lc'][None, :, None, None] + kv
    kvp = jnp.einsum('oc,bchw->bohw', params['wkv'], kv) + params['bkv'][None, :, None, None]
    k, v = kvp[:, :C], kvp[:, C:]
    q = q.reshape(B, num_heads, d, N).transpose(0, 1, 3, 2)
    k = k.reshape(B, num_heads, d, N)
    v = v.reshape(B, num_heads, d, N).transpose(0, 1, 3, 2)
    attn = jnp.einsum('bhnd,bhdm->bhnm', q, k) * scale
    attn = jax.nn.softmax(attn, axis=-1)
    o = jnp.einsum('bhnm,bhmd->bhnd', attn, v)
    return o.transpose(0, 1, 3, 2).reshape(B, C, H, W)


# --------------------------------------- main -------------------------------------------- #

if __name__ == "__main__":
    B, dim, H, W = 2, 128, 16, 16          # C=128 -> lane-dense; N=H*W=256
    num_heads = 2                          # head_dim = 64

    key = jax.random.PRNGKey(0)
    ks = jax.random.split(key, 7)
    params = {
        'wq':   jax.random.normal(ks[0], (dim, dim), jnp.float32) * 0.05,
        'bq':   jax.random.normal(ks[1], (dim,), jnp.float32) * 0.02,
        'wkv':  jax.random.normal(ks[2], (2 * dim, dim), jnp.float32) * 0.05,
        'bkv':  jax.random.normal(ks[3], (2 * dim,), jnp.float32) * 0.02,
        'w_lc': jax.random.normal(ks[4], (dim, 1, 3, 3), jnp.float32) * 0.1,
        'b_lc': jax.random.normal(ks[5], (dim,), jnp.float32) * 0.02,
    }
    x = jax.random.normal(ks[6], (B, dim, H, W), jnp.float32)

    fwd = jax.jit(attention_forward, static_argnums=(2,))
    out = fwd(params, x, num_heads)
    out = jax.block_until_ready(out)

    # correctness check of the Pallas path vs. pure-JAX reference
    ref = attention_ref(params, x, num_heads)
    if out.shape != (B, dim, H, W):
        raise AssertionError(f"bad output shape {out.shape}")
    # tolerance covers the approximate-EUP softmax reciprocal (rel err ~2^-12)
    if not jnp.allclose(out, ref, atol=3e-3, rtol=3e-3):
        err = jnp.max(jnp.abs(out - ref))
        raise AssertionError(f"Pallas attention mismatch vs reference (max err {err})")

    print("KERNEL_OK")
</pallas_src>

<mosaic_0001>
module attributes {stable_mosaic.version = 11 : i64} {
  func.func @_fused_attention_kernel(%arg0: i32, %arg1: memref<1x16x16x128xf32, #tpu.memory_space<vmem>>, %arg2: memref<3x3x128xf32, #tpu.memory_space<vmem>>, %arg3: memref<1x128xf32, #tpu.memory_space<vmem>>, %arg4: memref<128x128xf32, #tpu.memory_space<vmem>>, %arg5: memref<1x128xf32, #tpu.memory_space<vmem>>, %arg6: memref<128x128xf32, #tpu.memory_space<vmem>>, %arg7: memref<128x128xf32, #tpu.memory_space<vmem>>, %arg8: memref<128x1xf32, #tpu.memory_space<vmem>>, %arg9: memref<1x128x256xf32, #tpu.memory_space<vmem>>, %arg10: memref<18x18x128xf32, #tpu.memory_space<vmem>>) attributes {dimension_semantics = [#tpu.dimension_semantics<parallel>], iteration_bounds = array<i64: 2>, scalar_prefetch = 0 : i64, scratch_operands = 1 : i64, tpu.core_type = #tpu.core_type<tc>, window_params = [{transform_indices = @transform_0, window_bounds = array<i64: 1, 16, 16, 128>}, {pipeline_mode = #tpu.pipeline_mode<synchronous>, transform_indices = @transform_1, window_bounds = array<i64: 3, 3, 128>}, {pipeline_mode = #tpu.pipeline_mode<synchronous>, transform_indices = @transform_2, window_bounds = array<i64: 1, 128>}, {pipeline_mode = #tpu.pipeline_mode<synchronous>, transform_indices = @transform_3, window_bounds = array<i64: 128, 128>}, {pipeline_mode = #tpu.pipeline_mode<synchronous>, transform_indices = @transform_4, window_bounds = array<i64: 1, 128>}, {pipeline_mode = #tpu.pipeline_mode<synchronous>, transform_indices = @transform_5, window_bounds = array<i64: 128, 128>}, {pipeline_mode = #tpu.pipeline_mode<synchronous>, transform_indices = @transform_6, window_bounds = array<i64: 128, 128>}, {pipeline_mode = #tpu.pipeline_mode<synchronous>, transform_indices = @transform_7, window_bounds = array<i64: 128, 1>}, {transform_indices = @transform_8, window_bounds = array<i64: 1, 128, 256>}]} {
    %c0 = arith.constant 0 : index
    %c0_0 = arith.constant 0 : index
    %c0_1 = arith.constant 0 : index
    %c0_2 = arith.constant 0 : index
    %0 = vector.load %arg1[%c0, %c0_0, %c0_1, %c0_2] : memref<1x16x16x128xf32, #tpu.memory_space<vmem>>, vector<1x16x16x128xf32>
    %1 = vector.shape_cast %0 : vector<1x16x16x128xf32> to vector<16x16x128xf32>
    %cst = arith.constant 0.000000e+00 : f32
    %2 = vector.broadcast %cst : f32 to vector<1x18x128xf32>
    %c0_3 = arith.constant 0 : index
    %c0_4 = arith.constant 0 : index
    %c0_5 = arith.constant 0 : index
    %3 = vector.load %arg10[%c0_3, %c0_4, %c0_5] : memref<18x18x128xf32, #tpu.memory_space<vmem>>, vector<1x18x128xf32>
    tpu.vector_store %arg10[%c0_3, %c0_4, %c0_5], %2 {strides = array<i32>} : memref<18x18x128xf32, #tpu.memory_space<vmem>>, vector<1x18x128xf32>,
    %cst_6 = arith.constant 0.000000e+00 : f32
    %4 = vector.broadcast %cst_6 : f32 to vector<1x18x128xf32>
    %c17 = arith.constant 17 : index
    %c0_7 = arith.constant 0 : index
    %c0_8 = arith.constant 0 : index
    %5 = vector.load %arg10[%c17, %c0_7, %c0_8] : memref<18x18x128xf32, #tpu.memory_space<vmem>>, vector<1x18x128xf32>
    tpu.vector_store %arg10[%c17, %c0_7, %c0_8], %4 {strides = array<i32>} : memref<18x18x128xf32, #tpu.memory_space<vmem>>, vector<1x18x128xf32>,
    %cst_9 = arith.constant 0.000000e+00 : f32
    %6 = vector.broadcast %cst_9 : f32 to vector<18x1x128xf32>
    %c0_10 = arith.constant 0 : index
    %c0_11 = arith.constant 0 : index
    %c0_12 = arith.constant 0 : index
    %7 = vector.load %arg10[%c0_10, %c0_11, %c0_12] : memref<18x18x128xf32, #tpu.memory_space<vmem>>, vector<18x1x128xf32>
    tpu.vector_store %arg10[%c0_10, %c0_11, %c0_12], %6 {strides = array<i32>} : memref<18x18x128xf32, #tpu.memory_space<vmem>>, vector<18x1x128xf32>,
    %cst_13 = arith.constant 0.000000e+00 : f32
    %8 = vector.broadcast %cst_13 : f32 to vector<18x1x128xf32>
    %c0_14 = arith.constant 0 : index
    %c17_15 = arith.constant 17 : index
    %c0_16 = arith.constant 0 : index
    %9 = vector.load %arg10[%c0_14, %c17_15, %c0_16] : memref<18x18x128xf32, #tpu.memory_space<vmem>>, vector<18x1x128xf32>
    tpu.vector_store %arg10[%c0_14, %c17_15, %c0_16], %8 {strides = array<i32>} : memref<18x18x128xf32, #tpu.memory_space<vmem>>, vector<18x1x128xf32>,
    %c1 = arith.constant 1 : index
    %c1_17 = arith.constant 1 : index
    %c0_18 = arith.constant 0 : index
    %10 = vector.load %arg10[%c1, %c1_17, %c0_18] : memref<18x18x128xf32, #tpu.memory_space<vmem>>, vector<16x16x128xf32>
    tpu.vector_store %arg10[%c1, %c1_17, %c0_18], %1 {strides = array<i32>} : memref<18x18x128xf32, #tpu.memory_space<vmem>>, vector<16x16x128xf32>,
    %c0_19 = arith.constant 0 : index
    %c0_20 = arith.constant 0 : index
    %c0_21 = arith.constant 0 : index
    %11 = vector.load %arg2[%c0_19, %c0_20, %c0_21] : memref<3x3x128xf32, #tpu.memory_space<vmem>>, vector<3x3x128xf32>
    %c0_22 = arith.constant 0 : index
    %c0_23 = arith.constant 0 : index
    %12 = vector.load %arg3[%c0_22, %c0_23] : memref<1x128xf32, #tpu.memory_space<vmem>>, vector<1x128xf32>
    %13 = vector.shape_cast %12 : vector<1x128xf32> to vector<1x1x128xf32>
    %14 = vector.broadcast %13 : vector<1x1x128xf32> to vector<16x16x128xf32>
    %15 = arith.addf %1, %14 : vector<16x16x128xf32>
    %c0_24 = arith.constant 0 : index
    %c0_25 = arith.constant 0 : index
    %c0_26 = arith.constant 0 : index
    %16 = vector.load %arg10[%c0_24, %c0_25, %c0_26] : memref<18x18x128xf32, #tpu.memory_space<vmem>>, vector<16x16x128xf32>
    %17 = vector.extract_strided_slice %11 {offsets = [0, 0, 0], sizes = [1, 1, 128], strides = [1, 1, 1]} : vector<3x3x128xf32> to vector<1x1x128xf32>
    %18 = vector.shape_cast %17 : vector<1x1x128xf32> to vector<128xf32>
    %19 = vector.shape_cast %18 : vector<128xf32> to vector<1x1x128xf32>
    %20 = vector.broadcast %19 : vector<1x1x128xf32> to vector<16x16x128xf32>
    %21 = arith.mulf %16, %20 : vector<16x16x128xf32>
    %22 = arith.addf %15, %21 : vector<16x16x128xf32>
    %c0_27 = arith.constant 0 : index
    %c1_28 = arith.constant 1 : index
    %c0_29 = arith.constant 0 : index
    %23 = vector.load %arg10[%c0_27, %c1_28, %c0_29] : memref<18x18x128xf32, #tpu.memory_space<vmem>>, vector<16x16x128xf32>
    %24 = vector.extract_strided_slice %11 {offsets = [0, 1, 0], sizes = [1, 1, 128], strides = [1, 1, 1]} : vector<3x3x128xf32> to vector<1x1x128xf32>
    %25 = vector.shape_cast %24 : vector<1x1x128xf32> to vector<128xf32>
    %26 = vector.shape_cast %25 : vector<128xf32> to vector<1x1x128xf32>
    %27 = vector.broadcast %26 : vector<1x1x128xf32> to vector<16x16x128xf32>
    %28 = arith.mulf %23, %27 : vector<16x16x128xf32>
    %29 = arith.addf %22, %28 : vector<16x16x128xf32>
    %c0_30 = arith.constant 0 : index
    %c2 = arith.constant 2 : index
    %c0_31 = arith.constant 0 : index
    %30 = vector.load %arg10[%c0_30, %c2, %c0_31] : memref<18x18x128xf32, #tpu.memory_space<vmem>>, vector<16x16x128xf32>
    %31 = vector.extract_strided_slice %11 {offsets = [0, 2, 0], sizes = [1, 1, 128], strides = [1, 1, 1]} : vector<3x3x128xf32> to vector<1x1x128xf32>
    %32 = vector.shape_cast %31 : vector<1x1x128xf32> to vector<128xf32>
    %33 = vector.shape_cast %32 : vector<128xf32> to vector<1x1x128xf32>
    %34 = vector.broadcast %33 : vector<1x1x128xf32> to vector<16x16x128xf32>
    %35 = arith.mulf %30, %34 : vector<16x16x128xf32>
    %36 = arith.addf %29, %35 : vector<16x16x128xf32>
    %c1_32 = arith.constant 1 : index
    %c0_33 = arith.constant 0 : index
    %c0_34 = arith.constant 0 : index
    %37 = vector.load %arg10[%c1_32, %c0_33, %c0_34] : memref<18x18x128xf32, #tpu.memory_space<vmem>>, vector<16x16x128xf32>
    %38 = vector.extract_strided_slice %11 {offsets = [1, 0, 0], sizes = [1, 1, 128], strides = [1, 1, 1]} : vector<3x3x128xf32> to vector<1x1x128xf32>
    %39 = vector.shape_cast %38 : vector<1x1x128xf32> to vector<128xf32>
    %40 = vector.shape_cast %39 : vector<128xf32> to vector<1x1x128xf32>
    %41 = vector.broadcast %40 : vector<1x1x128xf32> to vector<16x16x128xf32>
    %42 = arith.mulf %37, %41 : vector<16x16x128xf32>
    %43 = arith.addf %36, %42 : vector<16x16x128xf32>
    %c1_35 = arith.constant 1 : index
    %c1_36 = arith.constant 1 : index
    %c0_37 = arith.constant 0 : index
    %44 = vector.load %arg10[%c1_35, %c1_36, %c0_37] : memref<18x18x128xf32, #tpu.memory_space<vmem>>, vector<16x16x128xf32>
    %45 = vector.extract_strided_slice %11 {offsets = [1, 1, 0], sizes = [1, 1, 128], strides = [1, 1, 1]} : vector<3x3x128xf32> to vector<1x1x128xf32>
    %46 = vector.shape_cast %45 : vector<1x1x128xf32> to vector<128xf32>
    %47 = vector.shape_cast %46 : vector<128xf32> to vector<1x1x128xf32>
    %48 = vector.broadcast %47 : vector<1x1x128xf32> to vector<16x16x128xf32>
    %49 = arith.mulf %44, %48 : vector<16x16x128xf32>
    %50 = arith.addf %43, %49 : vector<16x16x128xf32>
    %c1_38 = arith.constant 1 : index
    %c2_39 = arith.constant 2 : index
    %c0_40 = arith.constant 0 : index
    %51 = vector.load %arg10[%c1_38, %c2_39, %c0_40] : memref<18x18x128xf32, #tpu.memory_space<vmem>>, vector<16x16x128xf32>
    %52 = vector.extract_strided_slice %11 {offsets = [1, 2, 0], sizes = [1, 1, 128], strides = [1, 1, 1]} : vector<3x3x128xf32> to vector<1x1x128xf32>
    %53 = vector.shape_cast %52 : vector<1x1x128xf32> to vector<128xf32>
    %54 = vector.shape_cast %53 : vector<128xf32> to vector<1x1x128xf32>
    %55 = vector.broadcast %54 : vector<1x1x128xf32> to vector<16x16x128xf32>
    %56 = arith.mulf %51, %55 : vector<16x16x128xf32>
    %57 = arith.addf %50, %56 : vector<16x16x128xf32>
    %c2_41 = arith.constant 2 : index
    %c0_42 = arith.constant 0 : index
    %c0_43 = arith.constant 0 : index
    %58 = vector.load %arg10[%c2_41, %c0_42, %c0_43] : memref<18x18x128xf32, #tpu.memory_space<vmem>>, vector<16x16x128xf32>
    %59 = vector.extract_strided_slice %11 {offsets = [2, 0, 0], sizes = [1, 1, 128], strides = [1, 1, 1]} : vector<3x3x128xf32> to vector<1x1x128xf32>
    %60 = vector.shape_cast %59 : vector<1x1x128xf32> to vector<128xf32>
    %61 = vector.shape_cast %60 : vector<128xf32> to vector<1x1x128xf32>
    %62 = vector.broadcast %61 : vector<1x1x128xf32> to vector<16x16x128xf32>
    %63 = arith.mulf %58, %62 : vector<16x16x128xf32>
    %64 = arith.addf %57, %63 : vector<16x16x128xf32>
    %c2_44 = arith.constant 2 : index
    %c1_45 = arith.constant 1 : index
    %c0_46 = arith.constant 0 : index
    %65 = vector.load %arg10[%c2_44, %c1_45, %c0_46] : memref<18x18x128xf32, #tpu.memory_space<vmem>>, vector<16x16x128xf32>
    %66 = vector.extract_strided_slice %11 {offsets = [2, 1, 0], sizes = [1, 1, 128], strides = [1, 1, 1]} : vector<3x3x128xf32> to vector<1x1x128xf32>
    %67 = vector.shape_cast %66 : vector<1x1x128xf32> to vector<128xf32>
    %68 = vector.shape_cast %67 : vector<128xf32> to vector<1x1x128xf32>
    %69 = vector.broadcast %68 : vector<1x1x128xf32> to vector<16x16x128xf32>
    %70 = arith.mulf %65, %69 : vector<16x16x128xf32>
    %71 = arith.addf %64, %70 : vector<16x16x128xf32>
    %c2_47 = arith.constant 2 : index
    %c2_48 = arith.constant 2 : index
    %c0_49 = arith.constant 0 : index
    %72 = vector.load %arg10[%c2_47, %c2_48, %c0_49] : memref<18x18x128xf32, #tpu.memory_space<vmem>>, vector<16x16x128xf32>
    %73 = vector.extract_strided_slice %11 {offsets = [2, 2, 0], sizes = [1, 1, 128], strides = [1, 1, 1]} : vector<3x3x128xf32> to vector<1x1x128xf32>
    %74 = vector.shape_cast %73 : vector<1x1x128xf32> to vector<128xf32>
    %75 = vector.shape_cast %74 : vector<128xf32> to vector<1x1x128xf32>
    %76 = vector.broadcast %75 : vector<1x1x128xf32> to vector<16x16x128xf32>
    %77 = arith.mulf %72, %76 : vector<16x16x128xf32>
    %78 = arith.addf %71, %77 : vector<16x16x128xf32>
    %79 = vector.shape_cast %1 : vector<16x16x128xf32> to vector<256x128xf32>
    %80 = vector.shape_cast %78 : vector<16x16x128xf32> to vector<256x128xf32>
    %c0_50 = arith.constant 0 : index
    %c0_51 = arith.constant 0 : index
    %81 = vector.load %arg4[%c0_50, %c0_51] : memref<128x128xf32, #tpu.memory_space<vmem>>, vector<128x128xf32>
    %cst_52 = arith.constant dense<0.000000e+00> : vector<256x128xf32>
    %82 = tpu.matmul %79, %81, %cst_52 {dimension_numbers = #tpu.dot_dimension_numbers<[1], [0], [0], [1], [0, 0, 1, 1], [], []>} : vector<256x128xf32>, vector<128x128xf32>, vector<256x128xf32> -> vector<256x128xf32>
    %c0_53 = arith.constant 0 : index
    %c0_54 = arith.constant 0 : index
    %83 = vector.load %arg5[%c0_53, %c0_54] : memref<1x128xf32, #tpu.memory_space<vmem>>, vector<1x128xf32>
    %84 = vector.broadcast %83 : vector<1x128xf32> to vector<256x128xf32>
    %85 = arith.addf %82, %84 : vector<256x128xf32>
    %c0_55 = arith.constant 0 : index
    %c0_56 = arith.constant 0 : index
    %86 = vector.load %arg6[%c0_55, %c0_56] : memref<128x128xf32, #tpu.memory_space<vmem>>, vector<128x128xf32>
    %cst_57 = arith.constant dense<0.000000e+00> : vector<256x128xf32>
    %87 = tpu.matmul %80, %86, %cst_57 {dimension_numbers = #tpu.dot_dimension_numbers<[1], [0], [0], [1], [0, 0, 1, 1], [], []>} : vector<256x128xf32>, vector<128x128xf32>, vector<256x128xf32> -> vector<256x128xf32>
    %c0_58 = arith.constant 0 : index
    %c0_59 = arith.constant 0 : index
    %88 = vector.load %arg7[%c0_58, %c0_59] : memref<128x128xf32, #tpu.memory_space<vmem>>, vector<128x128xf32>
    %cst_60 = arith.constant dense<0.000000e+00> : vector<128x256xf32>
    %89 = tpu.matmul %88, %80, %cst_60 {dimension_numbers = #tpu.dot_dimension_numbers<[1], [1], [0], [0], [0, 0, 1, 0], [], []>} : vector<128x128xf32>, vector<256x128xf32>, vector<128x256xf32> -> vector<128x256xf32>
    %c0_61 = arith.constant 0 : index
    %c0_62 = arith.constant 0 : index
    %90 = vector.load %arg8[%c0_61, %c0_62] : memref<128x1xf32, #tpu.memory_space<vmem>>, vector<128x1xf32>
    %91 = vector.broadcast %90 : vector<128x1xf32> to vector<128x256xf32>
    %92 = arith.addf %89, %91 : vector<128x256xf32>
    %93 = vector.extract_strided_slice %85 {offsets = [0, 0], sizes = [256, 64], strides = [1, 1]} : vector<256x128xf32> to vector<256x64xf32>
    %94 = vector.extract_strided_slice %87 {offsets = [0, 0], sizes = [256, 64], strides = [1, 1]} : vector<256x128xf32> to vector<256x64xf32>
    %95 = vector.extract_strided_slice %92 {offsets = [0, 0], sizes = [64, 256], strides = [1, 1]} : vector<128x256xf32> to vector<64x256xf32>
    %cst_63 = arith.constant dense<0.000000e+00> : vector<256x256xf32>
    %96 = tpu.matmul %93, %94, %cst_63 {dimension_numbers = #tpu.dot_dimension_numbers<[1], [1], [0], [0], [0, 0, 1, 0], [], []>} : vector<256x64xf32>, vector<256x64xf32>, vector<256x256xf32> -> vector<256x256xf32>
    %cst_64 = arith.constant dense<0xFF800000> : vector<256xf32>
    %97 = vector.multi_reduction <maximumf>, %96, %cst_64 [1] : vector<256x256xf32> to vector<256xf32>
    %98 = vector.shape_cast %97 : vector<256xf32> to vector<256x1xf32>
    %99 = vector.broadcast %98 : vector<256x1xf32> to vector<256x256xf32>
    %100 = arith.subf %96, %99 : vector<256x256xf32>
    %101 = math.exp %100 : vector<256x256xf32>
    %cst_65 = arith.constant dense<0.000000e+00> : vector<256xf32>
    %102 = vector.multi_reduction <add>, %101, %cst_65 [1] : vector<256x256xf32> to vector<256xf32>
    %103 = vector.shape_cast %102 : vector<256xf32> to vector<256x1xf32>
    %104 = tpu.reciprocal %103 {approx = true} : vector<256x1xf32> -> vector<256x1xf32>
    %105 = vector.broadcast %104 : vector<256x1xf32> to vector<256x256xf32>
    %106 = arith.mulf %101, %105 : vector<256x256xf32>
    %cst_66 = arith.constant dense<0.000000e+00> : vector<64x256xf32>
    %107 = tpu.matmul %95, %106, %cst_66 {dimension_numbers = #tpu.dot_dimension_numbers<[1], [1], [0], [0], [0, 0, 1, 0], [], []>} : vector<64x256xf32>, vector<256x256xf32>, vector<64x256xf32> -> vector<64x256xf32>
    %c0_67 = arith.constant 0 : index
    %c0_68 = arith.constant 0 : index
    %c0_69 = arith.constant 0 : index
    %108 = vector.load %arg9[%c0_67, %c0_68, %c0_69] : memref<1x128x256xf32, #tpu.memory_space<vmem>>, vector<1x64x256xf32>
    %109 = vector.shape_cast %108 : vector<1x64x256xf32> to vector<64x256xf32>
    %110 = vector.shape_cast %107 : vector<64x256xf32> to vector<1x64x256xf32>
    tpu.vector_store %arg9[%c0_67, %c0_68, %c0_69], %110 {strides = array<i32>} : memref<1x128x256xf32, #tpu.memory_space<vmem>>, vector<1x64x256xf32>,
    %111 = vector.extract_strided_slice %85 {offsets = [0, 64], sizes = [256, 64], strides = [1, 1]} : vector<256x128xf32> to vector<256x64xf32>
    %112 = vector.extract_strided_slice %87 {offsets = [0, 64], sizes = [256, 64], strides = [1, 1]} : vector<256x128xf32> to vector<256x64xf32>
    %113 = vector.extract_strided_slice %92 {offsets = [64, 0], sizes = [64, 256], strides = [1, 1]} : vector<128x256xf32> to vector<64x256xf32>
    %cst_70 = arith.constant dense<0.000000e+00> : vector<256x256xf32>
    %114 = tpu.matmul %111, %112, %cst_70 {dimension_numbers = #tpu.dot_dimension_numbers<[1], [1], [0], [0], [0, 0, 1, 0], [], []>} : vector<256x64xf32>, vector<256x64xf32>, vector<256x256xf32> -> vector<256x256xf32>
    %cst_71 = arith.constant dense<0xFF800000> : vector<256xf32>
    %115 = vector.multi_reduction <maximumf>, %114, %cst_71 [1] : vector<256x256xf32> to vector<256xf32>
    %116 = vector.shape_cast %115 : vector<256xf32> to vector<256x1xf32>
    %117 = vector.broadcast %116 : vector<256x1xf32> to vector<256x256xf32>
    %118 = arith.subf %114, %117 : vector<256x256xf32>
    %119 = math.exp %118 : vector<256x256xf32>
    %cst_72 = arith.constant dense<0.000000e+00> : vector<256xf32>
    %120 = vector.multi_reduction <add>, %119, %cst_72 [1] : vector<256x256xf32> to vector<256xf32>
    %121 = vector.shape_cast %120 : vector<256xf32> to vector<256x1xf32>
    %122 = tpu.reciprocal %121 {approx = true} : vector<256x1xf32> -> vector<256x1xf32>
    %123 = vector.broadcast %122 : vector<256x1xf32> to vector<256x256xf32>
    %124 = arith.mulf %119, %123 : vector<256x256xf32>
    %cst_73 = arith.constant dense<0.000000e+00> : vector<64x256xf32>
    %125 = tpu.matmul %113, %124, %cst_73 {dimension_numbers = #tpu.dot_dimension_numbers<[1], [1], [0], [0], [0, 0, 1, 0], [], []>} : vector<64x256xf32>, vector<256x256xf32>, vector<64x256xf32> -> vector<64x256xf32>
    %c0_74 = arith.constant 0 : index
    %c64 = arith.constant 64 : index
    %c0_75 = arith.constant 0 : index
    %126 = vector.load %arg9[%c0_74, %c64, %c0_75] : memref<1x128x256xf32, #tpu.memory_space<vmem>>, vector<1x64x256xf32>
    %127 = vector.shape_cast %126 : vector<1x64x256xf32> to vector<64x256xf32>
    %128 = vector.shape_cast %125 : vector<64x256xf32> to vector<1x64x256xf32>
    tpu.vector_store %arg9[%c0_74, %c64, %c0_75], %128 {strides = array<i32>} : memref<1x128x256xf32, #tpu.memory_space<vmem>>, vector<1x64x256xf32>,
    return
  }
  func.func @transform_0(%arg0: i32) -> (i32, i32, i32, i32) {
    %c0_i32 = arith.constant 0 : i32
    %c0_i32_0 = arith.constant 0 : i32
    %c0_i32_1 = arith.constant 0 : i32
    %c0_i32_2 = arith.constant 0 : i32
    return %arg0, %c0_i32, %c0_i32_0, %c0_i32_1 : i32, i32, i32, i32
  }
  func.func @transform_1(%arg0: i32) -> (i32, i32, i32) {
    %c0_i32 = arith.constant 0 : i32
    %c0_i32_0 = arith.constant 0 : i32
    %c0_i32_1 = arith.constant 0 : i32
    %c0_i32_2 = arith.constant 0 : i32
    return %c0_i32, %c0_i32_0, %c0_i32_1 : i32, i32, i32
  }
  func.func @transform_2(%arg0: i32) -> (i32, i32) {
    %c0_i32 = arith.constant 0 : i32
    %c0_i32_0 = arith.constant 0 : i32
    %c0_i32_1 = arith.constant 0 : i32
    return %c0_i32, %c0_i32_0 : i32, i32
  }
  func.func @transform_3(%arg0: i32) -> (i32, i32) {
    %c0_i32 = arith.constant 0 : i32
    %c0_i32_0 = arith.constant 0 : i32
    %c0_i32_1 = arith.constant 0 : i32
    return %c0_i32, %c0_i32_0 : i32, i32
  }
  func.func @transform_4(%arg0: i32) -> (i32, i32) {
    %c0_i32 = arith.constant 0 : i32
    %c0_i32_0 = arith.constant 0 : i32
    %c0_i32_1 = arith.constant 0 : i32
    return %c0_i32, %c0_i32_0 : i32, i32
  }
  func.func @transform_5(%arg0: i32) -> (i32, i32) {
    %c0_i32 = arith.constant 0 : i32
    %c0_i32_0 = arith.constant 0 : i32
    %c0_i32_1 = arith.constant 0 : i32
    return %c0_i32, %c0_i32_0 : i32, i32
  }
  func.func @transform_6(%arg0: i32) -> (i32, i32) {
    %c0_i32 = arith.constant 0 : i32
    %c0_i32_0 = arith.constant 0 : i32
    %c0_i32_1 = arith.constant 0 : i32
    return %c0_i32, %c0_i32_0 : i32, i32
  }
  func.func @transform_7(%arg0: i32) -> (i32, i32) {
    %c0_i32 = arith.constant 0 : i32
    %c0_i32_0 = arith.constant 0 : i32
    %c0_i32_1 = arith.constant 0 : i32
    return %c0_i32, %c0_i32_0 : i32, i32
  }
  func.func @transform_8(%arg0: i32) -> (i32, i32, i32) {
    %c0_i32 = arith.constant 0 : i32
    %c0_i32_0 = arith.constant 0 : i32
    %c0_i32_1 = arith.constant 0 : i32
    return %arg0, %c0_i32, %c0_i32_0 : i32, i32, i32
  }
}

</mosaic_0001>

<bundles_post_ra>
// kernel: attention_forward.1
= control target key start
LH: loop header
LB: loop body
LE: loop exit
PB: predicated region body
PF: predicated region fallthrough
CT: control target
= control target key end

     0   :  { %s5558_s27 = smov 0   ;;  %s8430_s0 = inlined_call_operand.vmem [shape: f32[2,16,16,128], index: 0, kind: input, shape index: {}]   ;;  %s8431_s1 = inlined_call_operand.vmem [shape: f32[3,3,128], index: 1, kind: input, shape index: {}]   ;;  %s8432_s2 = inlined_call_operand.vmem [shape: f32[1,128], index: 2, kind: input, shape index: {}]   ;;  %s8433_s3 = inlined_call_operand.vmem [shape: f32[128,128], index: 3, kind: input, shape index: {}]   ;;  %s8434_s4 = inlined_call_operand.vmem [shape: f32[1,128], index: 4, kind: input, shape index: {}]   ;;  %s8435_s5 = inlined_call_operand.vmem [shape: f32[128,128], index: 5, kind: input, shape index: {}]   ;;  %s8436_s6 = inlined_call_operand.vmem [shape: f32[128,128], index: 6, kind: input, shape index: {}]   ;;  %s8437_s7 = inlined_call_operand.vmem [shape: f32[128,1], index: 7, kind: input, shape index: {}]   ;;  %s8438_s8 = inlined_call_operand.vmem [shape: f32[2,128,256], index: 8, kind: output, shape index: {}]  }
   0x1 LB: > { %s4355_s28 = sadd.s32 4294967295, %s5508_s27   ;;  %p4359_p0 = scmp.ge.s32.totalorder %s5508_s27, 1  ;;  %s5508_s27 = sphi %s5558_s27, %s18_s27  }
   0x2   : > { %p262_p1 = scmp.lt.s32.totalorder %s5508_s27, 3 }
   0x4   : > { %p263_p2 = pnand %p4359_p0, %p262_p1 }
   0x6   : > { %266 = sbr.rel (%p263_p2) target bundleno = 1627 (0x65b), region = 52 }
   0xb   : > { %v1620_v0 = vld [vmem:[%s8435_s5 + $0x78] sm:$0xff]  ;;  %v1619_v1 = vld [vmem:[%s8435_s5 + $0x70] sm:$0xff]  ;;  %p5574_p3 = scmp.lt.s32.totalorder %s4355_s28, 1  ;;  %v488_v2 = vlaneseq  ;;  %v5510_v3 = vmov 0.0   ;;  %v1618_v4 = vld [vmem:[%s8435_s5 + $0x68] sm:$0xff]  ;;  %vm2119_vm0 = vcmask 523264  }
   0xc   : > { %4930 = vmatprep.subr.mxu1 %v1620_v0  ;;  %338 = vst [vmem:[#allocation2] sm:$0xff] %v5510_v3  ;;  %339 = vst [vmem:[#allocation2 + $0x8] sm:$0xff] %v5510_v3  ;;  %v1617_v6 = vld [vmem:[%s8435_s5 + $0x60] sm:$0xff]  ;;  %v1616_v9 = vld [vmem:[%s8435_s5 + $0x58] sm:$0xff]  ;;  %s5511_s12 = smov 64  }
   0xd   : > { %346 = vst [vmem:[#allocation2 + $0x18] sm:$0x1] %v5510_v3  ;;  %347 = vst [vmem:[#allocation2 + $0x30] sm:$0x1] %v5510_v3  ;;  %4931 = vmatpush3.msra.mxu1 %v1620_v0  ;;  %s8900_s28 = smov (!%p5574_p3, %s4355_s28), 1  ;;  %v489_v5 = vshrl.u32 %v488_v2, 7 }
   0xe   : > { %340 = vst [vmem:[#allocation2 + $0x10] sm:$0x3] %v5510_v3  ;;  %342 = vst [vmem:[#allocation2 + $0x198] sm:$0xff] %v5510_v3  ;;  %4932 = vmatprep.subr.mxu1 %v1619_v1  ;;  %s4496_s16 = sshll.u32 %s8900_s28, 8  ;;  %v414_v10 = vld [vmem:[%s8431_s1] sm:$0x7] }
   0xf   : > { %343 = vst [vmem:[#allocation2 + $0x1a0] sm:$0xff] %v5510_v3  ;;  %344 = vst [vmem:[#allocation2 + $0x1a8] sm:$0x3] %v5510_v3  ;;  %4933 = vmatpush3.msra.mxu1 %v1619_v1  ;;  %v490_v7 = vsub.s32 0, %v489_v5  ;;  %v590_v8 = vsub.s32 1, %v489_v5  ;;  %s5599_s21 = scalar_lea.vmem %s8430_s0, %s4496_s16  ;;  %v5607_v12 = vsub.s32 2, %v489_v5  ;;  %s8324_s23 = scalar_lea.vmem %s8438_s8, %s4496_s16 }
  0x10   : > { %348 = vst [vmem:[#allocation2 + $0x48] sm:$0x1] %v5510_v3  ;;  %349 = vst [vmem:[#allocation2 + $0x60] sm:$0x1] %v5510_v3  ;;  %4934 = vmatprep.subr.mxu1 %v1618_v4  ;;  %v415_v11 = vld [vmem:[%s8431_s1 + $0x4] sm:$0x7] }
  0x11   : > { %350 = vst [vmem:[#allocation2 + $0x78] sm:$0x1] %v5510_v3  ;;  %351 = vst [vmem:[#allocation2 + $0x90] sm:$0x1] %v5510_v3  ;;  %4935 = vmatpush3.msra.mxu1 %v1618_v4  ;;  %v1615_v13 = vld [vmem:[%s8435_s5 + $0x50] sm:$0xff]  ;;  %v5613_v14 = vld [vmem:[%s5599_s21] sm:$0xff]  ;;  %v5621_v17 = vrot.slane %v414_v10, %v490_v7  ;;  %v5623_v18 = vrot.slane %v414_v10, %v590_v8  ;;  %v5639_v22 = vrot.slane %v415_v11, %v590_v8 }
  0x12   : > { %352 = vst [vmem:[#allocation2 + $0xa8] sm:$0x1] %v5510_v3  ;;  %353 = vst [vmem:[#allocation2 + $0xc0] sm:$0x1] %v5510_v3  ;;  %v5616_v15 = vld [vmem:[%s5599_s21 + $0x8] sm:$0xff]  ;;  %v5619_v16 = vld [vmem:[%s5599_s21 + $0x10] sm:$0xff]  ;;  %4936 = vmatprep.subr.mxu1 %v1617_v6  ;;  %4882 = vmatprep.mubr.f32.mxu0 %v5613_v14  ;;  %v5649_v27 = vrot.slane %v414_v10, %v5607_v12  ;;  %v5675_v42 = vrot.slane %v415_v11, %v490_v7 }
  0x13   : > { %354 = vst [vmem:[#allocation2 + $0xd8] sm:$0x1] %v5510_v3  ;;  %355 = vst [vmem:[#allocation2 + $0xf0] sm:$0x1] %v5510_v3  ;;  %v5626_v19 = vld [vmem:[%s5599_s21 + $0x18] sm:$0xff]  ;;  %4937 = vmatpush3.msra.mxu1 %v1617_v6  ;;  %v1614_v23 = vld [vmem:[%s8435_s5 + $0x48] sm:$0xff]  ;;  %v5679_v43 = vmul.f32 %v5639_v22, %v5613_v14  ;;  %v5682_v44 = vrot.slane %v415_v11, %v5607_v12  ;;  %v893_v58 = vmul.f32 %v5639_v22, %v5616_v15 }
  0x14   : > { %356 = vst [vmem:[#allocation2 + $0x108] sm:$0x1] %v5510_v3  ;;  %357 = vst [vmem:[#allocation2 + $0x120] sm:$0x1] %v5510_v3  ;;  %v416_v20 = vld [vmem:[%s8431_s1 + $0x8] sm:$0x7]  ;;  %4938 = vmatprep.subr.mxu1 %v1616_v9  ;;  %v594_v4 = vmul.f32 %v5623_v18, %v5613_v14 }
  0x15   : > { %358 = vst [vmem:[#allocation2 + $0x138] sm:$0x1] %v5510_v3  ;;  %359 = vst [vmem:[#allocation2 + $0x150] sm:$0x1] %v5510_v3  ;;  %v5637_v21 = vld [vmem:[%s8432_s2] ss:$0 sm:$0xff]  ;;  %v5651_v30 = vrot.slane %v416_v20, %v590_v8  ;;  %4939 = vmatpush3.msra.mxu1 %v1616_v9  ;;  %v5684_v45 = vrot.slane %v416_v20, %v490_v7  ;;  %v5717_v57 = vrot.slane %v416_v20, %v5607_v12 }
  0x16   : > { %360 = vst [vmem:[#allocation2 + $0x168] sm:$0x1] %v5510_v3  ;;  %361 = vst [vmem:[#allocation2 + $0x180] sm:$0x1] %v5510_v3  ;;  %v424_v24 = vadd.f32 %v5637_v21, %v5613_v14  ;;  %v556_v25 = vld [vmem:[#allocation2 + $0x1] sm:$0xff]  ;;  %v557_v28 = vld [vmem:[#allocation2 + $0x9] sm:$0xff]  ;;  %v425_v31 = vadd.f32 %v5637_v21, %v5616_v15  ;;  %4940 = vmatprep.subr.mxu1 %v1615_v13  ;;  %v426_v59 = vadd.f32 %v5637_v21, %v5619_v16 }
  0x17   : > { %364 = vst [vmem:[#allocation2 + $0x29] sm:$0x1] %v5510_v3  ;;  %365 = vst [vmem:[#allocation2 + $0x41] sm:$0x1] %v5510_v3  ;;  %v656_v26 = vld [vmem:[#allocation2 + $0x2] sm:$0xff]  ;;  %v592_v36 = vmul.f32 %v5623_v18, %v556_v25  ;;  %v493_v37 = vmul.f32 0.0, %v5621_v17  ;;  %v593_v38 = vmul.f32 %v5623_v18, %v557_v28  ;;  %4941 = vmatpush3.msra.mxu1 %v1615_v13 }
  0x18   : > { %366 = vst [vmem:[#allocation2 + $0x59] sm:$0x1] %v5510_v3  ;;  %367 = vst [vmem:[#allocation2 + $0x71] sm:$0x1] %v5510_v3  ;;  %v5656_v33 = vld [vmem:[%s5599_s21 + $0x20] sm:$0xff]  ;;  %v5666_v39 = vld [vmem:[%s5599_s21 + $0x28] sm:$0xff]  ;;  %v692_v50 = vmul.f32 %v5649_v27, %v656_v26  ;;  %4942 = vmatprep.subr.mxu1 %v1614_v23  ;;  %v5714_v56 = vmul.f32 %v5651_v30, %v5619_v16  ;;  %v5751_v9 = vmul.f32 %v5639_v22, %v5619_v16 }
  0x19   : > { %368 = vst [vmem:[#allocation2 + $0x89] sm:$0x1] %v5510_v3  ;;  %369 = vst [vmem:[#allocation2 + $0xa1] sm:$0x1] %v5510_v3  ;;  %v1613_v34 = vld [vmem:[%s8435_s5 + $0x40] sm:$0xff]  ;;  %v5670_v40 = vld [vmem:[%s5599_s21 + $0x30] sm:$0xff]  ;;  %v525_v51 = vadd.f32 %v493_v37, %v425_v31  ;;  %4943 = vmatpush3.msra.mxu1 %v1614_v23  ;;  %v5755_v10 = vmul.f32 %v5651_v30, %v5656_v33  ;;  %v427_v20 = vadd.f32 %v5637_v21, %v5626_v19 }
  0x1a   : > { %370 = vst [vmem:[#allocation2 + $0xb9] sm:$0x1] %v5510_v3  ;;  %371 = vst [vmem:[#allocation2 + $0xd1] sm:$0x1] %v5510_v3  ;;  %v5673_v41 = vld [vmem:[%s5599_s21 + $0x38] sm:$0xff]  ;;  %v5690_v46 = vld [vmem:[%s5599_s21 + $0x40] sm:$0xff]  ;;  %4944 = vmatprep.subr.mxu1 %v1613_v34  ;;  %v595_v28 = vmul.f32 %v5623_v18, %v5616_v15 }
  0x1b   : > { %372 = vst [vmem:[#allocation2 + $0xe9] sm:$0x1] %v5510_v3  ;;  %373 = vst [vmem:[#allocation2 + $0x101] sm:$0x1] %v5510_v3  ;;  %v5693_v47 = vld [vmem:[%s5599_s21 + $0x48] sm:$0xff]  ;;  %v5696_v48 = vld [vmem:[%s5599_s21 + $0x50] sm:$0xff]  ;;  %v625_v2 = vadd.f32 %v593_v38, %v525_v51  ;;  %4945 = vmatpush3.msra.mxu1 %v1613_v34 }
  0x1c   : > { %374 = vst [vmem:[#allocation2 + $0x119] sm:$0x1] %v5510_v3  ;;  %375 = vst [vmem:[#allocation2 + $0x131] sm:$0x1] %v5510_v3  ;;  %v5703_v53 = vld [vmem:[%s5599_s21 + $0x58] sm:$0xff]  ;;  %v5707_v54 = vld [vmem:[%s5599_s21 + $0x60] sm:$0xff] }
  0x1d   : > { %376 = vst [vmem:[#allocation2 + $0x149] sm:$0x1] %v5510_v3  ;;  %377 = vst [vmem:[#allocation2 + $0x161] sm:$0x1] %v5510_v3  ;;  %v5710_v55 = vld [vmem:[%s5599_s21 + $0x68] sm:$0xff]  ;;  %v5727_v60 = vld [vmem:[%s5599_s21 + $0x70] sm:$0xff] }
  0x1e   : > { %378 = vst [vmem:[#allocation2 + $0x179] sm:$0x1] %v5510_v3  ;;  %379 = vst [vmem:[#allocation2 + $0x191] sm:$0x1] %v5510_v3  ;;  %v5730_v61 = vld [vmem:[%s5599_s21 + $0x78] sm:$0xff]  ;;  %v5733_v62 = vld [vmem:[%s5599_s21 + $0x80] sm:$0xff] }
  0x1f   : > { %345 = vst [vmem:[#allocation2] sm:$0x1] %v5510_v3  ;;  %363 = vst [vmem:[#allocation2 + $0x11] sm:$0x1] %v5510_v3  ;;  %v1612_v63 = vld [vmem:[%s8435_s5 + $0x38] sm:$0xff]  ;;  %v1611_v11 = vld [vmem:[%s8435_s5 + $0x30] sm:$0xff] }
  0x20   : > { %362 = vst [vmem:[#allocation2 + $0x198] sm:$0x1] %v5510_v3  ;;  %380 = vst [vmem:[#allocation2 + $0x1a9] sm:$0x1] %v5510_v3  ;;  %v5740_v3 = vmul.f32 %v5651_v30, %v5626_v19  ;;  %v5764_v23 = vld [vmem:[%s5599_s21 + $0x88] sm:$0xff]  ;;  %4946 = vmatprep.subr.mxu1 %v1612_v63  ;;  %v5775_v31 = vld [vmem:[%s5599_s21 + $0x90] sm:$0xff] }
  0x21   : > { %382 = vst [vmem:[#allocation2 + $0x19] sm:$0xff] %v5613_v14  ;;  %383 = vst [vmem:[#allocation2 + $0x21] sm:$0xff] %v5616_v15  ;;  %4947 = vmatpush3.msra.mxu1 %v1612_v63  ;;  %v1610_v34 = vld [vmem:[%s8435_s5 + $0x28] sm:$0xff]  ;;  %v428_v63 = vadd.f32 %v5637_v21, %v5656_v33 }
  0x22   : > { %384 = vst [vmem:[#allocation2 + $0x31] sm:$0xff] %v5619_v16  ;;  %385 = vst [vmem:[#allocation2 + $0x39] sm:$0xff] %v5626_v19  ;;  %4948 = vmatprep.subr.mxu1 %v1611_v11 }
  0x23   : > { %386 = vst [vmem:[#allocation2 + $0x49] sm:$0xff] %v5656_v33  ;;  %387 = vst [vmem:[#allocation2 + $0x51] sm:$0xff] %v5666_v39  ;;  %4949 = vmatpush3.msra.mxu1 %v1611_v11 }
  0x24   : > { %388 = vst [vmem:[#allocation2 + $0x61] sm:$0xff] %v5670_v40  ;;  %389 = vst [vmem:[#allocation2 + $0x69] sm:$0xff] %v5673_v41  ;;  %4950 = vmatprep.subr.mxu1 %v1610_v34 }
  0x25   : > { %390 = vst [vmem:[#allocation2 + $0x79] sm:$0xff] %v5690_v46  ;;  %391 = vst [vmem:[#allocation2 + $0x81] sm:$0xff] %v5693_v47  ;;  %4951 = vmatpush3.msra.mxu1 %v1610_v34  ;;  %v596_v34 = vmul.f32 %v5623_v18, %v5619_v16 }
  0x26   : > { %v456_v29 = vld [vmem:[#allocation2] sm:$0xff]  ;;  %v657_v32 = vld [vmem:[#allocation2 + $0xa] sm:$0xff]  ;;  %392 = vst [vmem:[#allocation2 + $0x91] sm:$0xff] %v5696_v48  ;;  %393 = vst [vmem:[#allocation2 + $0x99] sm:$0xff] %v5703_v53 }
  0x27   : > { %v492_v35 = vmul.f32 %v5621_v17, %v456_v29  ;;  %v693_v52 = vmul.f32 %v5649_v27, %v657_v32  ;;  %394 = vst [vmem:[#allocation2 + $0xa9] sm:$0xff] %v5707_v54  ;;  %395 = vst [vmem:[#allocation2 + $0xb1] sm:$0xff] %v5710_v55  ;;  %v5771_v29 = vmul.f32 %v5639_v22, %v5626_v19  ;;  %v5778_v32 = vld [vmem:[%s5599_s21 + $0x98] sm:$0xff] }
  0x28   : > { %v756_v1 = vld [vmem:[#allocation2 + $0x18] sm:$0xff]  ;;  %396 = vst [vmem:[#allocation2 + $0xc1] sm:$0xff] %v5727_v60  ;;  %397 = vst [vmem:[#allocation2 + $0xc9] sm:$0xff] %v5730_v61  ;;  %v757_v7 = vld [vmem:[#allocation2 + $0x20] sm:$0xff] }
  0x29   : > { %v524_v49 = vadd.f32 %v492_v35, %v424_v24  ;;  %398 = vst [vmem:[#allocation2 + $0xd9] sm:$0xff] %v5733_v62  ;;  %v792_v5 = vmul.f32 %v5675_v42, %v756_v1  ;;  %v956_v6 = vld [vmem:[#allocation2 + $0x1a] sm:$0xff]  ;;  %v494_v8 = vmul.f32 %v756_v1, %v5621_v17  ;;  %v725_v13 = vadd.f32 %v693_v52, %v625_v2  ;;  %v957_v25 = vld [vmem:[#allocation2 + $0x22] sm:$0xff]  ;;  %v1257_v2 = vld [vmem:[#allocation2 + $0x32] sm:$0xff] }
  0x2a   : > { %v793_v14 = vmul.f32 %v5675_v42, %v757_v7  ;;  %v992_v24 = vmul.f32 %v5682_v44, %v956_v6  ;;  %399 = vst [vmem:[#allocation2 + $0xe1] sm:$0xff] %v5764_v23  ;;  %8589 = vst [vmem:[#allocation3_spill] sm:$0xff] %v5775_v31  ;;  %v993_v38 = vmul.f32 %v5682_v44, %v957_v25  ;;  %v5788_v51 = vld [vmem:[#allocation2 + $0x38] sm:$0xff] }
  0x2b   : > { %v624_v0 = vadd.f32 %v592_v36, %v524_v49  ;;  %v526_v26 = vadd.f32 %v494_v8, %v426_v59  ;;  %8590 = vst [vmem:[#allocation4_spill] sm:$0xff] %v5778_v32  ;;  %v1057_v36 = vld [vmem:[#allocation2 + $0x30] sm:$0xff]  ;;  %v694_v49 = vmul.f32 %v956_v6, %v5649_v27  ;;  %400 = vst [vmem:[#allocation2 + $0xf1] sm:$0xff] %v5775_v31  ;;  %v5799_v8 = vld [vmem:[#allocation2 + $0x3a] sm:$0xff] }
  0x2c   : > { %v825_v37 = vadd.f32 %v793_v14, %v725_v13  ;;  %401 = vst [vmem:[#allocation2 + $0xf9] sm:$0xff] %v5778_v32  ;;  %v794_v59 = vmul.f32 %v1057_v36, %v5675_v42  ;;  %v1094_v6 = vmul.f32 %v5684_v45, %v5788_v51  ;;  %v1294_v11 = vmul.f32 %v5717_v57, %v5799_v8 }
  0x2d   : > { %v724_v12 = vadd.f32 %v692_v50, %v624_v0  ;;  %v1093_v50 = vmul.f32 %v5684_v45, %v1057_v36  ;;  %v626_v52 = vadd.f32 %v594_v4, %v526_v26  ;;  %v1609_v0 = vld [vmem:[%s8435_s5 + $0x20] sm:$0xff]  ;;  %v495_v4 = vmul.f32 %v757_v7, %v5621_v17 }
  0x2e   : > { %v994_v14 = vmul.f32 %v1257_v2, %v5682_v44  ;;  %v695_v7 = vmul.f32 %v957_v25, %v5649_v27  ;;  %4952 = vmatprep.subr.mxu1 %v1609_v0 }
  0x2f   : > { %v824_v35 = vadd.f32 %v792_v5, %v724_v12  ;;  %v925_v5 = vadd.f32 %v893_v58, %v825_v37  ;;  %v1293_v12 = vmul.f32 %v5717_v57, %v1257_v2  ;;  %v726_v13 = vadd.f32 %v694_v49, %v626_v52  ;;  %4953 = vmatpush3.msra.mxu1 %v1609_v0 }
  0x30   : > { %v527_v37 = vadd.f32 %v495_v4, %v427_v20  ;;  %v496_v49 = vmul.f32 %v1057_v36, %v5621_v17  ;;  %v5820_v20 = vld [vmem:[#allocation2 + $0x4a] sm:$0xff]  ;;  %v696_v0 = vmul.f32 %v1257_v2, %v5649_v27 }
  0x31   : > { %v924_v1 = vadd.f32 %v5679_v43, %v824_v35  ;;  %v1608_v43 = vld [vmem:[%s8435_s5 + $0x18] sm:$0xff]  ;;  %v1025_v26 = vadd.f32 %v993_v38, %v925_v5  ;;  %v5809_v35 = vld [vmem:[#allocation2 + $0x48] sm:$0xff]  ;;  %v826_v32 = vadd.f32 %v794_v59, %v726_v13  ;;  %v795_v59 = vmul.f32 %v5788_v51, %v5675_v42 }
  0x32   : > { %v1095_v31 = vmul.f32 %v5684_v45, %v5809_v35  ;;  %v627_v25 = vadd.f32 %v595_v28, %v527_v37  ;;  %4954 = vmatprep.subr.mxu1 %v1608_v43  ;;  %v5827_v36 = vmul.f32 %v5717_v57, %v5820_v20  ;;  %v528_v16 = vadd.f32 %v496_v49, %v428_v63  ;;  %v5856_v37 = vld [vmem:[%s5599_s21 + $0xa8] sm:$0xff]  ;;  %v5858_v49 = vld [vmem:[#allocation2 + $0x52] sm:$0xff] }
  0x33   : > { %v1024_v58 = vadd.f32 %v992_v24, %v924_v1  ;;  %v1607_v24 = vld [vmem:[%s8435_s5 + $0x10] sm:$0xff]  ;;  %v1126_v52 = vadd.f32 %v1094_v6, %v1025_v26  ;;  %v926_v1 = vadd.f32 %v5751_v9, %v826_v32  ;;  %4955 = vmatpush3.msra.mxu1 %v1608_v43  ;;  %v995_v9 = vmul.f32 %v5799_v8, %v5682_v44  ;;  %v1605_v32 = vld [vmem:[%s8435_s5] sm:$0xff] }
  0x34   : > { %v727_v6 = vadd.f32 %v695_v7, %v627_v25  ;;  %4956 = vmatprep.subr.mxu1 %v1607_v24  ;;  %v628_v2 = vadd.f32 %v596_v34, %v528_v16  ;;  %v796_v4 = vmul.f32 %v5809_v35, %v5675_v42  ;;  %v5853_v26 = vld [vmem:[%s5599_s21 + $0xa0] sm:$0xff]  ;;  %v497_v34 = vmul.f32 %v5788_v51, %v5621_v17  ;;  %v333_v16 = vld [vmem:[%s5599_s21 + $0xd8] sm:$0xff] }
  0x35   : > { %v1125_v38 = vadd.f32 %v1093_v50, %v1024_v58  ;;  %v1606_v50 = vld [vmem:[%s8435_s5 + $0x8] sm:$0xff]  ;;  %v1226_v5 = vadd.f32 %v5740_v3, %v1126_v52  ;;  %v1026_v63 = vadd.f32 %v994_v14, %v926_v1  ;;  %4957 = vmatpush3.msra.mxu1 %v1607_v24  ;;  %v5848_v58 = vld [vmem:[#allocation2 + $0x50] sm:$0xff]  ;;  %v429_v14 = vadd.f32 %v5637_v21, %v5666_v39  ;;  %v5875_v52 = vld [vmem:[%s5599_s21 + $0xc0] sm:$0xff] }
  0x36   : > { %v827_v43 = vadd.f32 %v795_v59, %v727_v6  ;;  %4958 = vmatprep.subr.mxu1 %v1606_v50  ;;  %v597_v24 = vmul.f32 %v5623_v18, %v5626_v19  ;;  %402 = vst [vmem:[#allocation2 + $0x109] sm:$0xff] %v5853_v26  ;;  %403 = vst [vmem:[#allocation2 + $0x111] sm:$0xff] %v5856_v37  ;;  %v1096_v25 = vmul.f32 %v5684_v45, %v5848_v58  ;;  %v5886_v59 = vld [vmem:[%s5599_s21 + $0xc8] sm:$0xff]  ;;  %v332_v1 = vld [vmem:[%s5599_s21 + $0xd0] sm:$0xff] }
  0x37   : > { %v1225_v28 = vadd.f32 %v5714_v56, %v1125_v38  ;;  %v896_v56 = vmul.f32 %v5639_v22, %v5656_v33  ;;  %v5846_v13 = vadd.f32 %v1294_v11, %v1226_v5  ;;  %v1127_v7 = vadd.f32 %v1095_v31, %v1026_v63  ;;  %v5860_v11 = vld [vmem:[#allocation2 + $0x60] sm:$0xff]  ;;  %v5869_v38 = vld [vmem:[%s5599_s21 + $0xb0] sm:$0xff]  ;;  %v5872_v31 = vld [vmem:[%s5599_s21 + $0xb8] sm:$0xff]  ;;  %4959 = vmatpush3.msra.mxu1 %v1606_v50 }
  0x38   : > { %v927_v51 = vadd.f32 %v5771_v29, %v827_v43  ;;  %v996_v19 = vmul.f32 %v5820_v20, %v5682_v44  ;;  %404 = vst [vmem:[#allocation2 + $0x121] sm:$0xff] %v5869_v38  ;;  %405 = vst [vmem:[#allocation2 + $0x129] sm:$0xff] %v5872_v31  ;;  %4960 = vmatprep.subr.mxu1 %v1605_v32  ;;  %v529_v50 = vadd.f32 %v497_v34, %v429_v14  ;;  %v334_v5 = vld [vmem:[%s5599_s21 + $0xe0] sm:$0xff]  ;;  %v335_v6 = vld [vmem:[%s5599_s21 + $0xe8] sm:$0xff] }
  0x39   : > { %v5844_v3 = vadd.f32 %v1293_v12, %v1225_v28  ;;  %8592 = vst [vmem:[#allocation6_spill] sm:$0xff] %v5846_v13  ;;  %v728_v12 = vadd.f32 %v696_v0, %v628_v2  ;;  %406 = vst [vmem:[#allocation2 + $0x139] sm:$0xff] %v5875_v52  ;;  %v1227_v29 = vadd.f32 %v5755_v10, %v1127_v7  ;;  %v336_v63 = vld [vmem:[%s5599_s21 + $0xf0] sm:$0xff]  ;;  %4961 = vmatpush3.msra.mxu1 %v1605_v32 }
  0x3a   : > { %v697_v28 = vmul.f32 %v5799_v8, %v5649_v27  ;;  %407 = vst [vmem:[#allocation2 + $0x141] sm:$0xff] %v5886_v59  ;;  %408 = vst [vmem:[#allocation2 + $0x151] sm:$0xff] %v332_v1  ;;  %v1027_v2 = vadd.f32 %v995_v9, %v927_v51  ;;  %v1196_v43 = vmul.f32 %v5651_v30, %v5666_v39  ;;  %v337_v8 = vld [vmem:[%s5599_s21 + $0xf8] sm:$0xff] }
  0x3b   : > { %8591 = vst [vmem:[#allocation5_spill] sm:$0xff] %v5844_v3  ;;  %4962 = vmatprep.mubr.f32.mxu1 %v5844_v3  ;;  %v828_v0 = vadd.f32 %v796_v4, %v728_v12  ;;  %409 = vst [vmem:[#allocation2 + $0x159] sm:$0xff] %v333_v16  ;;  %v1296_v10 = vmul.f32 %v5717_v57, %v5858_v49  ;;  %v1097_v4 = vmul.f32 %v5684_v45, %v5860_v11 }
  0x3c   : > { %410 = vst [vmem:[#allocation2 + $0x169] sm:$0xff] %v334_v5  ;;  %411 = vst [vmem:[#allocation2 + $0x171] sm:$0xff] %v335_v6  ;;  %4963 = vmatmul.mubr.f32.vlgmr.msra.gmra.mxu1 %v5846_v13  ;;  %v5907_v14 = vadd.f32 %v5827_v36, %v1227_v29  ;;  %v629_v9 = vadd.f32 %v597_v24, %v529_v50  ;;  %v797_v7 = vmul.f32 %v5848_v58, %v5675_v42  ;;  %v1261_v24 = vld [vmem:[#allocation2 + $0x62] sm:$0xff] }
  0x3d   : > { %412 = vst [vmem:[#allocation2 + $0x181] sm:$0xff] %v336_v63  ;;  %v928_v32 = vadd.f32 %v896_v56, %v828_v0  ;;  %413 = vst [vmem:[#allocation2 + $0x189] sm:$0xff] %v337_v8  ;;  %v1128_v12 = vadd.f32 %v1096_v25, %v1027_v2  ;;  %v430_v34 = vadd.f32 %v5637_v21, %v5670_v40  ;;  %v1062_v50 = vld [vmem:[#allocation2 + $0x68] sm:$0xff] }
  0x3e   : > { %8593 = vst [vmem:[#allocation7_spill] sm:$0xff] %v5907_v14  ;;  %v498_v51 = vmul.f32 %v5809_v35, %v5621_v17  ;;  %v598_v1 = vmul.f32 %v5623_v18, %v5656_v33  ;;  %4965 = vmatprep.mubr.f32.mxu1 %v5907_v14  ;;  %v1197_v56 = vmul.f32 %v5651_v30, %v5670_v40 }
  0x3f   : > { %v1028_v36 = vadd.f32 %v996_v19, %v928_v32  ;;  %v729_v16 = vadd.f32 %v697_v28, %v629_v9  ;;  %v897_v25 = vmul.f32 %v5639_v22, %v5666_v39  ;;  %v1228_v29 = vadd.f32 %v1196_v43, %v1128_v12 }
  0x40   : > { %v1297_v0 = vmul.f32 %v5717_v57, %v1261_v24  ;;  %v530_v5 = vadd.f32 %v498_v51, %v430_v34  ;;  %v698_v35 = vmul.f32 %v5820_v20, %v5649_v27  ;;  %v997_v19 = vmul.f32 %v5858_v49, %v5682_v44  ;;  %v1262_v34 = vld [vmem:[#allocation2 + $0x6a] sm:$0xff] }
  0x41   : > { %v1129_v6 = vadd.f32 %v1097_v4, %v1028_v36  ;;  %v829_v63 = vadd.f32 %v797_v7, %v729_v16  ;;  %v1098_v2 = vmul.f32 %v5684_v45, %v1062_v50  ;;  %v5928_v8 = vadd.f32 %v1296_v10, %v1228_v29  ;;  %v5946_v16 = vld [vmem:[#allocation2 + $0x78] sm:$0xff] }
  0x42   : > { %v630_v28 = vadd.f32 %v598_v1, %v530_v5  ;;  %v798_v43 = vmul.f32 %v5860_v11, %v5675_v42  ;;  %v431_v32 = vadd.f32 %v5637_v21, %v5673_v41  ;;  %v499_v20 = vmul.f32 %v5848_v58, %v5621_v17 }
  0x43   : > { %v1229_v9 = vadd.f32 %v1197_v56, %v1129_v6  ;;  %v929_v12 = vadd.f32 %v897_v25, %v829_v63  ;;  %v599_v4 = vmul.f32 %v5623_v18, %v5666_v39  ;;  %4966 = vmatmul.mubr.f32.gmra.mxu1 %v5928_v8  ;;  %v1198_v10 = vmul.f32 %v5651_v30, %v5673_v41 }
  0x44   : > { %v1298_v7 = vmul.f32 %v5717_v57, %v1262_v34  ;;  %v730_v51 = vadd.f32 %v698_v35, %v630_v28  ;;  %v898_v1 = vmul.f32 %v5639_v22, %v5670_v40  ;;  %v531_v58 = vadd.f32 %v499_v20, %v431_v32  ;;  %v5967_v20 = vld [vmem:[#allocation2 + $0x80] sm:$0xff] }
  0x45   : > { %v5944_v36 = vadd.f32 %v1297_v0, %v1229_v9  ;;  %v1029_v56 = vadd.f32 %v997_v19, %v929_v12  ;;  %v699_v39 = vmul.f32 %v5858_v49, %v5649_v27  ;;  %v998_v29 = vmul.f32 %v1261_v24, %v5682_v44 }
  0x46   : > { %v830_v25 = vadd.f32 %v798_v43, %v730_v51  ;;  %v1099_v5 = vmul.f32 %v5684_v45, %v5946_v16  ;;  %v799_v35 = vmul.f32 %v1062_v50, %v5675_v42  ;;  %v631_v0 = vadd.f32 %v599_v4, %v531_v58  ;;  %v5961_v43 = vld [vmem:[#allocation2 + $0x7a] sm:$0xff] }
  0x47   : > { %4968 = vmatprep.mubr.f32.mxu1 %v5944_v36  ;;  %v1130_v6 = vadd.f32 %v1098_v2, %v1029_v56  ;;  %v432_v63 = vadd.f32 %v5637_v21, %v5690_v46  ;;  %v500_v19 = vmul.f32 %v5860_v11, %v5621_v17  ;;  %v1199_v49 = vmul.f32 %v5651_v30, %v5690_v46  ;;  %v1372_v11 = vld [vmem:[%s8433_s3 + $0x78] sm:$0xff] }
  0x48   : > { %v930_v28 = vadd.f32 %v898_v1, %v830_v25  ;;  %v899_v32 = vmul.f32 %v5639_v22, %v5673_v41  ;;  %v600_v9 = vmul.f32 %v5623_v18, %v5670_v40  ;;  %v731_v12 = vadd.f32 %v699_v39, %v631_v0  ;;  %v1371_v1 = vld [vmem:[%s8433_s3 + $0x70] sm:$0xff]  ;;  %4850 = vmatprep.subr.mxu0 %v1372_v11 }
  0x49   : > { %v1230_v2 = vadd.f32 %v1198_v10, %v1130_v6  ;;  %v532_v4 = vadd.f32 %v500_v19, %v432_v63  ;;  %v700_v51 = vmul.f32 %v1261_v24, %v5649_v27  ;;  %v1299_v58 = vmul.f32 %v5717_v57, %v5961_v43  ;;  %4851 = vmatpush3.msra.mxu0 %v1372_v11 }
  0x4a   : > { %v1030_v56 = vadd.f32 %v998_v29, %v930_v28  ;;  %v999_v40 = vmul.f32 %v1262_v34, %v5682_v44  ;;  %v1100_v10 = vmul.f32 %v5684_v45, %v5967_v20  ;;  %v831_v24 = vadd.f32 %v799_v35, %v731_v12  ;;  %4852 = vmatprep.subr.mxu0 %v1371_v1  ;;  %v6002_v12 = vld [vmem:[#allocation2 + $0x90] sm:$0xff] }
  0x4b   : > { %v5981_v39 = vadd.f32 %v1298_v7, %v1230_v2  ;;  %v632_v25 = vadd.f32 %v600_v9, %v532_v4  ;;  %v800_v6 = vmul.f32 %v5946_v16, %v5675_v42  ;;  %v433_v29 = vadd.f32 %v5637_v21, %v5693_v47  ;;  %v1370_v7 = vld [vmem:[%s8433_s3 + $0x68] sm:$0xff]  ;;  %4853 = vmatpush3.msra.mxu0 %v1371_v1 }
  0x4c   : > { %v1131_v0 = vadd.f32 %v1099_v5, %v1030_v56  ;;  %v501_v63 = vmul.f32 %v1062_v50, %v5621_v17  ;;  %v601_v19 = vmul.f32 %v5623_v18, %v5673_v41  ;;  %v931_v35 = vadd.f32 %v899_v32, %v831_v24  ;;  %v5996_v5 = vld [vmem:[#allocation2 + $0x82] sm:$0xff]  ;;  %4854 = vmatprep.subr.mxu0 %v1370_v7 }
  0x4d   : > { %4969 = vmatmul.mubr.f32.gmra.mxu1 %v5981_v39  ;;  %v1200_v28 = vmul.f32 %v5651_v30, %v5693_v47  ;;  %v732_v9 = vadd.f32 %v700_v51, %v632_v25  ;;  %v900_v50 = vmul.f32 %v5639_v22, %v5690_v46  ;;  %v1300_v41 = vmul.f32 %v5717_v57, %v5996_v5  ;;  %v1369_v32 = vld [vmem:[%s8433_s3 + $0x60] sm:$0xff] }
  0x4e   : > { %v1231_v2 = vadd.f32 %v1199_v49, %v1131_v0  ;;  %v533_v4 = vadd.f32 %v501_v63, %v433_v29  ;;  %v701_v11 = vmul.f32 %v1262_v34, %v5649_v27  ;;  %v1031_v56 = vadd.f32 %v999_v40, %v931_v35  ;;  %4855 = vmatpush3.msra.mxu0 %v1370_v7 }
  0x4f   : > { %v832_v24 = vadd.f32 %v800_v6, %v732_v9  ;;  %v1000_v51 = vmul.f32 %v5961_v43, %v5682_v44  ;;  %v1101_v49 = vmul.f32 %v5684_v45, %v6002_v12  ;;  %v801_v34 = vmul.f32 %v5967_v20, %v5675_v42  ;;  %v6018_v6 = vld [vmem:[#allocation2 + $0x92] sm:$0xff]  ;;  %4856 = vmatprep.subr.mxu0 %v1369_v32 }
  0x50   : > { %v6012_v25 = vadd.f32 %v1299_v58, %v1231_v2  ;;  %v633_v0 = vadd.f32 %v601_v19, %v533_v4  ;;  %v434_v1 = vadd.f32 %v5637_v21, %v5696_v48  ;;  %v1132_v29 = vadd.f32 %v1100_v10, %v1031_v56  ;;  %v1368_v58 = vld [vmem:[%s8433_s3 + $0x58] sm:$0xff]  ;;  %4857 = vmatpush3.msra.mxu0 %v1369_v32  ;;  %v1367_v56 = vld [vmem:[%s8433_s3 + $0x50] sm:$0xff] }
  0x51   : > { %v932_v40 = vadd.f32 %v900_v50, %v832_v24  ;;  %v502_v63 = vmul.f32 %v5946_v16, %v5621_v17  ;;  %v602_v35 = vmul.f32 %v5623_v18, %v5690_v46  ;;  %v1201_v19 = vmul.f32 %v5651_v30, %v5696_v48  ;;  %v6034_v46 = vld [vmem:[#allocation2 + $0x98] sm:$0xff]  ;;  %4858 = vmatprep.subr.mxu0 %v1368_v58 }
  0x52   : > { %4971 = vmatprep.mubr.f32.mxu1 %v6012_v25  ;;  %v1301_v10 = vmul.f32 %v5717_v57, %v6018_v6  ;;  %v733_v7 = vadd.f32 %v701_v11, %v633_v0  ;;  %v901_v16 = vmul.f32 %v5639_v22, %v5693_v47  ;;  %v1232_v9 = vadd.f32 %v1200_v28, %v1132_v29 }
  0x53   : > { %v1032_v50 = vadd.f32 %v1000_v51, %v932_v40  ;;  %v534_v2 = vadd.f32 %v502_v63, %v434_v1  ;;  %v702_v4 = vmul.f32 %v5961_v43, %v5649_v27  ;;  %v1001_v11 = vmul.f32 %v5996_v5, %v5682_v44  ;;  %4859 = vmatpush3.msra.mxu0 %v1368_v58  ;;  %v6053_v40 = vld [vmem:[#allocation2 + $0x9a] sm:$0xff] }
  0x54   : > { %v833_v24 = vadd.f32 %v801_v34, %v733_v7  ;;  %v1102_v0 = vmul.f32 %v5684_v45, %v6034_v46  ;;  %v802_v28 = vmul.f32 %v6002_v12, %v5675_v42  ;;  %v6047_v51 = vadd.f32 %v1300_v41, %v1232_v9  ;;  %4860 = vmatprep.subr.mxu0 %v1367_v56  ;;  %v1366_v41 = vld [vmem:[%s8433_s3 + $0x48] sm:$0xff] }
  0x55   : > { %v1133_v1 = vadd.f32 %v1101_v49, %v1032_v50  ;;  %v634_v43 = vadd.f32 %v602_v35, %v534_v2  ;;  %v435_v32 = vadd.f32 %v5637_v21, %v5703_v53  ;;  %v1202_v34 = vmul.f32 %v5651_v30, %v5703_v53  ;;  %4861 = vmatpush3.msra.mxu0 %v1367_v56 }
  0x56   : > { %v933_v29 = vadd.f32 %v901_v16, %v833_v24  ;;  %v503_v63 = vmul.f32 %v5967_v20, %v5621_v17  ;;  %v603_v7 = vmul.f32 %v5623_v18, %v5693_v47  ;;  %4972 = vmatmul.mubr.f32.gmra.mxu1 %v6047_v51  ;;  %v1302_v35 = vmul.f32 %v5717_v57, %v6053_v40  ;;  %v6069_v47 = vld [vmem:[#allocation2 + $0xa8] sm:$0xff] }
  0x57   : > { %v1233_v49 = vadd.f32 %v1201_v19, %v1133_v1  ;;  %v734_v58 = vadd.f32 %v702_v4, %v634_v43  ;;  %v902_v16 = vmul.f32 %v5639_v22, %v5696_v48  ;;  %v1002_v20 = vmul.f32 %v6018_v6, %v5682_v44  ;;  %4862 = vmatprep.subr.mxu0 %v1366_v41 }
  0x58   : > { %v1033_v9 = vadd.f32 %v1001_v11, %v933_v29  ;;  %v535_v50 = vadd.f32 %v503_v63, %v435_v32  ;;  %v703_v2 = vmul.f32 %v5996_v5, %v5649_v27  ;;  %v1103_v4 = vmul.f32 %v5684_v45, %v6069_v47  ;;  %v1365_v11 = vld [vmem:[%s8433_s3 + $0x40] sm:$0xff]  ;;  %4863 = vmatpush3.msra.mxu0 %v1366_v41  ;;  %v1364_v63 = vld [vmem:[%s8433_s3 + $0x38] sm:$0xff]  ;;  %v6096_v41 = vld [vmem:[#allocation2 + $0xb0] sm:$0xff] }
  0x59   : > { %v6073_v24 = vadd.f32 %v1301_v10, %v1233_v49  ;;  %v834_v19 = vadd.f32 %v802_v28, %v734_v58  ;;  %v803_v1 = vmul.f32 %v6034_v46, %v5675_v42  ;;  %v436_v5 = vadd.f32 %v5637_v21, %v5707_v54  ;;  %v1267_v49 = vld [vmem:[#allocation2 + $0xaa] sm:$0xff]  ;;  %4864 = vmatprep.subr.mxu0 %v1365_v11 }
  0x5a   : > { %v1134_v43 = vadd.f32 %v1102_v0, %v1033_v9  ;;  %v635_v32 = vadd.f32 %v603_v7, %v535_v50  ;;  %v504_v10 = vmul.f32 %v6002_v12, %v5621_v17  ;;  %v1203_v28 = vmul.f32 %v5651_v30, %v5707_v54  ;;  %4865 = vmatpush3.msra.mxu0 %v1365_v11 }
  0x5b   : > { %4974 = vmatprep.mubr.f32.mxu1 %v6073_v24  ;;  %v934_v56 = vadd.f32 %v902_v16, %v834_v19  ;;  %v903_v29 = vmul.f32 %v5639_v22, %v5703_v53  ;;  %v604_v0 = vmul.f32 %v5623_v18, %v5696_v48  ;;  %v704_v16 = vmul.f32 %v6018_v6, %v5649_v27  ;;  %v1363_v6 = vld [vmem:[%s8433_s3 + $0x30] sm:$0xff] }
  0x5c   : > { %v1234_v7 = vadd.f32 %v1202_v34, %v1134_v43  ;;  %v735_v12 = vadd.f32 %v703_v2, %v635_v32  ;;  %v536_v58 = vadd.f32 %v504_v10, %v436_v5  ;;  %v1303_v50 = vmul.f32 %v5717_v57, %v1267_v49  ;;  %4866 = vmatprep.subr.mxu0 %v1364_v63 }
  0x5d   : > { %v1034_v9 = vadd.f32 %v1002_v20, %v934_v56  ;;  %v1003_v48 = vmul.f32 %v6053_v40, %v5682_v44  ;;  %v1104_v19 = vmul.f32 %v5684_v45, %v6096_v41  ;;  %v804_v32 = vmul.f32 %v6069_v47, %v5675_v42  ;;  %4867 = vmatpush3.msra.mxu0 %v1364_v63  ;;  %v6121_v56 = vld [vmem:[#allocation2 + $0xb2] sm:$0xff]  ;;  %v6130_v63 = vld [vmem:[#allocation2 + $0xc0] sm:$0xff] }
  0x5e   : > { %v6105_v34 = vadd.f32 %v1302_v35, %v1234_v7  ;;  %v835_v2 = vadd.f32 %v803_v1, %v735_v12  ;;  %v636_v43 = vadd.f32 %v604_v0, %v536_v58  ;;  %v437_v5 = vadd.f32 %v5637_v21, %v5710_v55  ;;  %4868 = vmatprep.subr.mxu0 %v1363_v6 }
  0x5f   : > { %v1135_v20 = vadd.f32 %v1103_v4, %v1034_v9  ;;  %v505_v10 = vmul.f32 %v6034_v46, %v5621_v17  ;;  %v605_v35 = vmul.f32 %v5623_v18, %v5703_v53  ;;  %v1204_v11 = vmul.f32 %v5651_v30, %v5710_v55  ;;  %v1362_v46 = vld [vmem:[%s8433_s3 + $0x28] sm:$0xff]  ;;  %4869 = vmatpush3.msra.mxu0 %v1363_v6 }
  0x60   : > { %4975 = vmatmul.mubr.f32.gmra.mxu1 %v6105_v34  ;;  %v935_v1 = vadd.f32 %v903_v29, %v835_v2  ;;  %v736_v0 = vadd.f32 %v704_v16, %v636_v43  ;;  %v904_v4 = vmul.f32 %v5639_v22, %v5707_v54  ;;  %v1304_v53 = vmul.f32 %v5717_v57, %v6121_v56 }
  0x61   : > { %v1235_v7 = vadd.f32 %v1203_v28, %v1135_v20  ;;  %v537_v29 = vadd.f32 %v505_v10, %v437_v5  ;;  %v705_v12 = vmul.f32 %v6053_v40, %v5649_v27  ;;  %v1004_v9 = vmul.f32 %v1267_v49, %v5682_v44  ;;  %4870 = vmatprep.subr.mxu0 %v1362_v46  ;;  %v1361_v40 = vld [vmem:[%s8433_s3 + $0x20] sm:$0xff] }
  0x62   : > { %v1035_v58 = vadd.f32 %v1003_v48, %v935_v1  ;;  %v836_v16 = vadd.f32 %v804_v32, %v736_v0  ;;  %v1105_v2 = vmul.f32 %v5684_v45, %v6130_v63  ;;  %v805_v20 = vmul.f32 %v6096_v41, %v5675_v42  ;;  %v6146_v10 = vld [vmem:[#allocation2 + $0xc2] sm:$0xff]  ;;  %4871 = vmatpush3.msra.mxu0 %v1362_v46 }
  0x63   : > { %v6137_v43 = vadd.f32 %v1303_v50, %v1235_v7  ;;  %v637_v28 = vadd.f32 %v605_v35, %v537_v29  ;;  %v438_v5 = vadd.f32 %v5637_v21, %v5727_v60  ;;  %v506_v50 = vmul.f32 %v6069_v47, %v5621_v17  ;;  %v1360_v47 = vld [vmem:[%s8433_s3 + $0x18] sm:$0xff]  ;;  %4872 = vmatprep.subr.mxu0 %v1361_v40 }
  0x64   : > { %v1136_v48 = vadd.f32 %v1104_v19, %v1035_v58  ;;  %v936_v32 = vadd.f32 %v904_v4, %v836_v16  ;;  %v606_v6 = vmul.f32 %v5623_v18, %v5707_v54  ;;  %v1205_v35 = vmul.f32 %v5651_v30, %v5727_v60  ;;  %v6162_v54 = vld [vmem:[#allocation2 + $0xc8] sm:$0xff]  ;;  %4873 = vmatpush3.msra.mxu0 %v1361_v40 }
  0x65   : > { %4977 = vmatprep.mubr.f32.mxu1 %v6137_v43  ;;  %v1305_v1 = vmul.f32 %v5717_v57, %v6146_v10  ;;  %v737_v0 = vadd.f32 %v705_v12, %v637_v28  ;;  %v905_v19 = vmul.f32 %v5639_v22, %v5710_v55  ;;  %v538_v46 = vadd.f32 %v506_v50, %v438_v5 }
  0x66   : > { %v1236_v4 = vadd.f32 %v1204_v11, %v1136_v48  ;;  %v1036_v7 = vadd.f32 %v1004_v9, %v936_v32  ;;  %v706_v29 = vmul.f32 %v1267_v49, %v5649_v27  ;;  %v1005_v16 = vmul.f32 %v6121_v56, %v5682_v44  ;;  %4874 = vmatprep.subr.mxu0 %v1360_v47  ;;  %v1359_v49 = vld [vmem:[%s8433_s3 + $0x10] sm:$0xff] }
  0x67   : > { %v837_v58 = vadd.f32 %v805_v20, %v737_v0  ;;  %v1106_v12 = vmul.f32 %v5684_v45, %v6162_v54  ;;  %v806_v28 = vmul.f32 %v6130_v63, %v5675_v42  ;;  %v638_v9 = vadd.f32 %v606_v6, %v538_v46  ;;  %v6180_v32 = vld [vmem:[#allocation2 + $0xca] sm:$0xff]  ;;  %4875 = vmatpush3.msra.mxu0 %v1360_v47 }
  0x68   : > { %v6171_v3 = vadd.f32 %v1304_v53, %v1236_v4  ;;  %v1137_v11 = vadd.f32 %v1105_v2, %v1036_v7  ;;  %v439_v5 = vadd.f32 %v5637_v21, %v5730_v61  ;;  %v1206_v48 = vmul.f32 %v5651_v30, %v5730_v61  ;;  %4876 = vmatprep.subr.mxu0 %v1359_v49 }
  0x69   : > { %v937_v20 = vadd.f32 %v905_v19, %v837_v58  ;;  %v507_v53 = vmul.f32 %v6096_v41, %v5621_v17  ;;  %v607_v2 = vmul.f32 %v5623_v18, %v5710_v55  ;;  %v1306_v50 = vmul.f32 %v5717_v57, %v6180_v32  ;;  %v1358_v19 = vld [vmem:[%s8433_s3 + $0x8] sm:$0xff]  ;;  %v6196_v55 = vld [vmem:[#allocation2 + $0xd8] sm:$0xff]  ;;  %4877 = vmatpush3.msra.mxu0 %v1359_v49 }
  0x6a   : > { %4978 = vmatmul.mubr.f32.gmra.mxu1 %v6171_v3  ;;  %v1237_v40 = vadd.f32 %v1205_v35, %v1137_v11  ;;  %v738_v6 = vadd.f32 %v706_v29, %v638_v9  ;;  %v906_v0 = vmul.f32 %v5639_v22, %v5727_v60  ;;  %v1006_v41 = vmul.f32 %v6146_v10, %v5682_v44 }
  0x6b   : > { %v1037_v4 = vadd.f32 %v1005_v16, %v937_v20  ;;  %v539_v47 = vadd.f32 %v507_v53, %v439_v5  ;;  %v707_v35 = vmul.f32 %v6121_v56, %v5649_v27  ;;  %v1107_v29 = vmul.f32 %v5684_v45, %v6196_v55  ;;  %4878 = vmatprep.subr.mxu0 %v1358_v19  ;;  %v1357_v56 = vld [vmem:[%s8433_s3] sm:$0xff] }
  0x6c   : > { %v6200_v7 = vadd.f32 %v1305_v1, %v1237_v40  ;;  %v838_v46 = vadd.f32 %v806_v28, %v738_v6  ;;  %v807_v58 = vmul.f32 %v6162_v54, %v5675_v42  ;;  %v440_v9 = vadd.f32 %v5637_v21, %v5733_v62  ;;  %v1271_v53 = vld [vmem:[#allocation2 + $0xda] sm:$0xff]  ;;  %4879 = vmatpush3.msra.mxu0 %v1358_v19 }
  0x6d   : > { %v1138_v16 = vadd.f32 %v1106_v12, %v1037_v4  ;;  %v639_v11 = vadd.f32 %v607_v2, %v539_v47  ;;  %v508_v5 = vmul.f32 %v6130_v63, %v5621_v17  ;;  %v1207_v28 = vmul.f32 %v5651_v30, %v5733_v62  ;;  %v6220_v2 = vld [vmem:[#allocation2 + $0xe0] sm:$0xff]  ;;  %4880 = vmatprep.subr.mxu0 %v1357_v56 }
  0x6e   : > { %4980 = vmatprep.mubr.f32.mxu1 %v6200_v7  ;;  %v938_v1 = vadd.f32 %v906_v0, %v838_v46  ;;  %v907_v12 = vmul.f32 %v5639_v22, %v5730_v61  ;;  %v608_v49 = vmul.f32 %v5623_v18, %v5727_v60  ;;  %v708_v6 = vmul.f32 %v6146_v10, %v5649_v27 }
  0x6f   : > { %v1238_v20 = vadd.f32 %v1206_v48, %v1138_v16  ;;  %v739_v63 = vadd.f32 %v707_v35, %v639_v11  ;;  %v540_v40 = vadd.f32 %v508_v5, %v440_v9  ;;  %v1307_v4 = vmul.f32 %v5717_v57, %v1271_v53  ;;  %4881 = vmatpush3.msra.mxu0 %v1357_v56  ;;  %v6243_v9 = vld [vmem:[#allocation2 + $0xe2] sm:$0xff]  ;;  %v6249_v56 = vld [vmem:[#allocation2 + $0xf0] sm:$0xff] }
  0x70   : > { %v1038_v0 = vadd.f32 %v1006_v41, %v938_v1  ;;  %v1007_v47 = vmul.f32 %v6180_v32, %v5682_v44  ;;  %v1108_v46 = vmul.f32 %v5684_v45, %v6220_v2  ;;  %v808_v16 = vmul.f32 %v6196_v55, %v5675_v42  ;;  %4883 = vmatmul.mubr.f32.vlgmr.msra.gmra.mxu0 %v5616_v15  ;;  %v5471_v1 = vld [vmem:[#allocation2 + $0x31] sm:$0xff] }
  0x71   : > { %v6229_v60 = vadd.f32 %v1306_v50, %v1238_v20  ;;  %v839_v48 = vadd.f32 %v807_v58, %v739_v63  ;;  %v640_v35 = vadd.f32 %v608_v49, %v540_v40  ;;  %v441_v19 = vadd.f32 %v5637_v21, %v5764_v23  ;;  %4885 = vmatprep.mubr.f32.mxu0 %v5471_v1 }
  0x72   : > { %v1139_v10 = vadd.f32 %v1107_v29, %v1038_v0  ;;  %v509_v41 = vmul.f32 %v6162_v54, %v5621_v17  ;;  %v609_v11 = vmul.f32 %v5623_v18, %v5730_v61  ;;  %v1208_v58 = vmul.f32 %v5651_v30, %v5764_v23  ;;  %v6263_v0 = vld [vmem:[%s8432_s2] ss:$0 sm:$0xff] }
  0x73   : > { %4981 = vmatmul.mubr.f32.gmra.mxu1 %v6229_v60  ;;  %v939_v50 = vadd.f32 %v907_v12, %v839_v48  ;;  %v740_v29 = vadd.f32 %v708_v6, %v640_v35  ;;  %v908_v21 = vmul.f32 %v5639_v22, %v5733_v62  ;;  %v1308_v54 = vmul.f32 %v5717_v57, %v6243_v9  ;;  %v5473_v48 = vld [vmem:[#allocation2 + $0x39] sm:$0xff] }
  0x74   : > { %v1239_v5 = vadd.f32 %v1207_v28, %v1139_v10  ;;  %v541_v61 = vadd.f32 %v509_v41, %v441_v19  ;;  %v709_v15 = vmul.f32 %v6180_v32, %v5649_v27  ;;  %v1008_v20 = vmul.f32 %v1271_v53, %v5682_v44  ;;  %v8594_v32 = vld [vmem:[#allocation3_spill] sm:$0xff]  ;;  %4886 = vmatmul.mubr.f32.gmra.mxu0 %v5473_v48 }
  0x75   : > { %v1039_v12 = vadd.f32 %v1007_v47, %v939_v50  ;;  %v840_v49 = vadd.f32 %v808_v16, %v740_v29  ;;  %v1109_v63 = vmul.f32 %v5684_v45, %v6249_v56  ;;  %v809_v6 = vmul.f32 %v6220_v2, %v5675_v42  ;;  %v6267_v10 = vld [vmem:[#allocation2 + $0xf2] sm:$0xff]  ;;  %4888 = vmatprep.mubr.f32.mxu0 %v5656_v33 }
  0x76   : > { %v6256_v40 = vadd.f32 %v1307_v4, %v1239_v5  ;;  %v641_v28 = vadd.f32 %v609_v11, %v541_v61  ;;  %v442_v47 = vadd.f32 %v6263_v0, %v8594_v32  ;;  %v510_v4 = vmul.f32 %v6196_v55, %v5621_v17  ;;  %v6281_v55 = vld [vmem:[#allocation2 + $0xf8] sm:$0xff] }
  0x77   : > { %v1140_v35 = vadd.f32 %v1108_v46, %v1039_v12  ;;  %v940_v16 = vadd.f32 %v908_v21, %v840_v49  ;;  %v610_v19 = vmul.f32 %v5623_v18, %v5733_v62  ;;  %v1209_v41 = vmul.f32 %v5651_v30, %v8594_v32  ;;  %v5474_v12 = vld [vmem:[#allocation2 + $0x51] sm:$0xff] }
  0x78   : > { %4983 = vmatprep.mubr.f32.mxu1 %v6256_v40  ;;  %v1309_v11 = vmul.f32 %v5717_v57, %v6267_v10  ;;  %v741_v46 = vadd.f32 %v709_v15, %v641_v28  ;;  %v909_v50 = vmul.f32 %v5639_v22, %v5764_v23  ;;  %v542_v5 = vadd.f32 %v510_v4, %v442_v47  ;;  %v8595_v28 = vld [vmem:[#allocation4_spill] sm:$0xff] }
  0x79   : > { %v1240_v29 = vadd.f32 %v1208_v58, %v1140_v35  ;;  %v1040_v21 = vadd.f32 %v1008_v20, %v940_v16  ;;  %v710_v62 = vmul.f32 %v1271_v53, %v5649_v27  ;;  %v1009_v61 = vmul.f32 %v6243_v9, %v5682_v44  ;;  %4889 = vmatmul.mubr.f32.gmra.mxu0 %v5474_v12  ;;  %v5475_v53 = vld [vmem:[#allocation2 + $0x61] sm:$0xff]  ;;  %v5477_v12 = vld [vmem:[#allocation2 + $0x79] sm:$0xff] }
  0x7a   : > { %v841_v33 = vadd.f32 %v809_v6, %v741_v46  ;;  %v1110_v1 = vmul.f32 %v5684_v45, %v6281_v55  ;;  %v810_v15 = vmul.f32 %v6249_v56, %v5675_v42  ;;  %v642_v20 = vadd.f32 %v610_v19, %v542_v5  ;;  %4891 = vmatprep.mubr.f32.mxu0 %v5475_v53  ;;  %v1274_v35 = vld [vmem:[#allocation2 + $0xfa] sm:$0xff] }
  0x7b   : > { %v6290_v49 = vadd.f32 %v1308_v54, %v1240_v29  ;;  %v1141_v58 = vadd.f32 %v1109_v63, %v1040_v21  ;;  %v443_v47 = vadd.f32 %v6263_v0, %v8595_v28  ;;  %v1210_v48 = vmul.f32 %v5651_v30, %v8595_v28  ;;  %v6306_v21 = vld [vmem:[#allocation2 + $0x108] sm:$0xff] }
  0x7c   : > { %v941_v6 = vadd.f32 %v909_v50, %v841_v33  ;;  %v511_v16 = vmul.f32 %v6220_v2, %v5621_v17  ;;  %v611_v4 = vmul.f32 %v5623_v18, %v5764_v23  ;;  %v1310_v63 = vmul.f32 %v5717_v57, %v1274_v35  ;;  %v5476_v23 = vld [vmem:[#allocation2 + $0x69] sm:$0xff] }
  0x7d   : > { %4984 = vmatmul.mubr.f32.gmra.mxu1 %v6290_v49  ;;  %v1241_v54 = vadd.f32 %v1209_v41, %v1141_v58  ;;  %v742_v19 = vadd.f32 %v710_v62, %v642_v20  ;;  %v910_v46 = vmul.f32 %v5639_v22, %v8594_v32  ;;  %v1010_v29 = vmul.f32 %v6267_v10, %v5682_v44 }
  0x7e   : > { %v1041_v50 = vadd.f32 %v1009_v61, %v941_v6  ;;  %v543_v5 = vadd.f32 %v511_v16, %v443_v47  ;;  %v711_v2 = vmul.f32 %v6243_v9, %v5649_v27  ;;  %4892 = vmatmul.mubr.f32.gmra.mxu0 %v5476_v23  ;;  %v1111_v62 = vmul.f32 %v5684_v45, %v6306_v21  ;;  %v1275_v16 = vld [vmem:[#allocation2 + $0x10a] sm:$0xff] }
  0x7f   : > { %v6310_v33 = vadd.f32 %v1309_v11, %v1241_v54  ;;  %v842_v41 = vadd.f32 %v810_v15, %v742_v19  ;;  %v811_v61 = vmul.f32 %v6281_v55, %v5675_v42  ;;  %4894 = vmatprep.mubr.f32.mxu0 %v5477_v12  ;;  %v444_v47 = vadd.f32 %v6263_v0, %v5853_v26  ;;  %v6327_v54 = vld [vmem:[#allocation2 + $0x110] sm:$0xff] }
  0x80   : > { %v1142_v58 = vadd.f32 %v1110_v1, %v1041_v50  ;;  %v643_v20 = vadd.f32 %v611_v4, %v543_v5  ;;  %v512_v9 = vmul.f32 %v6249_v56, %v5621_v17  ;;  %v1211_v15 = vmul.f32 %v5651_v30, %v5853_v26  ;;  %v5478_v50 = vld [vmem:[#allocation2 + $0x81] sm:$0xff] }
  0x81   : > { %8596 = vst [vmem:[#allocation3_spill] sm:$0xff] %v6310_v33  ;;  %4986 = vmatprep.mubr.f32.mxu1 %v6310_v33  ;;  %v942_v11 = vadd.f32 %v910_v46, %v842_v41  ;;  %v911_v53 = vmul.f32 %v5639_v22, %v8595_v28  ;;  %v612_v6 = vmul.f32 %v5623_v18, %v8594_v32  ;;  %v5479_v32 = vld [vmem:[#allocation2 + $0x91] sm:$0xff] }
  0x82   : > { %v1242_v1 = vadd.f32 %v1210_v48, %v1142_v58  ;;  %v743_v4 = vadd.f32 %v711_v2, %v643_v20  ;;  %v544_v19 = vadd.f32 %v512_v9, %v444_v47  ;;  %v712_v56 = vmul.f32 %v6267_v10, %v5649_v27  ;;  %4895 = vmatmul.mubr.f32.gmra.mxu0 %v5478_v50 }
  0x83   : > { %v1042_v46 = vadd.f32 %v1010_v29, %v942_v11  ;;  %v1311_v5 = vmul.f32 %v5717_v57, %v1275_v16  ;;  %v1011_v23 = vmul.f32 %v1274_v35, %v5682_v44  ;;  %v1112_v41 = vmul.f32 %v5684_v45, %v6327_v54  ;;  %4897 = vmatprep.mubr.f32.mxu0 %v5479_v32  ;;  %v5481_v32 = vld [vmem:[#allocation2 + $0xa9] sm:$0xff] }
  0x84   : > { %v6335_v48 = vadd.f32 %v1310_v63, %v1242_v1  ;;  %v843_v2 = vadd.f32 %v811_v61, %v743_v4  ;;  %v644_v12 = vadd.f32 %v612_v6, %v544_v19  ;;  %v812_v58 = vmul.f32 %v6306_v21, %v5675_v42  ;;  %v1276_v61 = vld [vmem:[#allocation2 + $0x112] sm:$0xff]  ;;  %v6351_v4 = vld [vmem:[#allocation2 + $0x120] sm:$0xff] }
  0x85   : > { %v1143_v10 = vadd.f32 %v1111_v62, %v1042_v46  ;;  %v445_v29 = vadd.f32 %v6263_v0, %v5856_v37  ;;  %v513_v20 = vmul.f32 %v6281_v55, %v5621_v17  ;;  %v613_v47 = vmul.f32 %v5623_v18, %v8595_v28  ;;  %v5480_v28 = vld [vmem:[#allocation2 + $0x99] sm:$0xff] }
  0x86   : > { %8597 = vst [vmem:[#allocation4_spill] sm:$0xff] %v6335_v48  ;;  %4987 = vmatmul.mubr.f32.gmra.mxu1 %v6335_v48  ;;  %v943_v9 = vadd.f32 %v911_v53, %v843_v2  ;;  %v1212_v63 = vmul.f32 %v5651_v30, %v5856_v37  ;;  %v744_v11 = vadd.f32 %v712_v56, %v644_v12 }
  0x87   : > { %v912_v62 = vmul.f32 %v5639_v22, %v5853_v26  ;;  %v1243_v6 = vadd.f32 %v1211_v15, %v1143_v10  ;;  %v1312_v1 = vmul.f32 %v5717_v57, %v1276_v61  ;;  %v545_v55 = vadd.f32 %v513_v20, %v445_v29  ;;  %4898 = vmatmul.mubr.f32.gmra.mxu0 %v5480_v28  ;;  %v5482_v28 = vld [vmem:[#allocation2 + $0xb1] sm:$0xff] }
  0x88   : > { %v713_v19 = vmul.f32 %v1274_v35, %v5649_v27  ;;  %v1043_v50 = vadd.f32 %v1011_v23, %v943_v9  ;;  %v844_v53 = vadd.f32 %v812_v58, %v744_v11  ;;  %v1012_v46 = vmul.f32 %v1275_v16, %v5682_v44  ;;  %4900 = vmatprep.mubr.f32.mxu0 %v5481_v32  ;;  %v1277_v23 = vld [vmem:[#allocation2 + $0x122] sm:$0xff] }
  0x89   : > { %v1113_v56 = vmul.f32 %v5684_v45, %v6351_v4  ;;  %v6357_v2 = vadd.f32 %v1311_v5, %v1243_v6  ;;  %v645_v15 = vadd.f32 %v613_v47, %v545_v55  ;;  %v813_v12 = vmul.f32 %v6327_v54, %v5675_v42  ;;  %v6373_v6 = vld [vmem:[#allocation2 + $0x128] sm:$0xff] }
  0x8a   : > { %v446_v35 = vadd.f32 %v6263_v0, %v5869_v38  ;;  %v1144_v10 = vadd.f32 %v1112_v41, %v1043_v50  ;;  %v944_v29 = vadd.f32 %v912_v62, %v844_v53  ;;  %v514_v58 = vmul.f32 %v6306_v21, %v5621_v17  ;;  %v5483_v32 = vld [vmem:[#allocation2 + $0xc1] sm:$0xff] }
  0x8b   : > { %v614_v20 = vmul.f32 %v5623_v18, %v5853_v26  ;;  %4989 = vmatprep.mubr.f32.mxu1 %v6357_v2  ;;  %v1213_v5 = vmul.f32 %v5651_v30, %v5869_v38  ;;  %v1313_v47 = vmul.f32 %v5717_v57, %v1277_v23  ;;  %v745_v9 = vadd.f32 %v713_v19, %v645_v15 }
  0x8c   : > { %v913_v11 = vmul.f32 %v5639_v22, %v5856_v37  ;;  %v1244_v41 = vadd.f32 %v1212_v63, %v1144_v10  ;;  %v1044_v62 = vadd.f32 %v1012_v46, %v944_v29  ;;  %v546_v55 = vadd.f32 %v514_v58, %v446_v35  ;;  %4901 = vmatmul.mubr.f32.gmra.mxu0 %v5482_v28  ;;  %v6387_v10 = vld [vmem:[#allocation2 + $0x12a] sm:$0xff] }
  0x8d   : > { %v714_v21 = vmul.f32 %v1275_v16, %v5649_v27  ;;  %v845_v26 = vadd.f32 %v813_v12, %v745_v9  ;;  %v1013_v50 = vmul.f32 %v1276_v61, %v5682_v44  ;;  %v1114_v53 = vmul.f32 %v5684_v45, %v6373_v6  ;;  %4903 = vmatprep.mubr.f32.mxu0 %v5483_v32  ;;  %v5484_v28 = vld [vmem:[#allocation2 + $0xc9] sm:$0xff]  ;;  %v5485_v32 = vld [vmem:[#allocation2 + $0xd9] sm:$0xff] }
  0x8e   : > { %v814_v19 = vmul.f32 %v6351_v4, %v5675_v42  ;;  %v6381_v63 = vadd.f32 %v1312_v1, %v1244_v41  ;;  %v1145_v46 = vadd.f32 %v1113_v56, %v1044_v62  ;;  %v646_v15 = vadd.f32 %v614_v20, %v546_v55  ;;  %v6399_v62 = vld [vmem:[#allocation2 + $0x138] sm:$0xff] }
  0x8f   : > { %v447_v16 = vadd.f32 %v6263_v0, %v5872_v31  ;;  %v945_v35 = vadd.f32 %v913_v11, %v845_v26  ;;  %v1214_v12 = vmul.f32 %v5651_v30, %v5872_v31  ;;  %v515_v29 = vmul.f32 %v6327_v54, %v5621_v17 }
  0x90   : > { %v615_v58 = vmul.f32 %v5623_v18, %v5856_v37  ;;  %4990 = vmatmul.mubr.f32.gmra.mxu1 %v6381_v63  ;;  %v1245_v1 = vadd.f32 %v1213_v5, %v1145_v46  ;;  %v1314_v56 = vmul.f32 %v5717_v57, %v6387_v10  ;;  %v746_v20 = vadd.f32 %v714_v21, %v646_v15 }
  0x91   : > { %v914_v9 = vmul.f32 %v5639_v22, %v5869_v38  ;;  %v1045_v11 = vadd.f32 %v1013_v50, %v945_v35  ;;  %v1014_v41 = vmul.f32 %v1277_v23, %v5682_v44  ;;  %v547_v55 = vadd.f32 %v515_v29, %v447_v16  ;;  %4904 = vmatmul.mubr.f32.gmra.mxu0 %v5484_v28  ;;  %v1279_v29 = vld [vmem:[#allocation2 + $0x13a] sm:$0xff] }
  0x92   : > { %v715_v54 = vmul.f32 %v1276_v61, %v5649_v27  ;;  %v6402_v37 = vadd.f32 %v1313_v47, %v1245_v1  ;;  %v846_v5 = vadd.f32 %v814_v19, %v746_v20  ;;  %v1115_v26 = vmul.f32 %v5684_v45, %v6399_v62  ;;  %4906 = vmatprep.mubr.f32.mxu0 %v5485_v32  ;;  %v6419_v1 = vld [vmem:[#allocation2 + $0x140] sm:$0xff] }
  0x93   : > { %v815_v21 = vmul.f32 %v6373_v6, %v5675_v42  ;;  %v1146_v50 = vadd.f32 %v1114_v53, %v1045_v11  ;;  %v647_v46 = vadd.f32 %v615_v58, %v547_v55  ;;  %v448_v15 = vadd.f32 %v6263_v0, %v5875_v52  ;;  %v5486_v11 = vld [vmem:[#allocation2 + $0xe1] sm:$0xff] }
  0x94   : > { %v516_v61 = vmul.f32 %v6351_v4, %v5621_v17  ;;  %4992 = vmatprep.mubr.f32.mxu1 %v6402_v37  ;;  %v946_v47 = vadd.f32 %v914_v9, %v846_v5  ;;  %v1215_v19 = vmul.f32 %v5651_v30, %v5875_v52  ;;  %v915_v16 = vmul.f32 %v5639_v22, %v5872_v31 }
  0x95   : > { %v616_v35 = vmul.f32 %v5623_v18, %v5869_v38  ;;  %v1246_v53 = vadd.f32 %v1214_v12, %v1146_v50  ;;  %v747_v58 = vadd.f32 %v715_v54, %v647_v46  ;;  %v716_v4 = vmul.f32 %v1277_v23, %v5649_v27  ;;  %4907 = vmatmul.mubr.f32.gmra.mxu0 %v5486_v11  ;;  %v5487_v38 = vld [vmem:[#allocation2 + $0xf1] sm:$0xff]  ;;  %v6435_v50 = vld [vmem:[#allocation2 + $0x129] sm:$0xff] }
  0x96   : > { %v548_v20 = vadd.f32 %v516_v61, %v448_v15  ;;  %v1046_v9 = vadd.f32 %v1014_v41, %v946_v47  ;;  %v1315_v55 = vmul.f32 %v5717_v57, %v1279_v29  ;;  %v1015_v52 = vmul.f32 %v6387_v10, %v5682_v44  ;;  %4909 = vmatprep.mubr.f32.mxu0 %v5487_v38  ;;  %v6442_v15 = vld [vmem:[#allocation2 + $0x142] sm:$0xff]  ;;  %v6444_v61 = vld [vmem:[#allocation2 + $0x139] sm:$0xff] }
  0x97   : > { %v1116_v31 = vmul.f32 %v5684_v45, %v6419_v1  ;;  %v6427_v12 = vadd.f32 %v1314_v56, %v1246_v53  ;;  %v847_v54 = vadd.f32 %v815_v21, %v747_v58  ;;  %v816_v23 = vmul.f32 %v6399_v62, %v5675_v42  ;;  %v6450_v53 = vld [vmem:[#allocation2 + $0x150] sm:$0xff] }
  0x98   : > { %v648_v28 = vadd.f32 %v616_v35, %v548_v20  ;;  %v1147_v5 = vadd.f32 %v1115_v26, %v1046_v9  ;;  %v449_v41 = vadd.f32 %v6263_v0, %v5886_v59  ;;  %v517_v32 = vmul.f32 %v6373_v6, %v5621_v17  ;;  %v5490_v20 = vld [vmem:[#allocation2 + $0xf9] sm:$0xff]  ;;  %v5491_v38 = vld [vmem:[#allocation2 + $0x109] sm:$0xff] }
  0x99   : > { %v617_v46 = vmul.f32 %v6435_v50, %v5623_v18  ;;  %4993 = vmatmul.mubr.f32.gmra.mxu1 %v6427_v12  ;;  %v947_v56 = vadd.f32 %v915_v16, %v847_v54  ;;  %v1216_v21 = vmul.f32 %v5651_v30, %v5886_v59  ;;  %v916_v47 = vmul.f32 %v6444_v61, %v5639_v22 }
  0x9a   : > { %v748_v26 = vadd.f32 %v716_v4, %v648_v28  ;;  %v1247_v6 = vadd.f32 %v1215_v19, %v1147_v5  ;;  %v1316_v35 = vmul.f32 %v5717_v57, %v6442_v15  ;;  %v549_v58 = vadd.f32 %v517_v32, %v449_v41  ;;  %4910 = vmatmul.mubr.f32.gmra.mxu0 %v5490_v20  ;;  %v6461_v5 = vld [vmem:[#allocation2 + $0x151] sm:$0xff] }
  0x9b   : > { %v717_v16 = vmul.f32 %v6387_v10, %v5649_v27  ;;  %v1047_v59 = vadd.f32 %v1015_v52, %v947_v56  ;;  %v1016_v4 = vmul.f32 %v1279_v29, %v5682_v44  ;;  %v1117_v9 = vmul.f32 %v5684_v45, %v6450_v53  ;;  %4912 = vmatprep.mubr.f32.mxu0 %v5491_v38  ;;  %v6465_v41 = vld [vmem:[#allocation2 + $0x152] sm:$0xff] }
  0x9c   : > { %v848_v11 = vadd.f32 %v816_v23, %v748_v26  ;;  %v6457_v19 = vadd.f32 %v1315_v55, %v1247_v6  ;;  %v649_v54 = vadd.f32 %v617_v46, %v549_v58  ;;  %v817_v28 = vmul.f32 %v6419_v1, %v5675_v42  ;;  %v5493_v6 = vld [vmem:[#allocation2 + $0x141] sm:$0xff]  ;;  %v6477_v20 = vld [vmem:[#allocation2 + $0x158] sm:$0xff] }
  0x9d   : > { %v450_v10 = vadd.f32 %v6461_v5, %v6263_v0  ;;  %v1148_v52 = vadd.f32 %v1116_v31, %v1047_v59  ;;  %v518_v32 = vmul.f32 %v6399_v62, %v5621_v17  ;;  %v618_v55 = vmul.f32 %v6444_v61, %v5623_v18 }
  0x9e   : > { %v948_v23 = vadd.f32 %v916_v47, %v848_v11  ;;  %4995 = vmatprep.mubr.f32.mxu1 %v6457_v19  ;;  %v1217_v46 = vmul.f32 %v6461_v5, %v5651_v30  ;;  %v1317_v56 = vmul.f32 %v5717_v57, %v6465_v41  ;;  %v749_v26 = vadd.f32 %v717_v16, %v649_v54  ;;  %v5494_v11 = vld [vmem:[#allocation2 + $0x111] sm:$0xff]  ;;  %v5495_v54 = vld [vmem:[#allocation2 + $0x121] sm:$0xff] }
  0x9f   : > { %v917_v31 = vmul.f32 %v5493_v6, %v5639_v22  ;;  %v1248_v47 = vadd.f32 %v1216_v21, %v1148_v52  ;;  %v550_v62 = vadd.f32 %v518_v32, %v450_v10  ;;  %v718_v59 = vmul.f32 %v1279_v29, %v5649_v27  ;;  %4913 = vmatmul.mubr.f32.gmra.mxu0 %v5494_v11  ;;  %v6488_v52 = vld [vmem:[#allocation2 + $0x159] sm:$0xff] }
  0xa0   : > { %v1048_v58 = vadd.f32 %v1016_v4, %v948_v23  ;;  %v849_v38 = vadd.f32 %v817_v28, %v749_v26  ;;  %v1017_v33 = vmul.f32 %v6442_v15, %v5682_v44  ;;  %v1118_v13 = vmul.f32 %v5684_v45, %v6477_v20  ;;  %4915 = vmatprep.mubr.f32.mxu0 %v5495_v54  ;;  %v1282_v32 = vld [vmem:[#allocation2 + $0x15a] sm:$0xff] }
  0xa1   : > { %v818_v16 = vmul.f32 %v6450_v53, %v5675_v42  ;;  %v6486_v21 = vadd.f32 %v1316_v35, %v1248_v47  ;;  %v650_v10 = vadd.f32 %v618_v55, %v550_v62  ;;  %v451_v29 = vadd.f32 %v6488_v52, %v6263_v0  ;;  %v6503_v62 = vld [vmem:[#allocation2 + $0x168] sm:$0xff] }
  0xa2   : > { %v1149_v4 = vadd.f32 %v1117_v9, %v1048_v58  ;;  %v949_v28 = vadd.f32 %v917_v31, %v849_v38  ;;  %v1218_v23 = vmul.f32 %v6488_v52, %v5651_v30  ;;  %v519_v26 = vmul.f32 %v6419_v1, %v5621_v17 }
  0xa3   : > { %v619_v11 = vmul.f32 %v5493_v6, %v5623_v18  ;;  %4996 = vmatmul.mubr.f32.gmra.mxu1 %v6486_v21  ;;  %v1318_v9 = vmul.f32 %v5717_v57, %v1282_v32  ;;  %v750_v55 = vadd.f32 %v718_v59, %v650_v10  ;;  %v918_v47 = vmul.f32 %v6461_v5, %v5639_v22 }
  0xa4   : > { %v1249_v35 = vadd.f32 %v1217_v46, %v1149_v4  ;;  %v1049_v58 = vadd.f32 %v1017_v33, %v949_v28  ;;  %v1018_v31 = vmul.f32 %v6465_v41, %v5682_v44  ;;  %v551_v38 = vadd.f32 %v519_v26, %v451_v29  ;;  %4916 = vmatmul.mubr.f32.gmra.mxu0 %v6435_v50  ;;  %v5497_v28 = vld [vmem:[#allocation2 + $0x169] sm:$0xff] }
  0xa5   : > { %v719_v1 = vmul.f32 %v6442_v15, %v5649_v27  ;;  %v850_v46 = vadd.f32 %v818_v16, %v750_v55  ;;  %v1119_v59 = vmul.f32 %v5684_v45, %v6503_v62  ;;  %v819_v33 = vmul.f32 %v6477_v20, %v5675_v42  ;;  %4918 = vmatprep.mubr.f32.mxu0 %v6444_v61 }
  0xa6   : > { %v6508_v54 = vadd.f32 %v1317_v56, %v1249_v35  ;;  %v1150_v4 = vadd.f32 %v1118_v13, %v1049_v58  ;;  %v651_v10 = vadd.f32 %v619_v11, %v551_v38  ;;  %v452_v29 = vadd.f32 %v5497_v28, %v6263_v0  ;;  %v1283_v13 = vld [vmem:[#allocation2 + $0x16a] sm:$0xff] }
  0xa7   : > { %v520_v15 = vmul.f32 %v6450_v53, %v5621_v17  ;;  %v950_v50 = vadd.f32 %v918_v47, %v850_v46  ;;  %v1219_v56 = vmul.f32 %v5497_v28, %v5651_v30  ;;  %v919_v16 = vmul.f32 %v6488_v52, %v5639_v22  ;;  %v6524_v35 = vld [vmem:[#allocation2 + $0x170] sm:$0xff] }
  0xa8   : > { %4998 = vmatprep.mubr.f32.mxu1 %v6508_v54  ;;  %v620_v26 = vmul.f32 %v6461_v5, %v5623_v18  ;;  %v1250_v61 = vadd.f32 %v1218_v23, %v1150_v4  ;;  %v751_v11 = vadd.f32 %v719_v1, %v651_v10  ;;  %v720_v53 = vmul.f32 %v6465_v41, %v5649_v27  ;;  %v5498_v41 = vld [vmem:[#allocation2 + $0x171] sm:$0xff] }
  0xa9   : > { %v552_v55 = vadd.f32 %v520_v15, %v452_v29  ;;  %4919 = vmatmul.mubr.f32.gmra.mxu0 %v5493_v6  ;;  %v1050_v58 = vadd.f32 %v1018_v31, %v950_v50  ;;  %v1319_v47 = vmul.f32 %v5717_v57, %v1283_v13  ;;  %v1019_v38 = vmul.f32 %v1282_v32, %v5682_v44 }
  0xaa   : > { %v1120_v46 = vmul.f32 %v5684_v45, %v6524_v35  ;;  %4921 = vmatprep.mubr.f32.mxu0 %v6461_v5  ;;  %v6533_v23 = vadd.f32 %v1318_v9, %v1250_v61  ;;  %v851_v1 = vadd.f32 %v819_v33, %v751_v11  ;;  %v820_v10 = vmul.f32 %v6503_v62, %v5675_v42  ;;  %v1284_v33 = vld [vmem:[#allocation2 + $0x172] sm:$0xff]  ;;  %v1085_v11 = vld [vmem:[#allocation2 + $0x180] sm:$0xff] }
  0xab   : > { %v652_v4 = vadd.f32 %v620_v26, %v552_v55  ;;  %v1151_v29 = vadd.f32 %v1119_v59, %v1050_v58  ;;  %v453_v6 = vadd.f32 %v5498_v41, %v6263_v0  ;;  %v521_v31 = vmul.f32 %v6477_v20, %v5621_v17 }
  0xac   : > { %v621_v15 = vmul.f32 %v6488_v52, %v5623_v18  ;;  %4999 = vmatmul.mubr.f32.gmra.mxu1 %v6533_v23  ;;  %v951_v5 = vadd.f32 %v919_v16, %v851_v1  ;;  %v1220_v9 = vmul.f32 %v5498_v41, %v5651_v30  ;;  %v920_v26 = vmul.f32 %v5497_v28, %v5639_v22 }
  0xad   : > { %v752_v50 = vadd.f32 %v720_v53, %v652_v4  ;;  %v1251_v61 = vadd.f32 %v1219_v56, %v1151_v29  ;;  %v1320_v59 = vmul.f32 %v5717_v57, %v1284_v33  ;;  %v553_v55 = vadd.f32 %v521_v31, %v453_v6  ;;  %4922 = vmatmul.mubr.f32.gmra.mxu0 %v6488_v52  ;;  %v5499_v4 = vld [vmem:[#allocation2 + $0x181] sm:$0xff] }
  0xae   : > { %v721_v58 = vmul.f32 %v1282_v32, %v5649_v27  ;;  %v1051_v20 = vadd.f32 %v1019_v38, %v951_v5  ;;  %v1020_v14 = vmul.f32 %v1283_v13, %v5682_v44  ;;  %v1121_v16 = vmul.f32 %v5684_v45, %v1085_v11  ;;  %4924 = vmatprep.mubr.f32.mxu0 %v5497_v28 }
  0xaf   : > { %v852_v48 = vadd.f32 %v820_v10, %v752_v50  ;;  %v6550_v1 = vadd.f32 %v1319_v47, %v1251_v61  ;;  %v653_v53 = vadd.f32 %v621_v15, %v553_v55  ;;  %v821_v56 = vmul.f32 %v6524_v35, %v5675_v42  ;;  %v1285_v50 = vld [vmem:[#allocation2 + $0x182] sm:$0xff] }
  0xb0   : > { %v454_v29 = vadd.f32 %v5499_v4, %v6263_v0  ;;  %v1152_v6 = vadd.f32 %v1120_v46, %v1051_v20  ;;  %v522_v52 = vmul.f32 %v6503_v62, %v5621_v17  ;;  %v622_v38 = vmul.f32 %v5497_v28, %v5623_v18  ;;  %v1086_v20 = vld [vmem:[#allocation2 + $0x188] sm:$0xff] }
  0xb1   : > { %v952_v32 = vadd.f32 %v920_v26, %v852_v48  ;;  %5001 = vmatprep.mubr.f32.mxu1 %v6550_v1  ;;  %v1221_v10 = vmul.f32 %v5499_v4, %v5651_v30  ;;  %v753_v47 = vadd.f32 %v721_v58, %v653_v53  ;;  %v921_v31 = vmul.f32 %v5498_v41, %v5639_v22 }
  0xb2   : > { %v1252_v15 = vadd.f32 %v1220_v9, %v1152_v6  ;;  %v554_v61 = vadd.f32 %v522_v52, %v454_v29  ;;  %v722_v55 = vmul.f32 %v1283_v13, %v5649_v27  ;;  %4925 = vmatmul.mubr.f32.gmra.mxu0 %v5498_v41  ;;  %v1321_v48 = vmul.f32 %v5717_v57, %v1285_v50  ;;  %v5500_v9 = vld [vmem:[#allocation2 + $0x189] sm:$0xff] }
  0xb3   : > { %v1052_v5 = vadd.f32 %v1020_v14, %v952_v32  ;;  %v853_v46 = vadd.f32 %v821_v56, %v753_v47  ;;  %v1021_v62 = vmul.f32 %v1284_v33, %v5682_v44  ;;  %v822_v28 = vmul.f32 %v1085_v11, %v5675_v42  ;;  %4927 = vmatprep.mubr.f32.mxu0 %v5499_v4 }
  0xb4   : > { %v6565_v26 = vadd.f32 %v1320_v59, %v1252_v15  ;;  %v654_v53 = vadd.f32 %v622_v38, %v554_v61  ;;  %v455_v14 = vadd.f32 %v5500_v9, %v6263_v0  ;;  %v1122_v13 = vmul.f32 %v5684_v45, %v1086_v20  ;;  %v1087_v38 = vld [vmem:[#allocation2 + $0x198] sm:$0xff]  ;;  %v1286_v15 = vld [vmem:[#allocation2 + $0x18a] sm:$0xff] }
  0xb5   : > { %v1153_v58 = vadd.f32 %v1121_v16, %v1052_v5  ;;  %v953_v29 = vadd.f32 %v921_v31, %v853_v46  ;;  %v523_v6 = vmul.f32 %v6524_v35, %v5621_v17  ;;  %v623_v56 = vmul.f32 %v5498_v41, %v5623_v18  ;;  %v1187_v41 = vld [vmem:[#allocation2 + $0x199] sm:$0xff] }
  0xb6   : > { %5002 = vmatmul.mubr.f32.gmra.mxu1 %v6565_v26  ;;  %v754_v32 = vadd.f32 %v722_v55, %v654_v53  ;;  %v922_v59 = vmul.f32 %v5499_v4, %v5639_v22  ;;  %v1222_v52 = vmul.f32 %v5500_v9, %v5651_v30  ;;  %v723_v0 = vmul.f32 %v1284_v33, %v5649_v27 }
  0xb7   : > { %v1253_v11 = vadd.f32 %v1221_v10, %v1153_v58  ;;  %v1053_v16 = vadd.f32 %v1021_v62, %v953_v29  ;;  %v555_v47 = vadd.f32 %v523_v6, %v455_v14  ;;  %4928 = vmatmul.mubr.f32.gmra.mxu0 %v5500_v9  ;;  %v1022_v17 = vmul.f32 %v1285_v50, %v5682_v44  ;;  %v1287_v62 = vld [vmem:[#allocation2 + $0x19a] sm:$0xff] }
  0xb8   : > { %v854_v5 = vadd.f32 %v822_v28, %v754_v32  ;;  %v1322_v35 = vmul.f32 %v5717_v57, %v1286_v15  ;;  %v823_v4 = vmul.f32 %v1086_v20, %v5675_v42  ;;  %v1123_v55 = vmul.f32 %v5684_v45, %v1087_v38  ;;  %v1188_v42 = vld [vmem:[#allocation2 + $0x1a1] sm:$0xff] }
  0xb9   : > { %v1353_v31 = vadd.f32 %v1321_v48, %v1253_v11  ;;  %v1154_v18 = vadd.f32 %v1122_v13, %v1053_v16  ;;  %v655_v10 = vadd.f32 %v623_v56, %v555_v47  ;;  %v923_v33 = vmul.f32 %v5500_v9, %v5639_v22  ;;  %v5501_v13 = vld [vmem:[#allocation2 + $0x8] sm:$0xff] }
  0xba   : > { %v954_v61 = vadd.f32 %v922_v59, %v854_v5  ;;  %v1223_v28 = vmul.f32 %v5651_v30, %v1187_v41  ;;  %v1023_v53 = vmul.f32 %v1286_v15, %v5682_v44  ;;  %v1323_v29 = vmul.f32 %v5717_v57, %v1287_v62  ;;  %v1288_v11 = vld [vmem:[#allocation2 + $0x1a2] sm:$0xff] }
  0xbb   : > { %5004 = vmatprep.mubr.f32.mxu1 %v1353_v31  ;;  %v1254_v46 = vadd.f32 %v1222_v52, %v1154_v18  ;;  %v755_v27 = vadd.f32 %v723_v0, %v655_v10  ;;  %v1124_v6 = vmul.f32 %v5501_v13, %v5684_v45  ;;  %v1224_v22 = vmul.f32 %v5651_v30, %v1188_v42  ;;  %v8598_v30 = vld [vmem:[#allocation7_spill] sm:$0xff]  ;;  %v8599_v45 = vld [vmem:[#allocation4_spill] sm:$0xff] }
  0xbc   : > { %v1054_v48 = vadd.f32 %v1022_v17, %v954_v61  ;;  %v1324_v16 = vmul.f32 %v5717_v57, %v1288_v11  ;;  %v8600_v57 = vld [vmem:[#allocation6_spill] sm:$0xff] }
  0xbd   : > { %v1354_v50 = vadd.f32 %v1322_v35, %v1254_v46  ;;  %v855_v58 = vadd.f32 %v823_v4, %v755_v27 }
  0xbe   : > { %v1155_v14 = vadd.f32 %v1123_v55, %v1054_v48 }
  0xbf   : > { %5005 = vmatmul.mubr.f32.gmra.mxu1 %v1354_v50  ;;  %v955_v20 = vadd.f32 %v923_v33, %v855_v58 }
  0xc0   : > { %v1255_v56 = vadd.f32 %v1223_v28, %v1155_v14 }
  0xc1   : > { %v1055_v32 = vadd.f32 %v1023_v53, %v955_v20 }
  0xc2   : > { %v1355_v9 = vadd.f32 %v1323_v29, %v1255_v56 }
  0xc3   : > { %v1156_v59 = vadd.f32 %v1124_v6, %v1055_v32 }
  0xc4   : > { %5007 = vmatprep.mubr.f32.mxu1 %v1355_v9 }
  0xc5   : > { %v1256_v44 = vadd.f32 %v1224_v22, %v1156_v59 }
  0xc7   : > { %v1356_v52 = vadd.f32 %v1324_v16, %v1256_v44 }
  0xc9   : > { %5008 = vmatmul.mubr.f32.gmra.mxu1 %v1356_v52  ;;  %4594 = vmatprep.subr.mxu0 %v1356_v52 }
  0xca   : > { %4595 = vmatpush3.xpose.msra.mxu0 %v6290_v49 }
  0xcb   : > { %4596 = vmatprep.subr.mxu0 %v1355_v9 }
  0xce   : > { %4597 = vmatpush3.xpose.msra.mxu0 %v6256_v40 }
  0xcf   : > { %4598 = vmatprep.subr.mxu0 %v1354_v50 }
  0xd2   : > { %4599 = vmatpush3.xpose.msra.mxu0 %v6229_v60 }
  0xd3   : > { %4600 = vmatprep.subr.mxu0 %v1353_v31 }
  0xd6   : > { %4601 = vmatpush3.xpose.msra.mxu0 %v6200_v7 }
  0xd7   : > { %4602 = vmatprep.subr.mxu0 %v6565_v26 }
  0xda   : > { %4603 = vmatpush3.xpose.msra.mxu0 %v6171_v3  ;;  %v8601_v3 = vld [vmem:[#allocation3_spill] sm:$0xff] }
  0xdb   : > { %4604 = vmatprep.subr.mxu0 %v6550_v1 }
  0xde   : > { %4605 = vmatpush3.xpose.msra.mxu0 %v6137_v43 }
  0xdf   : > { %4606 = vmatprep.subr.mxu0 %v6533_v23 }
  0xe2   : > { %4607 = vmatpush3.xpose.msra.mxu0 %v6105_v34 }
  0xe3   : > { %4608 = vmatprep.subr.mxu0 %v6508_v54 }
  0xe6   : > { %4609 = vmatpush3.xpose.msra.mxu0 %v6073_v24 }
  0xe7   : > { %4610 = vmatprep.subr.mxu0 %v6486_v21 }
  0xea   : > { %4611 = vmatpush3.xpose.msra.mxu0 %v6047_v51 }
  0xeb   : > { %4612 = vmatprep.subr.mxu0 %v6457_v19 }
  0xee   : > { %4613 = vmatpush3.xpose.msra.mxu0 %v6012_v25  ;;  %v8602_v25 = vld [vmem:[#allocation5_spill] sm:$0xff] }
  0xef   : > { %4614 = vmatprep.subr.mxu0 %v6427_v12  ;;  %v6636_v12 = vld [vmem:[%s8434_s4] ss:$0 sm:$0xff] }
  0xf2   : > { %4615 = vmatpush3.xpose.msra.mxu0 %v5981_v39 }
  0xf3   : > { %4616 = vmatprep.subr.mxu0 %v6402_v37 }
  0xf6   : > { %4617 = vmatpush3.xpose.msra.mxu0 %v5944_v36 }
  0xf7   : > { %4618 = vmatprep.subr.mxu0 %v6381_v63 }
  0xfa   : > { %4619 = vmatpush3.xpose.msra.mxu0 %v5928_v8 }
  0xfb   : > { %4620 = vmatprep.subr.mxu0 %v6357_v2 }
  0xfc   : > { %v6615_v39 = vpop.f32.mrf.mxu1 }
  0xfe   : > { %4621 = vmatpush3.xpose.msra.mxu0 %v8598_v30  ;;  %v6617_v51 = vpop.f32.mrf.mxu1 }
  0xff   : > { %4622 = vmatprep.subr.mxu0 %v8599_v45 }
 0x102   : > { %4623 = vmatpush3.xpose.msra.mxu0 %v8600_v57 }
 0x103   : > { %4624 = vmatprep.subr.mxu0 %v8601_v3  ;;  %v6619_v36 = vpop.f32.mrf.mxu1 }
 0x105   : > { %v6621_v24 = vpop.f32.mrf.mxu1 }
 0x106   : > { %4625 = vmatpush3.xpose.msra.mxu0 %v8602_v25 }
 0x10d   : > { %v6623_v8 = vpop.f32.mrf.mxu1 }
 0x10f   : > { %v6625_v34 = vpop.f32.mrf.mxu1 }
 0x116   : > { %v6627_v43 = vpop.f32.mrf.mxu1 }
 0x118   : > { %v6629_v7 = vpop.f32.mrf.mxu1 }
 0x120   : > { %v4976_v60 = vpop.f32.mrf.mxu1 }
 0x122   : > { %v1727_v40 = vpop.f32.mrf.mxu1 }
 0x12a   : > { %v4979_v49 = vpop.f32.mrf.mxu1 }
 0x12c   : > { %v1737_v2 = vpop.f32.mrf.mxu1 }
 0x130   : > { %v6631_v37 = vpop.f32.mrf.mxu0 }
 0x131   : > { %v1452_v20 = vadd.f32 %v6631_v37, %v6636_v12 }
 0x132   : > { %v1446_v19 = vpop.f32.mrf.mxu0 }
 0x133   : > { %v4982_v63 = vpop.f32.mrf.mxu1  ;;  %v6639_v54 = vadd.f32 %v6636_v12, %v1446_v19 }
 0x134   : > { %v4887_v62 = vpop.f32.mrf.mxu0 }
 0x135   : > { %v1747_v21 = vpop.f32.mrf.mxu1  ;;  %4690 = vmatprep.mubr.msk.f32.mxu1 %vm2119_vm0, %v6639_v54  ;;  %v1462_v56 = vadd.f32 %v4887_v62, %v6636_v12 }
 0x136   : > { %v1456_v27 = vpop.f32.mrf.mxu0 }
 0x137   : > { %v1457_v13 = vadd.f32 %v6636_v12, %v1456_v27 }
 0x139   : > { %v4890_v33 = vpop.f32.mrf.mxu0 }
 0x13a   : > { %v1472_v22 = vadd.f32 %v4890_v33, %v6636_v12 }
 0x13b   : > { %v1466_v48 = vpop.f32.mrf.mxu0 }
 0x13c   : > { %v1467_v32 = vadd.f32 %v6636_v12, %v1466_v48 }
 0x13d   : > { %v4985_v23 = vpop.f32.mrf.mxu1 }
 0x13e   : > { %v4893_v28 = vpop.f32.mrf.mxu0 }
 0x13f   : > { %v1757_v1 = vpop.f32.mrf.mxu1  ;;  %v1482_v44 = vadd.f32 %v4893_v28, %v6636_v12 }
 0x140   : > { %v1476_v50 = vpop.f32.mrf.mxu0 }
 0x141   : > { %v1477_v59 = vadd.f32 %v6636_v12, %v1476_v50 }
 0x142   : > { %v4896_v58 = vpop.f32.mrf.mxu0 }
 0x143   : > { %v1492_v45 = vadd.f32 %v4896_v58, %v6636_v12 }
 0x144   : > { %v1486_v53 = vpop.f32.mrf.mxu0 }
 0x145   : > { %v1487_v52 = vadd.f32 %v6636_v12, %v1486_v53 }
 0x146   : > { %v6643_v26 = vpop.f32.mrf.mxu1 }
 0x147   : > { %v4899_v14 = vpop.f32.mrf.mxu0 }
 0x148   : > { %v6645_v38 = vpop.f32.mrf.mxu1  ;;  %v1502_v25 = vadd.f32 %v4899_v14, %v6636_v12 }
 0x149   : > { %v1496_v29 = vpop.f32.mrf.mxu0 }
 0x14a   : > { %v1497_v3 = vadd.f32 %v6636_v12, %v1496_v29 }
 0x14c   : > { %v4902_v42 = vpop.f32.mrf.mxu0 }
 0x14e   : > { %v1506_v6 = vpop.f32.mrf.mxu0 }
 0x150   : > { %v6647_v47 = vpop.f32.mrf.mxu1 }
 0x151   : > { %v4905_v11 = vpop.f32.mrf.mxu0 }
 0x152   : > { %v6649_v0 = vpop.f32.mrf.mxu1 }
 0x153   : > { %v1516_v9 = vpop.f32.mrf.mxu0 }
 0x155   : > { %v4908_v16 = vpop.f32.mrf.mxu0 }
 0x157   : > { %v1526_v30 = vpop.f32.mrf.mxu0 }
 0x159   : > { %v4994_v31 = vpop.f32.mrf.mxu1 }
 0x15a   : > { %v4911_v57 = vpop.f32.mrf.mxu0 }
 0x15b   : > { %v1787_v15 = vpop.f32.mrf.mxu1  ;;  %v6809_v37 = vadd.f32 %v4911_v57, %v6636_v12 }
 0x163   : > { %v4997_v5 = vpop.f32.mrf.mxu1 }
 0x165   : > { %v1797_v17 = vpop.f32.mrf.mxu1 }
 0x16c   : > { %v5000_v18 = vpop.f32.mrf.mxu1 }
 0x16e   : > { %v1807_v35 = vpop.f32.mrf.mxu1 }
 0x176   : > { %v5003_v41 = vpop.f32.mrf.mxu1 }
 0x178   : > { %v1817_v10 = vpop.f32.mrf.mxu1 }
 0x17f   : > { %v5006_v4 = vpop.f32.mrf.mxu1 }
 0x181   : > { %v1827_v61 = vpop.f32.mrf.mxu1 }
 0x189   : > { %v5009_v55 = vpop.f32.mrf.mxu1 }
 0x18a   : > { %3304 = vrot.lane.b32.xlu0 %v5009_v55, %s5511_s12  ;;  %4658 = vmatprep.subr.msk.mxu1 %vm2119_vm0, %v5009_v55 }
 0x18b   : > { %v1837_v46 = vpop.f32.mrf.mxu1  ;;  %4659 = vmatpush3.xpose.msk.msra.mxu1 %vm2119_vm0, %v4985_v23 }
 0x18c   : > { %3302 = vrot.lane.b32.xlu1 %v1837_v46, %s5511_s12  ;;  %4660 = vmatprep.subr.msk.mxu1 %vm2119_vm0, %v1837_v46 }
 0x18e   : > { %3272 = vrot.lane.b32.xlu0 %v4985_v23, %s5511_s12 }
 0x18f   : > { %4661 = vmatpush3.xpose.msk.msra.mxu1 %vm2119_vm0, %v1757_v1 }
 0x190   : > { %3270 = vrot.lane.b32.xlu1 %v1757_v1, %s5511_s12  ;;  %4662 = vmatprep.subr.msk.mxu1 %vm2119_vm0, %v5006_v4 }
 0x192   : > { %3300 = vrot.lane.b32.xlu0 %v5006_v4, %s5511_s12 }
 0x193   : > { %4663 = vmatpush3.xpose.msk.msra.mxu1 %vm2119_vm0, %v4982_v63 }
 0x194   : > { %3268 = vrot.lane.b32.xlu1 %v4982_v63, %s5511_s12  ;;  %4664 = vmatprep.subr.msk.mxu1 %vm2119_vm0, %v1827_v61 }
 0x196   : > { %3298 = vrot.lane.b32.xlu0 %v1827_v61, %s5511_s12 }
 0x197   : > { %4665 = vmatpush3.xpose.msk.msra.mxu1 %vm2119_vm0, %v1747_v21 }
 0x198   : > { %3266 = vrot.lane.b32.xlu1 %v1747_v21, %s5511_s12  ;;  %4666 = vmatprep.subr.msk.mxu1 %vm2119_vm0, %v5003_v41 }
 0x19a   : > { %3296 = vrot.lane.b32.xlu0 %v5003_v41, %s5511_s12 }
 0x19b   : > { %4667 = vmatpush3.xpose.msk.msra.mxu1 %vm2119_vm0, %v4979_v49 }
 0x19c   : > { %3264 = vrot.lane.b32.xlu1 %v4979_v49, %s5511_s12  ;;  %4668 = vmatprep.subr.msk.mxu1 %vm2119_vm0, %v1817_v10 }
 0x19e   : > { %3294 = vrot.lane.b32.xlu0 %v1817_v10, %s5511_s12 }
 0x19f   : > { %4669 = vmatpush3.xpose.msk.msra.mxu1 %vm2119_vm0, %v1737_v2 }
 0x1a0   : > { %3262 = vrot.lane.b32.xlu1 %v1737_v2, %s5511_s12  ;;  %4670 = vmatprep.subr.msk.mxu1 %vm2119_vm0, %v5000_v18 }
 0x1a2   : > { %3292 = vrot.lane.b32.xlu0 %v5000_v18, %s5511_s12 }
 0x1a3   : > { %4671 = vmatpush3.xpose.msk.msra.mxu1 %vm2119_vm0, %v4976_v60 }
 0x1a4   : > { %3260 = vrot.lane.b32.xlu1 %v4976_v60, %s5511_s12  ;;  %4672 = vmatprep.subr.msk.mxu1 %vm2119_vm0, %v1807_v35  ;;  %v6791_v60 = vadd.f32 %v6636_v12, %v1526_v30 }
 0x1a6   : > { %3290 = vrot.lane.b32.xlu0 %v1807_v35, %s5511_s12 }
 0x1a7   : > { %4673 = vmatpush3.xpose.msk.msra.mxu1 %vm2119_vm0, %v1727_v40 }
 0x1a8   : > { %3258 = vrot.lane.b32.xlu1 %v1727_v40, %s5511_s12  ;;  %4674 = vmatprep.subr.msk.mxu1 %vm2119_vm0, %v4997_v5  ;;  %v6797_v40 = vadd.f32 %v4908_v16, %v6636_v12 }
 0x1aa   : > { %3288 = vrot.lane.b32.xlu0 %v4997_v5, %s5511_s12 }
 0x1ab   : > { %4675 = vmatpush3.xpose.msk.msra.mxu1 %vm2119_vm0, %v6627_v43 }
 0x1ac   : > { %3256 = vrot.lane.b32.xlu1 %v6627_v43, %s5511_s12  ;;  %4676 = vmatprep.subr.msk.mxu1 %vm2119_vm0, %v1797_v17  ;;  %v6786_v43 = vadd.f32 %v4905_v11, %v6636_v12 }
 0x1ae   : > { %3286 = vrot.lane.b32.xlu0 %v1797_v17, %s5511_s12 }
 0x1af   : > { %4677 = vmatpush3.xpose.msk.msra.mxu1 %vm2119_vm0, %v6629_v7 }
 0x1b0   : > { %3254 = vrot.lane.b32.xlu1 %v6629_v7, %s5511_s12  ;;  %4678 = vmatprep.subr.msk.mxu1 %vm2119_vm0, %v4994_v31 }
 0x1b2   : > { %3284 = vrot.lane.b32.xlu0 %v4994_v31, %s5511_s12 }
 0x1b3   : > { %4679 = vmatpush3.xpose.msk.msra.mxu1 %vm2119_vm0, %v6623_v8 }
 0x1b4   : > { %3252 = vrot.lane.b32.xlu1 %v6623_v8, %s5511_s12  ;;  %4680 = vmatprep.subr.msk.mxu1 %vm2119_vm0, %v1787_v15  ;;  %v6781_v8 = vadd.f32 %v6636_v12, %v1516_v9 }
 0x1b6   : > { %3282 = vrot.lane.b32.xlu0 %v1787_v15, %s5511_s12 }
 0x1b7   : > { %4681 = vmatpush3.xpose.msk.msra.mxu1 %vm2119_vm0, %v6625_v34 }
 0x1b8   : > { %3250 = vrot.lane.b32.xlu1 %v6625_v34, %s5511_s12  ;;  %4682 = vmatprep.subr.msk.mxu1 %vm2119_vm0, %v6647_v47 }
 0x1ba   : > { %3280 = vrot.lane.b32.xlu0 %v6647_v47, %s5511_s12 }
 0x1bb   : > { %4683 = vmatpush3.xpose.msk.msra.mxu1 %vm2119_vm0, %v6619_v36 }
 0x1bc   : > { %3248 = vrot.lane.b32.xlu1 %v6619_v36, %s5511_s12  ;;  %4684 = vmatprep.subr.msk.mxu1 %vm2119_vm0, %v6649_v0 }
 0x1be   : > { %3278 = vrot.lane.b32.xlu0 %v6649_v0, %s5511_s12 }
 0x1bf   : > { %4685 = vmatpush3.xpose.msk.msra.mxu1 %vm2119_vm0, %v6621_v24 }
 0x1c0   : > { %3246 = vrot.lane.b32.xlu1 %v6621_v24, %s5511_s12  ;;  %4686 = vmatprep.subr.msk.mxu1 %vm2119_vm0, %v6643_v26  ;;  %v1512_v24 = vadd.f32 %v4902_v42, %v6636_v12 }
 0x1c2   : > { %3276 = vrot.lane.b32.xlu0 %v6643_v26, %s5511_s12 }
 0x1c3   : > { %4687 = vmatpush3.xpose.msk.msra.mxu1 %vm2119_vm0, %v6615_v39 }
 0x1c4   : > { %3244 = vrot.lane.b32.xlu1 %v6615_v39, %s5511_s12  ;;  %4688 = vmatprep.subr.msk.mxu1 %vm2119_vm0, %v6645_v38  ;;  %v1536_v39 = vpop.f32.mrf.mxu0 }
 0x1c5   : > { %v6803_v2 = vadd.f32 %v6636_v12, %v1536_v39 }
 0x1c6   : > { %3274 = vrot.lane.b32.xlu0 %v6645_v38, %s5511_s12  ;;  %v4914_v36 = vpop.f32.mrf.mxu0 }
 0x1c7   : > { %4689 = vmatpush3.xpose.msk.msra.mxu1 %vm2119_vm0, %v6617_v51 }
 0x1c8   : > { %3242 = vrot.lane.b32.xlu1 %v6617_v51, %s5511_s12  ;;  %v1507_v51 = vadd.f32 %v6636_v12, %v1506_v6  ;;  %v1546_v34 = vpop.f32.mrf.mxu0 }
 0x1c9   : > { %v6815_v19 = vadd.f32 %v6636_v12, %v1546_v34 }
 0x1ca   : > { %4691 = vmatmul.mubr.msk.f32.vlgmr.msra.gmra.mxu1 %vm2119_vm0, %v6639_v54  ;;  %3178 = vrot.lane.b32.xlu0 %v6639_v54, %s5511_s12  ;;  %v4917_v7 = vpop.f32.mrf.mxu0  ;;  %v6821_v54 = vadd.f32 %v4914_v36, %v6636_v12 }
 0x1cb   : > { %4692 = vmatprep.mubr.msk.f32.mxu1 %vm2119_vm0, %v1452_v20  ;;  %v6833_v26 = vadd.f32 %v4917_v7, %v6636_v12 }
 0x1cc   : > { %3180 = vrot.lane.b32.xlu1 %v1452_v20, %s5511_s12  ;;  %v1556_v49 = vpop.f32.mrf.mxu0 }
 0x1cd   : > { %v6827_v1 = vadd.f32 %v6636_v12, %v1556_v49 }
 0x1ce   : > { %4693 = vmatmul.mubr.msk.f32.gmra.mxu1 %vm2119_vm0, %v1452_v20  ;;  %3182 = vrot.lane.b32.xlu0 %v1457_v13, %s5511_s12  ;;  %v4920_v63 = vpop.f32.mrf.mxu0 }
 0x1cf   : > { %4694 = vmatprep.mubr.msk.f32.mxu1 %vm2119_vm0, %v1457_v13  ;;  %v6845_v31 = vadd.f32 %v4920_v63, %v6636_v12 }
 0x1d0   : > { %3184 = vrot.lane.b32.xlu1 %v1462_v56, %s5511_s12  ;;  %v1566_v21 = vpop.f32.mrf.mxu0 }
 0x1d1   : > { %v6839_v47 = vadd.f32 %v6636_v12, %v1566_v21 }
 0x1d2   : > { %4695 = vmatmul.mubr.msk.f32.gmra.mxu1 %vm2119_vm0, %v1457_v13  ;;  %3186 = vrot.lane.b32.xlu0 %v1467_v32, %s5511_s12  ;;  %v4923_v23 = vpop.f32.mrf.mxu0 }
 0x1d3   : > { %4696 = vmatprep.mubr.msk.f32.mxu1 %vm2119_vm0, %v1462_v56  ;;  %v6857_v18 = vadd.f32 %v4923_v23, %v6636_v12 }
 0x1d4   : > { %3188 = vrot.lane.b32.xlu1 %v1472_v22, %s5511_s12  ;;  %v1576_v38 = vpop.f32.mrf.mxu0 }
 0x1d5   : > { %v6851_v15 = vadd.f32 %v6636_v12, %v1576_v38 }
 0x1d6   : > { %4697 = vmatmul.mubr.msk.f32.gmra.mxu1 %vm2119_vm0, %v1462_v56  ;;  %3190 = vrot.lane.b32.xlu0 %v1477_v59, %s5511_s12  ;;  %v4926_v0 = vpop.f32.mrf.mxu0 }
 0x1d7   : > { %4698 = vmatprep.mubr.msk.f32.mxu1 %vm2119_vm0, %v1467_v32  ;;  %v6871_v61 = vadd.f32 %v4926_v0, %v6636_v12 }
 0x1d8   : > { %3192 = vrot.lane.b32.xlu1 %v1482_v44, %s5511_s12  ;;  %v1586_v5 = vpop.f32.mrf.mxu0 }
 0x1d9   : > { %v6868_v10 = vadd.f32 %v6636_v12, %v1586_v5 }
 0x1da   : > { %4699 = vmatmul.mubr.msk.f32.gmra.mxu1 %vm2119_vm0, %v1467_v32  ;;  %3194 = vrot.lane.b32.xlu0 %v1487_v52, %s5511_s12  ;;  %v4929_v35 = vpop.f32.mrf.mxu0 }
 0x1db   : > { %4700 = vmatprep.mubr.msk.f32.mxu1 %vm2119_vm0, %v1472_v22  ;;  %v6887_v33 = vadd.f32 %v4929_v35, %v6636_v12 }
 0x1dc   : > { %3196 = vrot.lane.b32.xlu1 %v1492_v45, %s5511_s12  ;;  %v1596_v55 = vpop.f32.mrf.mxu0 }
 0x1dd   : > { %v6882_v62 = vadd.f32 %v6636_v12, %v1596_v55 }
 0x1de   : > { %4701 = vmatmul.mubr.msk.f32.gmra.mxu1 %vm2119_vm0, %v1472_v22  ;;  %3198 = vrot.lane.b32.xlu0 %v1497_v3, %s5511_s12 }
 0x1df   : > { %4702 = vmatprep.mubr.msk.f32.mxu1 %vm2119_vm0, %v1477_v59 }
 0x1e0   : > { %3200 = vrot.lane.b32.xlu1 %v1502_v25, %s5511_s12 }
 0x1e2   : > { %4703 = vmatmul.mubr.msk.f32.gmra.mxu1 %vm2119_vm0, %v1477_v59  ;;  %3202 = vrot.lane.b32.xlu0 %v1507_v51, %s5511_s12 }
 0x1e3   : > { %4704 = vmatprep.mubr.msk.f32.mxu1 %vm2119_vm0, %v1482_v44 }
 0x1e4   : > { %3204 = vrot.lane.b32.xlu1 %v1512_v24, %s5511_s12 }
 0x1e6   : > { %4705 = vmatmul.mubr.msk.f32.gmra.mxu1 %vm2119_vm0, %v1482_v44  ;;  %3206 = vrot.lane.b32.xlu0 %v6781_v8, %s5511_s12 }
 0x1e7   : > { %4706 = vmatprep.mubr.msk.f32.mxu1 %vm2119_vm0, %v1487_v52 }
 0x1e8   : > { %3208 = vrot.lane.b32.xlu1 %v6786_v43, %s5511_s12 }
 0x1ea   : > { %4707 = vmatmul.mubr.msk.f32.gmra.mxu1 %vm2119_vm0, %v1487_v52  ;;  %3210 = vrot.lane.b32.xlu0 %v6791_v60, %s5511_s12 }
 0x1eb   : > { %4708 = vmatprep.mubr.msk.f32.mxu1 %vm2119_vm0, %v1492_v45 }
 0x1ec   : > { %3212 = vrot.lane.b32.xlu1 %v6797_v40, %s5511_s12 }
 0x1ee   : > { %4709 = vmatmul.mubr.msk.f32.gmra.mxu1 %vm2119_vm0, %v1492_v45  ;;  %3214 = vrot.lane.b32.xlu0 %v6803_v2, %s5511_s12 }
 0x1ef   : > { %4710 = vmatprep.mubr.msk.f32.mxu1 %vm2119_vm0, %v1497_v3 }
 0x1f0   : > { %3216 = vrot.lane.b32.xlu1 %v6809_v37, %s5511_s12 }
 0x1f2   : > { %4711 = vmatmul.mubr.msk.f32.gmra.mxu1 %vm2119_vm0, %v1497_v3  ;;  %3218 = vrot.lane.b32.xlu0 %v6815_v19, %s5511_s12 }
 0x1f3   : > { %4712 = vmatprep.mubr.msk.f32.mxu1 %vm2119_vm0, %v1502_v25 }
 0x1f4   : > { %3220 = vrot.lane.b32.xlu1 %v6821_v54, %s5511_s12 }
 0x1f6   : > { %4713 = vmatmul.mubr.msk.f32.gmra.mxu1 %vm2119_vm0, %v1502_v25  ;;  %3222 = vrot.lane.b32.xlu0 %v6827_v1, %s5511_s12 }
 0x1f7   : > { %4714 = vmatprep.mubr.msk.f32.mxu1 %vm2119_vm0, %v1507_v51 }
 0x1f8   : > { %3224 = vrot.lane.b32.xlu1 %v6833_v26, %s5511_s12 }
 0x1fa   : > { %4715 = vmatmul.mubr.msk.f32.gmra.mxu1 %vm2119_vm0, %v1507_v51  ;;  %3226 = vrot.lane.b32.xlu0 %v6839_v47, %s5511_s12 }
 0x1fb   : > { %4716 = vmatprep.mubr.msk.f32.mxu1 %vm2119_vm0, %v1512_v24 }
 0x1fc   : > { %v3305_v17 = vpop.permute.xlu0 %3304  ;;  %3228 = vrot.lane.b32.xlu1 %v6845_v31, %s5511_s12 }
 0x1fd   : > { %4754 = vmatprep.subr.msk.mxu1 %vm2119_vm0, %v3305_v17 }
 0x1fe   : > { %v3303_v41 = vpop.permute.xlu1 %3302  ;;  %4717 = vmatmul.mubr.msk.f32.gmra.mxu1 %vm2119_vm0, %v1512_v24  ;;  %3230 = vrot.lane.b32.xlu0 %v6851_v15, %s5511_s12 }
 0x1ff   : > { %4718 = vmatprep.mubr.msk.f32.mxu1 %vm2119_vm0, %v6781_v8 }
 0x200   : > { %v3273_v4 = vpop.permute.xlu0 %3272  ;;  %3232 = vrot.lane.b32.xlu1 %v6857_v18, %s5511_s12 }
 0x201   : > { %4755 = vmatpush3.xpose.msk.msra.mxu1 %vm2119_vm0, %v3273_v4 }
 0x202   : > { %v3271_v46 = vpop.permute.xlu1 %3270  ;;  %4719 = vmatmul.mubr.msk.f32.gmra.mxu1 %vm2119_vm0, %v6781_v8  ;;  %4756 = vmatprep.subr.msk.mxu1 %vm2119_vm0, %v3303_v41 }
 0x203   : > { %4720 = vmatprep.mubr.msk.f32.mxu1 %vm2119_vm0, %v6786_v43  ;;  %3234 = vrot.lane.b32.xlu0 %v6868_v10, %s5511_s12 }
 0x204   : > { %v3301_v27 = vpop.permute.xlu0 %3300  ;;  %3236 = vrot.lane.b32.xlu1 %v6871_v61, %s5511_s12 }
 0x205   : > { %4757 = vmatpush3.xpose.msk.msra.mxu1 %vm2119_vm0, %v3271_v46 }
 0x206   : > { %v3269_v48 = vpop.permute.xlu1 %3268  ;;  %4721 = vmatmul.mubr.msk.f32.gmra.mxu1 %vm2119_vm0, %v6786_v43  ;;  %4758 = vmatprep.subr.msk.mxu1 %vm2119_vm0, %v3301_v27 }
 0x207   : > { %4722 = vmatprep.mubr.msk.f32.mxu1 %vm2119_vm0, %v6791_v60  ;;  %3238 = vrot.lane.b32.xlu0 %v6882_v62, %s5511_s12 }
 0x208   : > { %v3299_v28 = vpop.permute.xlu0 %3298  ;;  %3240 = vrot.lane.b32.xlu1 %v6887_v33, %s5511_s12 }
 0x209   : > { %4759 = vmatpush3.xpose.msk.msra.mxu1 %vm2119_vm0, %v3269_v48 }
 0x20a   : > { %v3267_v12 = vpop.permute.xlu1 %3266  ;;  %4723 = vmatmul.mubr.msk.f32.gmra.mxu1 %vm2119_vm0, %v6791_v60  ;;  %4760 = vmatprep.subr.msk.mxu1 %vm2119_vm0, %v3299_v28 }
 0x20b   : > { %4724 = vmatprep.mubr.msk.f32.mxu1 %vm2119_vm0, %v6797_v40 }
 0x20c   : > { %v3297_v50 = vpop.permute.xlu0 %3296 }
 0x20d   : > { %4761 = vmatpush3.xpose.msk.msra.mxu1 %vm2119_vm0, %v3267_v12 }
 0x20e   : > { %v3265_v58 = vpop.permute.xlu1 %3264  ;;  %4725 = vmatmul.mubr.msk.f32.gmra.mxu1 %vm2119_vm0, %v6797_v40  ;;  %4762 = vmatprep.subr.msk.mxu1 %vm2119_vm0, %v3297_v50 }
 0x20f   : > { %4726 = vmatprep.mubr.msk.f32.mxu1 %vm2119_vm0, %v6803_v2 }
 0x210   : > { %v3295_v53 = vpop.permute.xlu0 %3294 }
 0x211   : > { %4763 = vmatpush3.xpose.msk.msra.mxu1 %vm2119_vm0, %v3265_v58 }
 0x212   : > { %v3263_v14 = vpop.permute.xlu1 %3262  ;;  %4727 = vmatmul.mubr.msk.f32.gmra.mxu1 %vm2119_vm0, %v6803_v2  ;;  %4764 = vmatprep.subr.msk.mxu1 %vm2119_vm0, %v3295_v53 }
 0x213   : > { %4728 = vmatprep.mubr.msk.f32.mxu1 %vm2119_vm0, %v6809_v37 }
 0x214   : > { %v3293_v29 = vpop.permute.xlu0 %3292 }
 0x215   : > { %4765 = vmatpush3.xpose.msk.msra.mxu1 %vm2119_vm0, %v3263_v14 }
 0x216   : > { %v3261_v42 = vpop.permute.xlu1 %3260  ;;  %4729 = vmatmul.mubr.msk.f32.gmra.mxu1 %vm2119_vm0, %v6809_v37  ;;  %4766 = vmatprep.subr.msk.mxu1 %vm2119_vm0, %v3293_v29 }
 0x217   : > { %4730 = vmatprep.mubr.msk.f32.mxu1 %vm2119_vm0, %v6815_v19 }
 0x218   : > { %v3291_v20 = vpop.permute.xlu0 %3290 }
 0x219   : > { %4767 = vmatpush3.xpose.msk.msra.mxu1 %vm2119_vm0, %v3261_v42 }
 0x21a   : > { %v3259_v13 = vpop.permute.xlu1 %3258  ;;  %4731 = vmatmul.mubr.msk.f32.gmra.mxu1 %vm2119_vm0, %v6815_v19  ;;  %4768 = vmatprep.subr.msk.mxu1 %vm2119_vm0, %v3291_v20 }
 0x21b   : > { %4732 = vmatprep.mubr.msk.f32.mxu1 %vm2119_vm0, %v6821_v54 }
 0x21c   : > { %v3289_v6 = vpop.permute.xlu0 %3288 }
 0x21d   : > { %4769 = vmatpush3.xpose.msk.msra.mxu1 %vm2119_vm0, %v3259_v13 }
 0x21e   : > { %v3257_v56 = vpop.permute.xlu1 %3256  ;;  %4733 = vmatmul.mubr.msk.f32.gmra.mxu1 %vm2119_vm0, %v6821_v54  ;;  %4770 = vmatprep.subr.msk.mxu1 %vm2119_vm0, %v3289_v6 }
 0x21f   : > { %4734 = vmatprep.mubr.msk.f32.mxu1 %vm2119_vm0, %v6827_v1 }
 0x220   : > { %v3287_v11 = vpop.permute.xlu0 %3286 }
 0x221   : > { %4771 = vmatpush3.xpose.msk.msra.mxu1 %vm2119_vm0, %v3257_v56 }
 0x222   : > { %v3255_v32 = vpop.permute.xlu1 %3254  ;;  %4735 = vmatmul.mubr.msk.f32.gmra.mxu1 %vm2119_vm0, %v6827_v1  ;;  %4772 = vmatprep.subr.msk.mxu1 %vm2119_vm0, %v3287_v11 }
 0x223   : > { %4736 = vmatprep.mubr.msk.f32.mxu1 %vm2119_vm0, %v6833_v26 }
 0x224   : > { %v3285_v22 = vpop.permute.xlu0 %3284 }
 0x225   : > { %4773 = vmatpush3.xpose.msk.msra.mxu1 %vm2119_vm0, %v3255_v32 }
 0x226   : > { %v3253_v9 = vpop.permute.xlu1 %3252  ;;  %4737 = vmatmul.mubr.msk.f32.gmra.mxu1 %vm2119_vm0, %v6833_v26  ;;  %4774 = vmatprep.subr.msk.mxu1 %vm2119_vm0, %v3285_v22 }
 0x227   : > { %4738 = vmatprep.mubr.msk.f32.mxu1 %vm2119_vm0, %v6839_v47 }
 0x228   : > { %v3283_v59 = vpop.permute.xlu0 %3282 }
 0x229   : > { %4775 = vmatpush3.xpose.msk.msra.mxu1 %vm2119_vm0, %v3253_v9 }
 0x22a   : > { %v3251_v16 = vpop.permute.xlu1 %3250  ;;  %4739 = vmatmul.mubr.msk.f32.gmra.mxu1 %vm2119_vm0, %v6839_v47  ;;  %4776 = vmatprep.subr.msk.mxu1 %vm2119_vm0, %v3283_v59 }
 0x22b   : > { %4740 = vmatprep.mubr.msk.f32.mxu1 %vm2119_vm0, %v6845_v31 }
 0x22c   : > { %v3281_v44 = vpop.permute.xlu0 %3280 }
 0x22d   : > { %4777 = vmatpush3.xpose.msk.msra.mxu1 %vm2119_vm0, %v3251_v16 }
 0x22e   : > { %v3249_v52 = vpop.permute.xlu1 %3248  ;;  %4741 = vmatmul.mubr.msk.f32.gmra.mxu1 %vm2119_vm0, %v6845_v31  ;;  %4778 = vmatprep.subr.msk.mxu1 %vm2119_vm0, %v3281_v44 }
 0x22f   : > { %4742 = vmatprep.mubr.msk.f32.mxu1 %vm2119_vm0, %v6851_v15 }
 0x230   : > { %v3279_v30 = vpop.permute.xlu0 %3278 }
 0x231   : > { %4779 = vmatpush3.xpose.msk.msra.mxu1 %vm2119_vm0, %v3249_v52 }
 0x232   : > { %v3247_v45 = vpop.permute.xlu1 %3246  ;;  %4743 = vmatmul.mubr.msk.f32.gmra.mxu1 %vm2119_vm0, %v6851_v15  ;;  %4780 = vmatprep.subr.msk.mxu1 %vm2119_vm0, %v3279_v30 }
 0x233   : > { %4744 = vmatprep.mubr.msk.f32.mxu1 %vm2119_vm0, %v6857_v18 }
 0x234   : > { %v3277_v57 = vpop.permute.xlu0 %3276 }
 0x235   : > { %4781 = vmatpush3.xpose.msk.msra.mxu1 %vm2119_vm0, %v3247_v45 }
 0x236   : > { %v3245_v3 = vpop.permute.xlu1 %3244  ;;  %4745 = vmatmul.mubr.msk.f32.gmra.mxu1 %vm2119_vm0, %v6857_v18  ;;  %4782 = vmatprep.subr.msk.mxu1 %vm2119_vm0, %v3277_v57 }
 0x237   : > { %4746 = vmatprep.mubr.msk.f32.mxu1 %vm2119_vm0, %v6868_v10 }
 0x238   : > { %v3275_v25 = vpop.permute.xlu0 %3274 }
 0x239   : > { %4783 = vmatpush3.xpose.msk.msra.mxu1 %vm2119_vm0, %v3245_v3 }
 0x23a   : > { %4747 = vmatmul.mubr.msk.f32.gmra.mxu1 %vm2119_vm0, %v6868_v10  ;;  %4784 = vmatprep.subr.msk.mxu1 %vm2119_vm0, %v3275_v25  ;;  %v3243_v39 = vpop.permute.xlu1 %3242 }
 0x23b   : > { %4748 = vmatprep.mubr.msk.f32.mxu1 %vm2119_vm0, %v6871_v61 }
 0x23c   : > { %v3179_v51 = vpop.permute.xlu0 %3178 }
 0x23d   : > { %4785 = vmatpush3.xpose.msk.msra.mxu1 %vm2119_vm0, %v3243_v39 }
 0x23e   : > { %4749 = vmatmul.mubr.msk.f32.gmra.mxu1 %vm2119_vm0, %v6871_v61  ;;  %v3181_v36 = vpop.permute.xlu1 %3180 }
 0x23f   : > { %4750 = vmatprep.mubr.msk.f32.mxu1 %vm2119_vm0, %v6882_v62 }
 0x240   : > { %v3183_v24 = vpop.permute.xlu0 %3182 }
 0x242   : > { %4751 = vmatmul.mubr.msk.f32.gmra.mxu1 %vm2119_vm0, %v6882_v62  ;;  %v3185_v8 = vpop.permute.xlu1 %3184 }
 0x243   : > { %4752 = vmatprep.mubr.msk.f32.mxu1 %vm2119_vm0, %v6887_v33 }
 0x244   : > { %v3187_v34 = vpop.permute.xlu0 %3186 }
 0x246   : > { %4753 = vmatmul.mubr.msk.f32.gmra.mxu1 %vm2119_vm0, %v6887_v33  ;;  %v3189_v43 = vpop.permute.xlu1 %3188 }
 0x247   : > { %4786 = vmatprep.mubr.msk.f32.mxu1 %vm2119_vm0, %v3179_v51 }
 0x248   : > { %v3191_v7 = vpop.permute.xlu0 %3190 }
 0x24a   : > { %4787 = vmatmul.mubr.msk.f32.vlgmr.msra.gmra.mxu1 %vm2119_vm0, %v3179_v51  ;;  %v3193_v60 = vpop.permute.xlu1 %3192 }
 0x24b   : > { %4788 = vmatprep.mubr.msk.f32.mxu1 %vm2119_vm0, %v3181_v36 }
 0x24c   : > { %v3195_v40 = vpop.permute.xlu0 %3194 }
 0x24e   : > { %4789 = vmatmul.mubr.msk.f32.gmra.mxu1 %vm2119_vm0, %v3181_v36  ;;  %v3197_v49 = vpop.permute.xlu1 %3196 }
 0x24f   : > { %4790 = vmatprep.mubr.msk.f32.mxu1 %vm2119_vm0, %v3183_v24 }
 0x250   : > { %v3199_v2 = vpop.permute.xlu0 %3198 }
 0x252   : > { %4791 = vmatmul.mubr.msk.f32.gmra.mxu1 %vm2119_vm0, %v3183_v24  ;;  %v3201_v63 = vpop.permute.xlu1 %3200 }
 0x253   : > { %4792 = vmatprep.mubr.msk.f32.mxu1 %vm2119_vm0, %v3185_v8 }
 0x254   : > { %v3203_v37 = vpop.permute.xlu0 %3202 }
 0x256   : > { %4793 = vmatmul.mubr.msk.f32.gmra.mxu1 %vm2119_vm0, %v3185_v8  ;;  %v3205_v19 = vpop.permute.xlu1 %3204 }
 0x257   : > { %4794 = vmatprep.mubr.msk.f32.mxu1 %vm2119_vm0, %v3187_v34 }
 0x258   : > { %v3207_v21 = vpop.permute.xlu0 %3206 }
 0x25a   : > { %4795 = vmatmul.mubr.msk.f32.gmra.mxu1 %vm2119_vm0, %v3187_v34  ;;  %v3209_v54 = vpop.permute.xlu1 %3208 }
 0x25b   : > { %4796 = vmatprep.mubr.msk.f32.mxu1 %vm2119_vm0, %v3189_v43 }
 0x25c   : > { %v3211_v23 = vpop.permute.xlu0 %3210 }
 0x25e   : > { %4797 = vmatmul.mubr.msk.f32.gmra.mxu1 %vm2119_vm0, %v3189_v43  ;;  %v3213_v26 = vpop.permute.xlu1 %3212 }
 0x25f   : > { %4798 = vmatprep.mubr.msk.f32.mxu1 %vm2119_vm0, %v3191_v7 }
 0x260   : > { %v3215_v0 = vpop.permute.xlu0 %3214 }
 0x262   : > { %4799 = vmatmul.mubr.msk.f32.gmra.mxu1 %vm2119_vm0, %v3191_v7  ;;  %v3217_v5 = vpop.permute.xlu1 %3216 }
 0x263   : > { %4800 = vmatprep.mubr.msk.f32.mxu1 %vm2119_vm0, %v3193_v60 }
 0x264   : > { %v3219_v35 = vpop.permute.xlu0 %3218 }
 0x266   : > { %4801 = vmatmul.mubr.msk.f32.gmra.mxu1 %vm2119_vm0, %v3193_v60  ;;  %v3221_v4 = vpop.permute.xlu1 %3220 }
 0x267   : > { %4802 = vmatprep.mubr.msk.f32.mxu1 %vm2119_vm0, %v3195_v40 }
 0x268   : > { %v3223_v46 = vpop.permute.xlu0 %3222 }
 0x26a   : > { %4803 = vmatmul.mubr.msk.f32.gmra.mxu1 %vm2119_vm0, %v3195_v40  ;;  %v3225_v33 = vpop.permute.xlu1 %3224 }
 0x26b   : > { %4804 = vmatprep.mubr.msk.f32.mxu1 %vm2119_vm0, %v3197_v49 }
 0x26c   : > { %v3227_v12 = vpop.permute.xlu0 %3226 }
 0x26e   : > { %4805 = vmatmul.mubr.msk.f32.gmra.mxu1 %vm2119_vm0, %v3197_v49  ;;  %v3229_v53 = vpop.permute.xlu1 %3228 }
 0x26f   : > { %4806 = vmatprep.mubr.msk.f32.mxu1 %vm2119_vm0, %v3199_v2 }
 0x270   : > { %v3231_v42 = vpop.permute.xlu0 %3230 }
 0x272   : > { %4807 = vmatmul.mubr.msk.f32.gmra.mxu1 %vm2119_vm0, %v3199_v2  ;;  %v3233_v6 = vpop.permute.xlu1 %3232 }
 0x273   : > { %4808 = vmatprep.mubr.msk.f32.mxu1 %vm2119_vm0, %v3201_v63 }
 0x275   : > { %v3235_v32 = vpop.permute.xlu0 %3234 }
 0x276   : > { %4809 = vmatmul.mubr.msk.f32.gmra.mxu1 %vm2119_vm0, %v3201_v63  ;;  %v3237_v59 = vpop.permute.xlu1 %3236 }
 0x277   : > { %4810 = vmatprep.mubr.msk.f32.mxu1 %vm2119_vm0, %v3203_v37 }
 0x279   : > { %v3239_v52 = vpop.permute.xlu0 %3238 }
 0x27a   : > { %4811 = vmatmul.mubr.msk.f32.gmra.mxu1 %vm2119_vm0, %v3203_v37  ;;  %v3241_v57 = vpop.permute.xlu1 %3240 }
 0x27b   : > { %4812 = vmatprep.mubr.msk.f32.mxu1 %vm2119_vm0, %v3205_v19 }
 0x27e   : > { %4813 = vmatmul.mubr.msk.f32.gmra.mxu1 %vm2119_vm0, %v3205_v19 }
 0x27f   : > { %4814 = vmatprep.mubr.msk.f32.mxu1 %vm2119_vm0, %v3207_v21 }
 0x282   : > { %4815 = vmatmul.mubr.msk.f32.gmra.mxu1 %vm2119_vm0, %v3207_v21 }
 0x283   : > { %4816 = vmatprep.mubr.msk.f32.mxu1 %vm2119_vm0, %v3209_v54 }
 0x286   : > { %4817 = vmatmul.mubr.msk.f32.gmra.mxu1 %vm2119_vm0, %v3209_v54 }
 0x287   : > { %4818 = vmatprep.mubr.msk.f32.mxu1 %vm2119_vm0, %v3211_v23 }
 0x28a   : > { %v7023_v1 = vpop.f32.mrf.mxu1  ;;  %4819 = vmatmul.mubr.msk.f32.gmra.mxu1 %vm2119_vm0, %v3211_v23 }
 0x28b   : > { %8603 = vst [vmem:[#allocation7_spill] sm:$0xff] %v7023_v1  ;;  %4820 = vmatprep.mubr.msk.f32.mxu1 %vm2119_vm0, %v3213_v26 }
 0x28c   : > { %v7027_v38 = vpop.f32.mrf.mxu1 }
 0x28d   : > { %8604 = vst [vmem:[#allocation4_spill] sm:$0xff] %v7027_v38 }
 0x28e   : > { %v7029_v47 = vpop.f32.mrf.mxu1  ;;  %4821 = vmatmul.mubr.msk.f32.gmra.mxu1 %vm2119_vm0, %v3213_v26 }
 0x28f   : > { %8605 = vst [vmem:[#allocation6_spill] sm:$0xff] %v7029_v47  ;;  %4822 = vmatprep.mubr.msk.f32.mxu1 %vm2119_vm0, %v3215_v0 }
 0x290   : > { %v7033_v31 = vpop.f32.mrf.mxu1 }
 0x291   : > { %8606 = vst [vmem:[#allocation3_spill] sm:$0xff] %v7033_v31 }
 0x292   : > { %v7035_v15 = vpop.f32.mrf.mxu1  ;;  %4823 = vmatmul.mubr.msk.f32.gmra.mxu1 %vm2119_vm0, %v3215_v0 }
 0x293   : > { %8607 = vst [vmem:[#allocation5_spill] sm:$0xff] %v7035_v15  ;;  %4824 = vmatprep.mubr.msk.f32.mxu1 %vm2119_vm0, %v3217_v5 }
 0x294   : > { %v7039_v17 = vpop.f32.mrf.mxu1 }
 0x295   : > { %8608 = vst [vmem:[#allocation8_spill] sm:$0xff] %v7039_v17 }
 0x296   : > { %v7041_v18 = vpop.f32.mrf.mxu1  ;;  %4825 = vmatmul.mubr.msk.f32.gmra.mxu1 %vm2119_vm0, %v3217_v5 }
 0x297   : > { %8609 = vst [vmem:[#allocation9_spill] sm:$0xff] %v7041_v18  ;;  %4826 = vmatprep.mubr.msk.f32.mxu1 %vm2119_vm0, %v3219_v35 }
 0x298   : > { %v7045_v41 = vpop.f32.mrf.mxu1 }
 0x299   : > { %8610 = vst [vmem:[#allocation10_spill] sm:$0xff] %v7045_v41  ;;  %v2578_v26 = vmax.f32 %v7041_v18, %v7045_v41 }
 0x29a   : > { %v7047_v10 = vpop.f32.mrf.mxu1  ;;  %4827 = vmatmul.mubr.msk.f32.gmra.mxu1 %vm2119_vm0, %v3219_v35 }
 0x29b   : > { %4828 = vmatprep.mubr.msk.f32.mxu1 %vm2119_vm0, %v3221_v4 }
 0x29c   : > { %v7051_v61 = vpop.f32.mrf.mxu1 }
 0x29e   : > { %v7053_v55 = vpop.f32.mrf.mxu1  ;;  %4829 = vmatmul.mubr.msk.f32.gmra.mxu1 %vm2119_vm0, %v3221_v4  ;;  %v2572_v4 = vmax.f32 %v7029_v47, %v7033_v31 }
 0x29f   : > { %4830 = vmatprep.mubr.msk.f32.mxu1 %vm2119_vm0, %v3223_v46 }
 0x2a0   : > { %v7057_v62 = vpop.f32.mrf.mxu1 }
 0x2a1   : > { %v2584_v19 = vmax.f32 %v7053_v55, %v7057_v62 }
 0x2a2   : > { %v7059_v27 = vpop.f32.mrf.mxu1  ;;  %4831 = vmatmul.mubr.msk.f32.gmra.mxu1 %vm2119_vm0, %v3223_v46 }
 0x2a3   : > { %4832 = vmatprep.mubr.msk.f32.mxu1 %vm2119_vm0, %v3225_v33 }
 0x2a4   : > { %v7063_v48 = vpop.f32.mrf.mxu1 }
 0x2a5   : > { %v2587_v46 = vmax.f32 %v7059_v27, %v7063_v48 }
 0x2a6   : > { %v7065_v28 = vpop.f32.mrf.mxu1  ;;  %4833 = vmatmul.mubr.msk.f32.gmra.mxu1 %vm2119_vm0, %v3225_v33 }
 0x2a7   : > { %4834 = vmatprep.mubr.msk.f32.mxu1 %vm2119_vm0, %v3227_v12 }
 0x2a8   : > { %v7069_v50 = vpop.f32.mrf.mxu1 }
 0x2a9   : > { %v2590_v49 = vmax.f32 %v7065_v28, %v7069_v50 }
 0x2aa   : > { %v7071_v58 = vpop.f32.mrf.mxu1  ;;  %4835 = vmatmul.mubr.msk.f32.gmra.mxu1 %vm2119_vm0, %v3227_v12 }
 0x2ab   : > { %4836 = vmatprep.mubr.msk.f32.mxu1 %vm2119_vm0, %v3229_v53 }
 0x2ac   : > { %v7075_v14 = vpop.f32.mrf.mxu1 }
 0x2ad   : > { %v2593_v0 = vmax.f32 %v7071_v58, %v7075_v14 }
 0x2ae   : > { %v7077_v29 = vpop.f32.mrf.mxu1  ;;  %4837 = vmatmul.mubr.msk.f32.gmra.mxu1 %vm2119_vm0, %v3229_v53  ;;  %v2581_v53 = vmax.f32 %v7047_v10, %v7051_v61 }
 0x2af   : > { %4838 = vmatprep.mubr.msk.f32.mxu1 %vm2119_vm0, %v3231_v42 }
 0x2b0   : > { %v7081_v20 = vpop.f32.mrf.mxu1 }
 0x2b1   : > { %v2596_v43 = vmax.f32 %v7077_v29, %v7081_v20 }
 0x2b2   : > { %v7083_v13 = vpop.f32.mrf.mxu1  ;;  %4839 = vmatmul.mubr.msk.f32.gmra.mxu1 %vm2119_vm0, %v3231_v42 }
 0x2b3   : > { %4840 = vmatprep.mubr.msk.f32.mxu1 %vm2119_vm0, %v3233_v6 }
 0x2b4   : > { %v7087_v56 = vpop.f32.mrf.mxu1 }
 0x2b5   : > { %v2599_v21 = vmax.f32 %v7083_v13, %v7087_v56 }
 0x2b6   : > { %v7089_v11 = vpop.f32.mrf.mxu1  ;;  %4841 = vmatmul.mubr.msk.f32.gmra.mxu1 %vm2119_vm0, %v3233_v6 }
 0x2b7   : > { %4842 = vmatprep.mubr.msk.f32.mxu1 %vm2119_vm0, %v3235_v32 }
 0x2b8   : > { %v7093_v22 = vpop.f32.mrf.mxu1 }
 0x2b9   : > { %v2602_v36 = vmax.f32 %v7089_v11, %v7093_v22 }
 0x2ba   : > { %v7095_v9 = vpop.f32.mrf.mxu1  ;;  %4843 = vmatmul.mubr.msk.f32.gmra.mxu1 %vm2119_vm0, %v3235_v32  ;;  %v2575_v32 = vmax.f32 %v7035_v15, %v7039_v17 }
 0x2bb   : > { %4844 = vmatprep.mubr.msk.f32.mxu1 %vm2119_vm0, %v3237_v59 }
 0x2bc   : > { %v7099_v16 = vpop.f32.mrf.mxu1 }
 0x2bd   : > { %v2605_v2 = vmax.f32 %v7095_v9, %v7099_v16 }
 0x2be   : > { %v7101_v44 = vpop.f32.mrf.mxu1  ;;  %4845 = vmatmul.mubr.msk.f32.gmra.mxu1 %vm2119_vm0, %v3237_v59 }
 0x2bf   : > { %4846 = vmatprep.mubr.msk.f32.mxu1 %vm2119_vm0, %v3239_v52 }
 0x2c0   : > { %v7105_v30 = vpop.f32.mrf.mxu1 }
 0x2c1   : > { %v2608_v7 = vmax.f32 %v7101_v44, %v7105_v30 }
 0x2c2   : > { %v7107_v45 = vpop.f32.mrf.mxu1  ;;  %4847 = vmatmul.mubr.msk.f32.gmra.mxu1 %vm2119_vm0, %v3239_v52 }
 0x2c3   : > { %4848 = vmatprep.mubr.msk.f32.mxu1 %vm2119_vm0, %v3241_v57 }
 0x2c4   : > { %v7111_v3 = vpop.f32.mrf.mxu1 }
 0x2c5   : > { %v2611_v25 = vmax.f32 %v7107_v45, %v7111_v3 }
 0x2c6   : > { %v7115_v39 = vpop.f32.mrf.mxu1  ;;  %4849 = vmatmul.mubr.msk.f32.gmra.mxu1 %vm2119_vm0, %v3241_v57  ;;  %v2569_v57 = vmax.f32 %v7023_v1, %v7027_v38 }
 0x2c7   : > { %2612 = vmax.xlane.f32.xlu1 %v2611_v25 }
 0x2c8   : > { %v7118_v51 = vpop.f32.mrf.mxu1 }
 0x2c9   : > { %v2614_v24 = vmax.f32 %v7115_v39, %v7118_v51 }
 0x2ca   : > { %v7124_v8 = vpop.f32.mrf.mxu1 }
 0x2cb   : > { %8611 = vst [vmem:[#allocation11_spill] sm:$0xff] %v7124_v8  ;;  %2603 = vmax.xlane.f32.xlu1 %v2602_v36  ;;  %2615 = vmax.xlane.f32.xlu0 %v2614_v24 }
 0x2cc   : > { %v7126_v34 = vpop.f32.mrf.mxu1 }
 0x2cd   : > { %8612 = vst [vmem:[#allocation12_spill] sm:$0xff] %v7126_v34 }
 0x2ce   : > { %v7132_v60 = vpop.f32.mrf.mxu1 }
 0x2cf   : > { %8613 = vst [vmem:[#allocation13_spill] sm:$0xff] %v7132_v60  ;;  %2597 = vmax.xlane.f32.xlu1 %v2596_v43  ;;  %2609 = vmax.xlane.f32.xlu0 %v2608_v7 }
 0x2d0   : > { %v7134_v40 = vpop.f32.mrf.mxu1 }
 0x2d1   : > { %8614 = vst [vmem:[#allocation14_spill] sm:$0xff] %v7134_v40 }
 0x2d2   : > { %v7140_v63 = vpop.f32.mrf.mxu1 }
 0x2d3   : > { %8615 = vst [vmem:[#allocation15_spill] sm:$0xff] %v7140_v63  ;;  %2591 = vmax.xlane.f32.xlu1 %v2590_v49  ;;  %2606 = vmax.xlane.f32.xlu0 %v2605_v2 }
 0x2d4   : > { %v7142_v37 = vpop.f32.mrf.mxu1 }
 0x2d5   : > { %8616 = vst [vmem:[#allocation16_spill] sm:$0xff] %v7142_v37 }
 0x2d6   : > { %v7148_v54 = vpop.f32.mrf.mxu1 }
 0x2d7   : > { %8617 = vst [vmem:[#allocation17_spill] sm:$0xff] %v7148_v54  ;;  %2585 = vmax.xlane.f32.xlu1 %v2584_v19  ;;  %2600 = vmax.xlane.f32.xlu0 %v2599_v21 }
 0x2d8   : > { %v7150_v23 = vpop.f32.mrf.mxu1 }
 0x2d9   : > { %8618 = vst [vmem:[#allocation18_spill] sm:$0xff] %v7150_v23 }
 0x2da   : > { %v7156_v5 = vpop.f32.mrf.mxu1 }
 0x2db   : > { %8619 = vst [vmem:[#allocation19_spill] sm:$0xff] %v7156_v5  ;;  %2579 = vmax.xlane.f32.xlu1 %v2578_v26  ;;  %2594 = vmax.xlane.f32.xlu0 %v2593_v0 }
 0x2dc   : > { %v7158_v35 = vpop.f32.mrf.mxu1 }
 0x2dd   : > { %8620 = vst [vmem:[#allocation20_spill] sm:$0xff] %v7158_v35 }
 0x2de   : > { %v7164_v33 = vpop.f32.mrf.mxu1 }
 0x2df   : > { %8621 = vst [vmem:[#allocation21_spill] sm:$0xff] %v7164_v33  ;;  %2573 = vmax.xlane.f32.xlu1 %v2572_v4  ;;  %2588 = vmax.xlane.f32.xlu0 %v2587_v46 }
 0x2e0   : > { %v7166_v12 = vpop.f32.mrf.mxu1 }
 0x2e1   : > { %8622 = vst [vmem:[#allocation22_spill] sm:$0xff] %v7166_v12 }
 0x2e2   : > { %v7170_v42 = vpop.f32.mrf.mxu1 }
 0x2e3   : > { %8623 = vst [vmem:[#allocation23_spill] sm:$0xff] %v7170_v42  ;;  %2582 = vmax.xlane.f32.xlu0 %v2581_v53 }
 0x2e4   : > { %v7172_v6 = vpop.f32.mrf.mxu1 }
 0x2e5   : > { %8624 = vst [vmem:[#allocation24_spill] sm:$0xff] %v7172_v6 }
 0x2e6   : > { %v7176_v59 = vpop.f32.mrf.mxu1 }
 0x2e7   : > { %8625 = vst [vmem:[#allocation25_spill] sm:$0xff] %v7176_v59  ;;  %2576 = vmax.xlane.f32.xlu0 %v2575_v32 }
 0x2e8   : > { %v7178_v52 = vpop.f32.mrf.mxu1 }
 0x2e9   : > { %8626 = vst [vmem:[#allocation26_spill] sm:$0xff] %v7178_v52 }
 0x2ea   : > { %v7182_v25 = vpop.f32.mrf.mxu1 }
 0x2eb   : > { %8627 = vst [vmem:[#allocation27_spill] sm:$0xff] %v7182_v25  ;;  %2570 = vmax.xlane.f32.xlu0 %v2569_v57 }
 0x2ec   : > { %v7184_v36 = vpop.f32.mrf.mxu1 }
 0x2ed   : > { %8628 = vst [vmem:[#allocation28_spill] sm:$0xff] %v7184_v36 }
 0x2ee   : > { %v7186_v24 = vpop.f32.mrf.mxu1 }
 0x2ef   : > { %8629 = vst [vmem:[#allocation29_spill] sm:$0xff] %v7186_v24 }
 0x2f0   : > { %v7188_v43 = vpop.f32.mrf.mxu1 }
 0x2f1   : > { %8630 = vst [vmem:[#allocation30_spill] sm:$0xff] %v7188_v43 }
 0x2f2   : > { %v7190_v7 = vpop.f32.mrf.mxu1 }
 0x2f3   : > { %8631 = vst [vmem:[#allocation31_spill] sm:$0xff] %v7190_v7 }
 0x2f4   : > { %v7192_v49 = vpop.f32.mrf.mxu1 }
 0x2f5   : > { %8632 = vst [vmem:[#allocation32_spill] sm:$0xff] %v7192_v49 }
 0x2f6   : > { %v7194_v2 = vpop.f32.mrf.mxu1 }
 0x2f7   : > { %8633 = vst [vmem:[#allocation33_spill] sm:$0xff] %v7194_v2 }
 0x2f8   : > { %v7196_v19 = vpop.f32.mrf.mxu1 }
 0x2f9   : > { %8634 = vst [vmem:[#allocation34_spill] sm:$0xff] %v7196_v19  ;;  %v2650_v57 = vmax.f32 %v7194_v2, %v7196_v19  ;;  %v2641_v2 = vmax.f32 %v7182_v25, %v7184_v36 }
 0x2fa   : > { %v7198_v21 = vpop.f32.mrf.mxu1 }
 0x2fb   : > { %8635 = vst [vmem:[#allocation35_spill] sm:$0xff] %v7198_v21 }
 0x2fc   : > { %v7200_v26 = vpop.f32.mrf.mxu1 }
 0x2fd   : > { %8636 = vst [vmem:[#allocation36_spill] sm:$0xff] %v7200_v26 }
 0x2fe   : > { %v7202_v0 = vpop.f32.mrf.mxu1 }
 0x2ff   : > { %8637 = vst [vmem:[#allocation37_spill] sm:$0xff] %v7202_v0 }
 0x300   : > { %v7204_v4 = vpop.f32.mrf.mxu1 }
 0x301   : > { %8638 = vst [vmem:[#allocation38_spill] sm:$0xff] %v7204_v4  ;;  %v2656_v46 = vmax.f32 %v7202_v0, %v7204_v4  ;;  %v2644_v4 = vmax.f32 %v7186_v24, %v7188_v43  ;;  %v2638_v24 = vmax.f32 %v7176_v59, %v7178_v52 }
 0x302   : > { %v7208_v53 = vpop.f32.mrf.mxu1 }
 0x303   : > { %8639 = vst [vmem:[#allocation39_spill] sm:$0xff] %v7208_v53  ;;  %2657 = vmax.xlane.f32.xlu1 %v2656_v46  ;;  %v2653_v46 = vmax.f32 %v7198_v21, %v7200_v26  ;;  %v5512_v26 = vmov 0  }
 0x304   : > { %v7210_v32 = vpop.f32.mrf.mxu1  ;;  %5085 = vset.pattern.permute.xlu1 %v5512_v26  ;;  %5086 = vset.pattern.permute.xlu0 %v5512_v26  ;;  %v1846_v26 = vld [vmem:[%s8436_s6] sm:$0xff] }
 0x305   : > { %8640 = vst [vmem:[#allocation40_spill] sm:$0xff] %v7210_v32  ;;  %v2659_v38 = vmax.f32 %v7208_v53, %v7210_v32  ;;  %4626 = vmatprep.mubr.f32.mxu0 %v1846_v26 }
 0x306   : > { %v7216_v1 = vpop.f32.mrf.mxu1  ;;  %4627 = vmatmul.mubr.f32.vlgmr.msra.gmra.mxu0 %v1846_v26 }
 0x307   : > { %8641 = vst [vmem:[#allocation41_spill] sm:$0xff] %v7216_v1  ;;  %2651 = vmax.xlane.f32.xlu1 %v2650_v57  ;;  %2660 = vmax.xlane.f32.xlu0 %v2659_v38  ;;  %v2647_v38 = vmax.f32 %v7190_v7, %v7192_v49 }
 0x308   : > { %v7218_v31 = vpop.f32.mrf.mxu1 }
 0x309   : > { %8642 = vst [vmem:[#allocation42_spill] sm:$0xff] %v7218_v31 }
 0x30a   : > { %v7224_v0 = vpop.f32.mrf.mxu1 }
 0x30b   : > { %8643 = vst [vmem:[#allocation43_spill] sm:$0xff] %v7224_v0  ;;  %2645 = vmax.xlane.f32.xlu1 %v2644_v4  ;;  %2654 = vmax.xlane.f32.xlu0 %v2653_v46  ;;  %v2635_v46 = vmax.f32 %v7170_v42, %v7172_v6 }
 0x30c   : > { %v7226_v19 = vpop.f32.mrf.mxu1 }
 0x30d   : > { %8644 = vst [vmem:[#allocation44_spill] sm:$0xff] %v7226_v19 }
 0x30e   : > { %v7232_v57 = vpop.f32.mrf.mxu1 }
 0x30f   : > { %2642 = vmax.xlane.f32.xlu1 %v2641_v2  ;;  %2648 = vmax.xlane.f32.xlu0 %v2647_v38  ;;  %v2632_v2 = vmax.f32 %v7164_v33, %v7166_v12 }
 0x310   : > { %v7234_v43 = vpop.f32.mrf.mxu1 }
 0x312   : > { %v7238_v32 = vpop.f32.mrf.mxu1 }
 0x313   : > { %2639 = vmax.xlane.f32.xlu1 %v2638_v24  ;;  %v2662_v24 = vmax.f32 %v7216_v1, %v7218_v31 }
 0x314   : > { %v7240_v4 = vpop.f32.mrf.mxu1 }
 0x316   : > { %v7244_v36 = vpop.f32.mrf.mxu1 }
 0x317   : > { %2636 = vmax.xlane.f32.xlu1 %v2635_v46  ;;  %v2629_v46 = vmax.f32 %v7156_v5, %v7158_v35 }
 0x318   : > { %v7246_v25 = vpop.f32.mrf.mxu1 }
 0x31a   : > { %v7250_v38 = vpop.f32.mrf.mxu1 }
 0x31b   : > { %2633 = vmax.xlane.f32.xlu1 %v2632_v2  ;;  %v2626_v2 = vmax.f32 %v7148_v54, %v7150_v23 }
 0x31c   : > { %v7252_v52 = vpop.f32.mrf.mxu1 }
 0x31e   : > { %v7256_v59 = vpop.f32.mrf.mxu1 }
 0x31f   : > { %2663 = vmax.xlane.f32.xlu1 %v2662_v24  ;;  %v2623_v24 = vmax.f32 %v7140_v63, %v7142_v37 }
 0x320   : > { %v7258_v6 = vpop.f32.mrf.mxu1 }
 0x322   : > { %v7262_v42 = vpop.f32.mrf.mxu1 }
 0x323   : > { %2630 = vmax.xlane.f32.xlu1 %v2629_v46  ;;  %v2620_v46 = vmax.f32 %v7132_v60, %v7134_v40 }
 0x324   : > { %v7264_v12 = vpop.f32.mrf.mxu1 }
 0x326   : > { %v7268_v33 = vpop.f32.mrf.mxu1 }
 0x327   : > { %2627 = vmax.xlane.f32.xlu1 %v2626_v2  ;;  %v2617_v2 = vmax.f32 %v7124_v8, %v7126_v34 }
 0x328   : > { %v7270_v49 = vpop.f32.mrf.mxu1 }
 0x32a   : > { %v7274_v7 = vpop.f32.mrf.mxu1 }
 0x32b   : > { %2624 = vmax.xlane.f32.xlu1 %v2623_v24 }
 0x32c   : > { %v7276_v35 = vpop.f32.mrf.mxu1 }
 0x32e   : > { %v7280_v5 = vpop.f32.mrf.mxu1 }
 0x32f   : > { %2621 = vmax.xlane.f32.xlu1 %v2620_v46 }
 0x330   : > { %v7282_v23 = vpop.f32.mrf.mxu1 }
 0x332   : > { %v7286_v54 = vpop.f32.mrf.mxu1 }
 0x333   : > { %8645 = vst [vmem:[#allocation45_spill] sm:$0xff] %v7286_v54  ;;  %2618 = vmax.xlane.f32.xlu1 %v2617_v2 }
 0x334   : > { %v7288_v37 = vpop.f32.mrf.mxu1 }
 0x335   : > { %8646 = vst [vmem:[#allocation46_spill] sm:$0xff] %v7288_v37  ;;  %v3721_v26 = vmax.f32 %v7286_v54, %v7288_v37 }
 0x336   : > { %v7290_v63 = vpop.f32.mrf.mxu1 }
 0x337   : > { %8647 = vst [vmem:[#allocation47_spill] sm:$0xff] %v7290_v63 }
 0x338   : > { %v7292_v24 = vpop.f32.mrf.mxu1 }
 0x339   : > { %8648 = vst [vmem:[#allocation48_spill] sm:$0xff] %v7292_v24 }
 0x33a   : > { %v7294_v31 = vpop.f32.mrf.mxu1 }
 0x33b   : > { %8649 = vst [vmem:[#allocation49_spill] sm:$0xff] %v7294_v31 }
 0x33c   : > { %v7296_v40 = vpop.f32.mrf.mxu1 }
 0x33d   : > { %8650 = vst [vmem:[#allocation50_spill] sm:$0xff] %v7296_v40 }
 0x33e   : > { %v7298_v60 = vpop.f32.mrf.mxu1 }
 0x340   : > { %v7300_v46 = vpop.f32.mrf.mxu1 }
 0x341   : > { %v3730_v18 = vmax.f32 %v7298_v60, %v7300_v46 }
 0x342   : > { %v7302_v1 = vpop.f32.mrf.mxu1 }
 0x343   : > { %8651 = vst [vmem:[#allocation51_spill] sm:$0xff] %v7302_v1 }
 0x344   : > { %v7304_v34 = vpop.f32.mrf.mxu1 }
 0x345   : > { %8652 = vst [vmem:[#allocation52_spill] sm:$0xff] %v7304_v34  ;;  %v3733_v17 = vmax.f32 %v7302_v1, %v7304_v34 }
 0x346   : > { %v7306_v8 = vpop.f32.mrf.mxu1 }
 0x347   : > { %8653 = vst [vmem:[#allocation53_spill] sm:$0xff] %v7306_v8 }
 0x348   : > { %v7308_v2 = vpop.f32.mrf.mxu1 }
 0x349   : > { %8654 = vst [vmem:[#allocation54_spill] sm:$0xff] %v7308_v2  ;;  %v3736_v53 = vmax.f32 %v7306_v8, %v7308_v2 }
 0x34a   : > { %v7312_v21 = vpop.f32.mrf.mxu1 }
 0x34b   : > { %8655 = vst [vmem:[#allocation55_spill] sm:$0xff] %v7312_v21  ;;  %3737 = vmax.xlane.f32.xlu1 %v3736_v53  ;;  %v3727_v21 = vmax.f32 %v7294_v31, %v7296_v40  ;;  %v3718_v40 = vmax.f32 %v7280_v5, %v7282_v23 }
 0x34c   : > { %v7314_v47 = vpop.f32.mrf.mxu1 }
 0x34d   : > { %8656 = vst [vmem:[#allocation56_spill] sm:$0xff] %v7314_v47 }
 0x34e   : > { %v7318_v15 = vpop.f32.mrf.mxu1 }
 0x34f   : > { %8657 = vst [vmem:[#allocation57_spill] sm:$0xff] %v7318_v15  ;;  %3734 = vmax.xlane.f32.xlu1 %v3733_v17 }
 0x350   : > { %v7320_v41 = vpop.f32.mrf.mxu1 }
 0x351   : > { %8658 = vst [vmem:[#allocation58_spill] sm:$0xff] %v7320_v41 }
 0x352   : > { %v7324_v2 = vpop.f32.mrf.mxu1 }
 0x353   : > { %8659 = vst [vmem:[#allocation59_spill] sm:$0xff] %v7324_v2  ;;  %3731 = vmax.xlane.f32.xlu1 %v3730_v18  ;;  %v3724_v2 = vmax.f32 %v7290_v63, %v7292_v24 }
 0x354   : > { %v2616_v53 = vpop.xlane.xlu0 %2615  ;;  %v7331_v47 = vpop.f32.mrf.mxu1 }
 0x355   : > { %8660 = vst [vmem:[#allocation60_spill] sm:$0xff] %v7331_v47 }
 0x356   : > { %v7333_v17 = vpop.f32.mrf.mxu1 }
 0x357   : > { %8661 = vst [vmem:[#allocation61_spill] sm:$0xff] %v7333_v17  ;;  %3728 = vmax.xlane.f32.xlu1 %v3727_v21  ;;  %v2613_v21 = vpop.xlane.xlu1 %2612 }
 0x358   : > { %v2610_v15 = vpop.xlane.xlu0 %2609  ;;  %v7337_v41 = vpop.f32.mrf.mxu1  ;;  %v2693_v37 = vsub.f32 %v7107_v45, %v2613_v21 }
 0x359   : > { %8662 = vst [vmem:[#allocation62_spill] sm:$0xff] %v7337_v41  ;;  %v2691_v34 = vsub.f32 %v7101_v44, %v2610_v15  ;;  %v2692_v17 = vsub.f32 %v7105_v30, %v2610_v15  ;;  %v2695_v30 = vsub.f32 %v7115_v39, %v2616_v53 }
 0x35a   : > { %v7339_v8 = vpop.f32.mrf.mxu1 }
 0x35b   : > { %3725 = vmax.xlane.f32.xlu1 %v3724_v2  ;;  %v2781_v44 = vmul.f32 1.442695, %v2691_v34  ;;  %v2783_v31 = vmul.f32 1.442695, %v2692_v17  ;;  %v2604_v34 = vpop.xlane.xlu1 %2603 }
 0x35c   : > { %v2607_v18 = vpop.xlane.xlu0 %2606  ;;  %v7345_v1 = vpop.f32.mrf.mxu1  ;;  %v2688_v39 = vsub.f32 %v7093_v22, %v2604_v34 }
 0x35d   : > { %v2689_v47 = vsub.f32 %v7095_v9, %v2607_v18  ;;  %v2690_v24 = vsub.f32 %v7099_v16, %v2607_v18  ;;  %v2694_v9 = vsub.f32 %v7111_v3, %v2613_v21  ;;  %v2785_v16 = vmul.f32 1.442695, %v2693_v37 }
 0x35e   : > { %v7349_v41 = vpop.f32.mrf.mxu1  ;;  %v2696_v18 = vsub.f32 %v7118_v51, %v2616_v53  ;;  %v2789_v37 = vmul.f32 1.442695, %v2695_v30 }
 0x35f   : > { %v2777_v63 = vmul.f32 1.442695, %v2689_v47  ;;  %3722 = vmax.xlane.f32.xlu1 %v3721_v26  ;;  %v2779_v2 = vmul.f32 1.442695, %v2690_v24  ;;  %v3715_v47 = vmax.f32 %v7274_v7, %v7276_v35  ;;  %v2787_v45 = vmul.f32 1.442695, %v2694_v9  ;;  %v2598_v9 = vpop.xlane.xlu1 %2597 }
 0x360   : > { %v7354_v54 = vpop.f32.mrf.mxu1  ;;  %v2791_v26 = vmul.f32 1.442695, %v2696_v18  ;;  %v2601_v21 = vpop.xlane.xlu0 %2600 }
 0x361   : > { %5087 = vpow2.f32 %v2777_v63  ;;  %v2687_v63 = vsub.f32 %v7089_v11, %v2604_v34  ;;  %v2685_v53 = vsub.f32 %v7083_v13, %v2601_v21  ;;  %v2775_v11 = vmul.f32 1.442695, %v2688_v39 }
 0x362   : > { %v7357_v15 = vpop.f32.mrf.mxu1  ;;  %5089 = vpow2.f32 %v2779_v2  ;;  %v2683_v13 = vsub.f32 %v7077_v29, %v2598_v9  ;;  %v3703_v29 = vmax.f32 %v7250_v38, %v7252_v52 }
 0x363   : > { %3719 = vmax.xlane.f32.xlu1 %v3718_v40  ;;  %5091 = vpow2.f32 %v2781_v44  ;;  %v3712_v40 = vmax.f32 %v7268_v33, %v7270_v49  ;;  %v2773_v51 = vmul.f32 1.442695, %v2687_v63  ;;  %v2769_v34 = vmul.f32 1.442695, %v2685_v53 }
 0x364   : > { %v7362_v24 = vpop.f32.mrf.mxu1  ;;  %5093 = vpow2.f32 %v2783_v31  ;;  %v3709_v31 = vmax.f32 %v7262_v42, %v7264_v12 }
 0x365   : > { %5095 = vpow2.f32 %v2785_v16 }
 0x366   : > { %v7365_v3 = vpop.f32.mrf.mxu1  ;;  %5097 = vpow2.f32 %v2787_v45  ;;  %v3706_v45 = vmax.f32 %v7256_v59, %v7258_v6 }
 0x367   : > { %3716 = vmax.xlane.f32.xlu1 %v3715_v47  ;;  %5099 = vpow2.f32 %v2789_v37  ;;  %v2686_v47 = vsub.f32 %v7087_v56, %v2601_v21  ;;  %v2684_v56 = vsub.f32 %v7081_v20, %v2598_v9  ;;  %v2595_v37 = vpop.xlane.xlu0 %2594  ;;  %v2592_v9 = vpop.xlane.xlu1 %2591 }
 0x368   : > { %v7370_v17 = vpop.f32.mrf.mxu1  ;;  %5101 = vpow2.f32 %v2791_v26 }
 0x369   : > { %8663 = vst [vmem:[#allocation63_spill] sm:$0xff] %v7370_v17  ;;  %5103 = vpow2.f32 %v2773_v51  ;;  %v2771_v63 = vmul.f32 1.442695, %v2686_v47  ;;  %v2681_v51 = vsub.f32 %v7071_v58, %v2595_v37  ;;  %v2682_v47 = vsub.f32 %v7075_v14, %v2595_v37 }
 0x36a   : > { %v7373_v2 = vpop.f32.mrf.mxu1  ;;  %5105 = vpow2.f32 %v2775_v11  ;;  %v2767_v11 = vmul.f32 1.442695, %v2684_v56  ;;  %v3700_v58 = vmax.f32 %v7244_v36, %v7246_v25  ;;  %v2680_v14 = vsub.f32 %v7069_v50, %v2592_v9 }
 0x36b   : > { %3713 = vmax.xlane.f32.xlu1 %v3712_v40  ;;  %5107 = vpow2.f32 %v2769_v34  ;;  %v2761_v34 = vmul.f32 1.442695, %v2681_v51  ;;  %v2763_v37 = vmul.f32 1.442695, %v2682_v47 }
 0x36c   : > { %v7378_v44 = vpop.f32.mrf.mxu1  ;;  %5109 = vpow2.f32 %v2771_v63  ;;  %v2759_v47 = vmul.f32 1.442695, %v2680_v14 }
 0x36d   : > { %8664 = vst [vmem:[#allocation64_spill] sm:$0xff] %v7378_v44 }
 0x36e   : > { %v7381_v22 = vpop.f32.mrf.mxu1  ;;  %v7383_v16 = vpop.eup %5087 }
 0x36f   : > { %3710 = vmax.xlane.f32.xlu1 %v3709_v31  ;;  %8665 = vst [vmem:[#allocation65_spill] sm:$0xff] %v7383_v16  ;;  %v7385_v30 = vpop.eup %5089  ;;  %v2765_v31 = vmul.f32 1.442695, %v2683_v13  ;;  %v2679_v13 = vsub.f32 %v7065_v28, %v2592_v9  ;;  %v3697_v28 = vmax.f32 %v7238_v32, %v7240_v4 }
 0x370   : > { %8666 = vst [vmem:[#allocation66_spill] sm:$0xff] %v7385_v30  ;;  %v7390_v18 = vpop.f32.mrf.mxu1  ;;  %v7392_v40 = vpop.eup %5091  ;;  %v2893_v39 = vadd.f32 %v7385_v30, %v7383_v16 }
 0x371   : > { %8667 = vst [vmem:[#allocation67_spill] sm:$0xff] %v7392_v40  ;;  %v7397_v26 = vpop.eup %5093  ;;  %5111 = vpow2.f32 %v2765_v31  ;;  %v2589_v30 = vpop.xlane.xlu0 %2588  ;;  %v2757_v51 = vmul.f32 1.442695, %v2679_v13 }
 0x372   : > { %8668 = vst [vmem:[#allocation68_spill] sm:$0xff] %v7397_v26  ;;  %v7399_v21 = vpop.f32.mrf.mxu1  ;;  %2894 = vadd.xlane.f32.xlu0 %v2893_v39  ;;  %v7406_v20 = vpop.eup %5095  ;;  %5113 = vpow2.f32 %v2767_v11  ;;  %v2677_v11 = vsub.f32 %v7059_v27, %v2589_v30  ;;  %v3694_v27 = vmax.f32 %v7232_v57, %v7234_v43 }
 0x373   : > { %3707 = vmax.xlane.f32.xlu1 %v3706_v45  ;;  %8669 = vst [vmem:[#allocation69_spill] sm:$0xff] %v7406_v20  ;;  %v2896_v45 = vadd.f32 %v7397_v26, %v7392_v40  ;;  %v7411_v39 = vpop.eup %5097  ;;  %v2586_v31 = vpop.xlane.xlu1 %2585  ;;  %5115 = vpow2.f32 %v2761_v34  ;;  %v2678_v26 = vsub.f32 %v7063_v48, %v2589_v30 }
 0x374   : > { %v7404_v53 = vpop.f32.mrf.mxu1  ;;  %8670 = vst [vmem:[#allocation70_spill] sm:$0xff] %v7411_v39  ;;  %v7420_v63 = vpop.eup %5099  ;;  %5117 = vpow2.f32 %v2763_v37  ;;  %v2675_v34 = vsub.f32 %v7053_v55, %v2586_v31  ;;  %v2753_v14 = vmul.f32 1.442695, %v2677_v11  ;;  %v2676_v30 = vsub.f32 %v7057_v62, %v2586_v31 }
 0x375   : > { %8671 = vst [vmem:[#allocation71_spill] sm:$0xff] %v7420_v63  ;;  %v2583_v13 = vpop.xlane.xlu0 %2582  ;;  %5119 = vpow2.f32 %v2757_v51  ;;  %v3691_v55 = vmax.f32 %v7224_v0, %v7226_v19  ;;  %v8683_v19 = vld [vmem:[#allocation10_spill] sm:$0xff] }
 0x376   : > { %v7413_v16 = vpop.f32.mrf.mxu1  ;;  %2897 = vadd.xlane.f32.xlu0 %v2896_v45  ;;  %v7425_v45 = vpop.eup %5101  ;;  %5121 = vpow2.f32 %v2759_v47  ;;  %v2749_v51 = vmul.f32 1.442695, %v2675_v34  ;;  %v2673_v11 = vsub.f32 %v7047_v10, %v2583_v13  ;;  %v2674_v31 = vsub.f32 %v7051_v61, %v2583_v13  ;;  %v8682_v10 = vld [vmem:[#allocation9_spill] sm:$0xff] }
 0x377   : > { %3704 = vmax.xlane.f32.xlu1 %v3703_v29  ;;  %v2899_v29 = vadd.f32 %v7411_v39, %v7406_v20  ;;  %8672 = vst [vmem:[#allocation72_spill] sm:$0xff] %v7425_v45  ;;  %v7434_v9 = vpop.eup %5103  ;;  %v2580_v39 = vpop.xlane.xlu1 %2579  ;;  %5123 = vpow2.f32 %v2753_v14 }
 0x378   : > { %v7418_v56 = vpop.f32.mrf.mxu1  ;;  %8674 = vst [vmem:[#allocation74_spill] sm:$0xff] %v7434_v9  ;;  %v7439_v20 = vpop.eup %5105  ;;  %v2671_v14 = vsub.f32 %v8682_v10, %v2580_v39  ;;  %v2672_v0 = vsub.f32 %v8683_v19, %v2580_v39  ;;  %v2747_v13 = vmul.f32 1.442695, %v2674_v31  ;;  %v8689_v31 = vld [vmem:[#allocation8_spill] sm:$0xff] }
 0x379   : > { %8675 = vst [vmem:[#allocation75_spill] sm:$0xff] %v7439_v20  ;;  %v7448_v48 = vpop.eup %5107 }
 0x37a   : > { %v7427_v40 = vpop.f32.mrf.mxu1  ;;  %2900 = vadd.xlane.f32.xlu0 %v2899_v29  ;;  %8676 = vst [vmem:[#allocation76_spill] sm:$0xff] %v7448_v48  ;;  %v2741_v19 = vmul.f32 1.442695, %v2671_v14  ;;  %v2743_v39 = vmul.f32 1.442695, %v2672_v0 }
 0x37b   : > { %3701 = vmax.xlane.f32.xlu1 %v3700_v58  ;;  %v2902_v58 = vadd.f32 %v7425_v45, %v7420_v63  ;;  %v2755_v63 = vmul.f32 1.442695, %v2678_v26  ;;  %v2751_v26 = vmul.f32 1.442695, %v2676_v30  ;;  %v2574_v34 = vpop.xlane.xlu1 %2573  ;;  %v2745_v30 = vmul.f32 1.442695, %v2673_v11 }
 0x37c   : > { %v7432_v50 = vpop.f32.mrf.mxu1  ;;  %v8687_v11 = vld [vmem:[#allocation5_spill] sm:$0xff] }
 0x37d   : > { %8673 = vst [vmem:[#allocation73_spill] sm:$0xff] %v7432_v50  ;;  %5125 = vpow2.f32 %v2755_v63 }
 0x37e   : > { %v7441_v29 = vpop.f32.mrf.mxu1  ;;  %2903 = vadd.xlane.f32.xlu0 %v2902_v58  ;;  %v7453_v58 = vpop.eup %5109  ;;  %5127 = vpow2.f32 %v2749_v51 }
 0x37f   : > { %3698 = vmax.xlane.f32.xlu1 %v3697_v28  ;;  %v2890_v28 = vadd.f32 %v7439_v20, %v7434_v9  ;;  %8677 = vst [vmem:[#allocation77_spill] sm:$0xff] %v7453_v58  ;;  %v7462_v62 = vpop.eup %5111  ;;  %v2577_v9 = vpop.xlane.xlu0 %2576  ;;  %5129 = vpow2.f32 %v2751_v26 }
 0x380   : > { %v7446_v37 = vpop.f32.mrf.mxu1  ;;  %8679 = vst [vmem:[#allocation79_spill] sm:$0xff] %v7462_v62  ;;  %5131 = vpow2.f32 %v2745_v30  ;;  %v2669_v10 = vsub.f32 %v8687_v11, %v2577_v9  ;;  %v8692_v30 = vld [vmem:[#allocation3_spill] sm:$0xff] }
 0x381   : > { %5133 = vpow2.f32 %v2747_v13  ;;  %v2668_v13 = vsub.f32 %v8692_v30, %v2574_v34 }
 0x382   : > { %v7455_v45 = vpop.f32.mrf.mxu1  ;;  %2891 = vadd.xlane.f32.xlu0 %v2890_v28  ;;  %v7467_v28 = vpop.eup %5113  ;;  %5135 = vpow2.f32 %v2741_v19 }
 0x383   : > { %3695 = vmax.xlane.f32.xlu1 %v3694_v27  ;;  %v2887_v27 = vadd.f32 %v7453_v58, %v7448_v48  ;;  %8680 = vst [vmem:[#allocation80_spill] sm:$0xff] %v7467_v28  ;;  %v7475_v61 = vpop.eup %5115  ;;  %v2571_v51 = vpop.xlane.xlu0 %2570  ;;  %5137 = vpow2.f32 %v2743_v39  ;;  %v2735_v19 = vmul.f32 1.442695, %v2668_v13 }
 0x384   : > { %v7460_v47 = vpop.f32.mrf.mxu1  ;;  %8685 = vst [vmem:[#allocation10_spill] sm:$0xff] %v7475_v61  ;;  %v7481_v58 = vpop.eup %5117 }
 0x385   : > { %8678 = vst [vmem:[#allocation78_spill] sm:$0xff] %v7460_v47  ;;  %8686 = vst [vmem:[#allocation82_spill] sm:$0xff] %v7481_v58  ;;  %v7486_v26 = vpop.eup %5119 }
 0x386   : > { %v7469_v20 = vpop.f32.mrf.mxu1  ;;  %2888 = vadd.xlane.f32.xlu0 %v2887_v27  ;;  %8688 = vst [vmem:[#allocation5_spill] sm:$0xff] %v7486_v26 }
 0x387   : > { %8681 = vst [vmem:[#allocation81_spill] sm:$0xff] %v7469_v20  ;;  %3692 = vmax.xlane.f32.xlu1 %v3691_v55  ;;  %v2884_v55 = vadd.f32 %v7467_v28, %v7462_v62  ;;  %v2881_v62 = vadd.f32 %v7481_v58, %v7475_v61  ;;  %v3778_v61 = vmax.f32 %v7441_v29, %v7446_v37 }
 0x388   : > { %v7473_v63 = vpop.f32.mrf.mxu1 }
 0x389   : > { %8684 = vst [vmem:[#allocation9_spill] sm:$0xff] %v7473_v63  ;;  %v3784_v48 = vmax.f32 %v7469_v20, %v7473_v63  ;;  %v2670_v63 = vsub.f32 %v8689_v31, %v2577_v9  ;;  %v3781_v20 = vmax.f32 %v7455_v45, %v7460_v47  ;;  %v2737_v9 = vmul.f32 1.442695, %v2669_v10 }
 0x38a   : > { %2885 = vadd.xlane.f32.xlu0 %v2884_v55  ;;  %v7493_v55 = vpop.eup %5121  ;;  %v3775_v47 = vmax.f32 %v7427_v40, %v7432_v50 }
 0x38b   : > { %3785 = vmax.xlane.f32.xlu1 %v3784_v48  ;;  %8690 = vst [vmem:[#allocation8_spill] sm:$0xff] %v7493_v55  ;;  %v8691_v48 = vld [vmem:[#allocation6_spill] sm:$0xff]  ;;  %v7501_v11 = vpop.eup %5123  ;;  %v2739_v31 = vmul.f32 1.442695, %v2670_v63  ;;  %5139 = vpow2.f32 %v2737_v9  ;;  %v8697_v63 = vld [vmem:[#allocation4_spill] sm:$0xff]  ;;  %v8699_v9 = vld [vmem:[#allocation35_spill] sm:$0xff] }
 0x38c   : > { %v7483_v27 = vpop.xlane.xlu1 %2657  ;;  %v2667_v28 = vsub.f32 %v8691_v48, %v2574_v34  ;;  %8693 = vst [vmem:[#allocation6_spill] sm:$0xff] %v7501_v11  ;;  %v2878_v48 = vadd.f32 %v7493_v55, %v7486_v26  ;;  %v8695_v34 = vld [vmem:[#allocation7_spill] sm:$0xff]  ;;  %v2666_v39 = vsub.f32 %v8697_v63, %v2571_v51  ;;  %v3772_v63 = vmax.f32 %v7413_v16, %v7418_v56  ;;  %v8701_v55 = vld [vmem:[#allocation36_spill] sm:$0xff] }
 0x38d   : > { %v2665_v10 = vsub.f32 %v8695_v34, %v2571_v51  ;;  %5141 = vpow2.f32 %v2739_v31 }
 0x38e   : > { %2882 = vadd.xlane.f32.xlu0 %v2881_v62  ;;  %v7507_v62 = vpop.eup %5125  ;;  %v2731_v51 = vmul.f32 1.442695, %v2666_v39 }
 0x38f   : > { %3782 = vmax.xlane.f32.xlu1 %v3781_v20  ;;  %8694 = vst [vmem:[#allocation3_spill] sm:$0xff] %v7507_v62  ;;  %v2733_v20 = vmul.f32 1.442695, %v2667_v28  ;;  %v7512_v30 = vpop.eup %5127  ;;  %v2875_v28 = vadd.f32 %v7507_v62, %v7501_v11  ;;  %v2729_v13 = vmul.f32 1.442695, %v2665_v10  ;;  %v8703_v10 = vld [vmem:[#allocation37_spill] sm:$0xff] }
 0x390   : > { %v7496_v0 = vpop.xlane.xlu1 %2651  ;;  %v7498_v14 = vpop.xlane.xlu0 %2660  ;;  %8696 = vst [vmem:[#allocation7_spill] sm:$0xff] %v7512_v30  ;;  %v2723_v39 = vsub.f32 %v8703_v10, %v7483_v27  ;;  %v3766_v10 = vmax.f32 %v7381_v22, %v7390_v18 }
 0x391   : > { %5143 = vpow2.f32 %v2733_v20 }
 0x392   : > { %2879 = vadd.xlane.f32.xlu0 %v2878_v48  ;;  %v7519_v48 = vpop.eup %5129  ;;  %5145 = vpow2.f32 %v2735_v19  ;;  %v3769_v19 = vmax.f32 %v7399_v21, %v7404_v53 }
 0x393   : > { %3779 = vmax.xlane.f32.xlu1 %v3778_v61  ;;  %8698 = vst [vmem:[#allocation4_spill] sm:$0xff] %v7519_v48  ;;  %v7524_v34 = vpop.eup %5131  ;;  %v2872_v11 = vadd.f32 %v7519_v48, %v7512_v30  ;;  %5147 = vpow2.f32 %v2729_v13  ;;  %v8707_v48 = vld [vmem:[#allocation39_spill] sm:$0xff] }
 0x394   : > { %v7509_v58 = vpop.xlane.xlu1 %2645  ;;  %v2655_v26 = vpop.xlane.xlu0 %2654  ;;  %8700 = vst [vmem:[#allocation35_spill] sm:$0xff] %v7524_v34  ;;  %5149 = vpow2.f32 %v2731_v51  ;;  %v2725_v51 = vsub.f32 %v8707_v48, %v7498_v14 }
 0x395   : > { %v2721_v31 = vsub.f32 %v8699_v9, %v2655_v26  ;;  %v2722_v50 = vsub.f32 %v8701_v55, %v2655_v26  ;;  %v7531_v20 = vpop.eup %5133  ;;  %v8705_v26 = vld [vmem:[#allocation38_spill] sm:$0xff] }
 0x396   : > { %2876 = vadd.xlane.f32.xlu0 %v2875_v28  ;;  %8702 = vst [vmem:[#allocation36_spill] sm:$0xff] %v7531_v20  ;;  %v7539_v9 = vpop.eup %5135  ;;  %v2724_v55 = vsub.f32 %v8705_v26, %v7483_v27  ;;  %v8709_v27 = vld [vmem:[#allocation40_spill] sm:$0xff]  ;;  %v2849_v48 = vmul.f32 1.442695, %v2725_v51  ;;  %v8714_v51 = vld [vmem:[#allocation42_spill] sm:$0xff] }
 0x397   : > { %3776 = vmax.xlane.f32.xlu1 %v3775_v47  ;;  %v2841_v28 = vmul.f32 1.442695, %v2721_v31  ;;  %8704 = vst [vmem:[#allocation37_spill] sm:$0xff] %v7539_v9  ;;  %v2843_v30 = vmul.f32 1.442695, %v2722_v50  ;;  %v2726_v26 = vsub.f32 %v8709_v27, %v7498_v14 }
 0x398   : > { %v7521_v61 = vpop.xlane.xlu1 %2642  ;;  %v2845_v31 = vmul.f32 1.442695, %v2723_v39  ;;  %v2847_v50 = vmul.f32 1.442695, %v2724_v55  ;;  %v3763_v55 = vmax.f32 %v7373_v2, %v7378_v44 }
 0x399   : > { %5151 = vpow2.f32 %v2841_v28  ;;  %v2851_v14 = vmul.f32 1.442695, %v2726_v26  ;;  %v8715_v26 = vld [vmem:[#allocation34_spill] sm:$0xff] }
 0x39a   : > { %2873 = vadd.xlane.f32.xlu0 %v2872_v11  ;;  %v2869_v11 = vadd.f32 %v7531_v20, %v7524_v34  ;;  %5153 = vpow2.f32 %v2843_v30  ;;  %v2720_v44 = vsub.f32 %v8715_v26, %v7496_v0 }
 0x39b   : > { %3773 = vmax.xlane.f32.xlu1 %v3772_v63  ;;  %v7545_v63 = vpop.eup %5137  ;;  %5155 = vpow2.f32 %v2845_v31 }
 0x39c   : > { %v7533_v47 = vpop.xlane.xlu1 %2639  ;;  %8706 = vst [vmem:[#allocation38_spill] sm:$0xff] %v7545_v63  ;;  %v7553_v62 = vpop.eup %5139  ;;  %5157 = vpow2.f32 %v2847_v50  ;;  %v3760_v50 = vmax.f32 %v7365_v3, %v7370_v17 }
 0x39d   : > { %8708 = vst [vmem:[#allocation39_spill] sm:$0xff] %v7553_v62  ;;  %5159 = vpow2.f32 %v2849_v48 }
 0x39e   : > { %2870 = vadd.xlane.f32.xlu0 %v2869_v11  ;;  %v7559_v11 = vpop.eup %5141  ;;  %5161 = vpow2.f32 %v2851_v14  ;;  %v8718_v14 = vld [vmem:[#allocation32_spill] sm:$0xff] }
 0x39f   : > { %3770 = vmax.xlane.f32.xlu1 %v3769_v19  ;;  %v2866_v19 = vadd.f32 %v7545_v63, %v7539_v9  ;;  %8710 = vst [vmem:[#allocation40_spill] sm:$0xff] %v7559_v11  ;;  %v7563_v39 = vpop.eup %5143  ;;  %v2863_v30 = vadd.f32 %v7559_v11, %v7553_v62  ;;  %v8713_v9 = vld [vmem:[#allocation41_spill] sm:$0xff] }
 0x3a0   : > { %v7547_v13 = vpop.xlane.xlu1 %2636  ;;  %8711 = vst [vmem:[#allocation83_spill] sm:$0xff] %v7563_v39  ;;  %v7565_v28 = vpop.eup %5145 }
 0x3a1   : > { %v7575_v20 = vpop.eup %5147 }
 0x3a2   : > { %2867 = vadd.xlane.f32.xlu0 %v2866_v19  ;;  %v7583_v62 = vpop.eup %5149 }
 0x3a3   : > { %3767 = vmax.xlane.f32.xlu1 %v3766_v10  ;;  %v8712_v10 = vld [vmem:[#allocation33_spill] sm:$0xff] }
 0x3a4   : > { %v7561_v34 = vpop.xlane.xlu1 %2633  ;;  %v2719_v19 = vsub.f32 %v8712_v10, %v7496_v0  ;;  %v2839_v0 = vmul.f32 1.442695, %v2720_v44  ;;  %v8722_v44 = vld [vmem:[#allocation30_spill] sm:$0xff] }
 0x3a6   : > { %2864 = vadd.xlane.f32.xlu0 %v2863_v30  ;;  %v2649_v30 = vpop.xlane.xlu0 %2648  ;;  %v7588_v17 = vpop.eup %5151 }
 0x3a7   : > { %3764 = vmax.xlane.f32.xlu1 %v3763_v55  ;;  %v2860_v55 = vadd.f32 %v7565_v28, %v7563_v39  ;;  %8717 = vst [vmem:[#allocation33_spill] sm:$0xff] %v7588_v17  ;;  %v2718_v26 = vsub.f32 %v8718_v14, %v2649_v30  ;;  %v2857_v39 = vadd.f32 %v7583_v62, %v7575_v20 }
 0x3a8   : > { %v2664_v27 = vpop.xlane.xlu1 %2663 }
 0x3a9   : > { %v2727_v31 = vsub.f32 %v8713_v9, %v2664_v27  ;;  %v2728_v63 = vsub.f32 %v8714_v51, %v2664_v27  ;;  %v3757_v9 = vmax.f32 %v7357_v15, %v7362_v24  ;;  %v2837_v27 = vmul.f32 1.442695, %v2719_v19  ;;  %v8716_v51 = vld [vmem:[#allocation31_spill] sm:$0xff]  ;;  %v8720_v19 = vld [vmem:[#allocation29_spill] sm:$0xff] }
 0x3aa   : > { %2861 = vadd.xlane.f32.xlu0 %v2860_v55  ;;  %v2717_v11 = vsub.f32 %v8716_v51, %v2649_v30  ;;  %v2716_v30 = vsub.f32 %v8722_v44, %v7509_v58 }
 0x3ab   : > { %v2853_v48 = vmul.f32 1.442695, %v2727_v31  ;;  %v2855_v10 = vmul.f32 1.442695, %v2728_v63  ;;  %3761 = vmax.xlane.f32.xlu1 %v3760_v50  ;;  %v7593_v31 = vpop.eup %5153  ;;  %v3754_v63 = vmax.f32 %v7349_v41, %v7354_v54  ;;  %v2715_v50 = vsub.f32 %v8720_v19, %v7509_v58  ;;  %v8726_v58 = vld [vmem:[#allocation28_spill] sm:$0xff] }
 0x3ac   : > { %8719 = vst [vmem:[#allocation41_spill] sm:$0xff] %v7593_v31  ;;  %v2833_v55 = vmul.f32 1.442695, %v2717_v11  ;;  %v2941_v51 = vadd.f32 %v7593_v31, %v7588_v17  ;;  %v8724_v11 = vld [vmem:[#allocation27_spill] sm:$0xff]  ;;  %v2831_v19 = vmul.f32 1.442695, %v2716_v30 }
 0x3ad   : > { %5163 = vpow2.f32 %v2853_v48  ;;  %v7599_v48 = vpop.eup %5155  ;;  %v2713_v14 = vsub.f32 %v8724_v11, %v7521_v61  ;;  %v8728_v11 = vld [vmem:[#allocation25_spill] sm:$0xff] }
 0x3ae   : > { %5165 = vpow2.f32 %v2855_v10  ;;  %2858 = vadd.xlane.f32.xlu0 %v2857_v39  ;;  %8721 = vst [vmem:[#allocation42_spill] sm:$0xff] %v7599_v48  ;;  %v2835_v10 = vmul.f32 1.442695, %v2718_v26  ;;  %v7605_v39 = vpop.eup %5157  ;;  %v2714_v26 = vsub.f32 %v8726_v58, %v7521_v61  ;;  %v8729_v61 = vld [vmem:[#allocation26_spill] sm:$0xff] }
 0x3af   : > { %3758 = vmax.xlane.f32.xlu1 %v3757_v9  ;;  %5167 = vpow2.f32 %v2837_v27  ;;  %8723 = vst [vmem:[#allocation34_spill] sm:$0xff] %v7605_v39  ;;  %v3751_v9 = vmax.f32 %v7339_v8, %v7345_v1  ;;  %v2829_v27 = vmul.f32 1.442695, %v2715_v50  ;;  %v2944_v44 = vadd.f32 %v7605_v39, %v7599_v48  ;;  %v8734_v39 = vld [vmem:[#allocation21_spill] sm:$0xff] }
 0x3b0   : > { %5169 = vpow2.f32 %v2839_v0  ;;  %v7611_v0 = vpop.eup %5159  ;;  %v2825_v50 = vmul.f32 1.442695, %v2713_v14  ;;  %v2827_v30 = vmul.f32 1.442695, %v2714_v26  ;;  %v8730_v14 = vld [vmem:[#allocation23_spill] sm:$0xff] }
 0x3b1   : > { %5171 = vpow2.f32 %v2833_v55  ;;  %8725 = vst [vmem:[#allocation31_spill] sm:$0xff] %v7611_v0  ;;  %v2711_v55 = vsub.f32 %v8728_v11, %v7533_v47 }
 0x3b2   : > { %2942 = vadd.xlane.f32.xlu0 %v2941_v51  ;;  %5173 = vpow2.f32 %v2835_v10  ;;  %v7617_v51 = vpop.eup %5161  ;;  %v2712_v10 = vsub.f32 %v8729_v61, %v7533_v47  ;;  %v8732_v47 = vld [vmem:[#allocation24_spill] sm:$0xff] }
 0x3b3   : > { %3755 = vmax.xlane.f32.xlu1 %v3754_v63  ;;  %8727 = vst [vmem:[#allocation32_spill] sm:$0xff] %v7617_v51  ;;  %v2631_v63 = vpop.xlane.xlu1 %2630  ;;  %5175 = vpow2.f32 %v2829_v27  ;;  %v2947_v58 = vadd.f32 %v7617_v51, %v7611_v0  ;;  %v2821_v27 = vmul.f32 1.442695, %v2711_v55  ;;  %v2710_v26 = vsub.f32 %v8732_v47, %v7547_v13  ;;  %v8736_v0 = vld [vmem:[#allocation22_spill] sm:$0xff] }
 0x3b4   : > { %5177 = vpow2.f32 %v2831_v19  ;;  %v2823_v19 = vmul.f32 1.442695, %v2712_v10 }
 0x3b5   : > { %5179 = vpow2.f32 %v2825_v50  ;;  %v2707_v50 = vsub.f32 %v8734_v39, %v7561_v34 }
 0x3b6   : > { %2945 = vadd.xlane.f32.xlu0 %v2944_v44  ;;  %v2709_v44 = vsub.f32 %v8730_v14, %v7547_v13  ;;  %5181 = vpow2.f32 %v2827_v30  ;;  %v2819_v14 = vmul.f32 1.442695, %v2710_v26  ;;  %v2708_v30 = vsub.f32 %v8736_v0, %v7561_v34  ;;  %v1862_v0 = vld [vmem:[%s8437_s7] sm:$0xff] }
 0x3b7   : > { %3752 = vmax.xlane.f32.xlu1 %v3751_v9  ;;  %v2628_v61 = vpop.xlane.xlu1 %2627  ;;  %5183 = vpow2.f32 %v2821_v27  ;;  %v8738_v27 = vld [vmem:[#allocation19_spill] sm:$0xff] }
 0x3b8   : > { %5185 = vpow2.f32 %v2823_v19  ;;  %v2815_v39 = vmul.f32 1.442695, %v2708_v30  ;;  %v8740_v19 = vld [vmem:[#allocation20_spill] sm:$0xff] }
 0x3b9   : > { %v2706_v26 = vsub.f32 %v8740_v19, %v2631_v63 }
 0x3ba   : > { %v7621_v17 = vpop.eup %5163  ;;  %2948 = vadd.xlane.f32.xlu0 %v2947_v58  ;;  %v2817_v58 = vmul.f32 1.442695, %v2709_v44  ;;  %v2705_v44 = vsub.f32 %v8738_v27, %v2631_v63  ;;  %v8744_v63 = vld [vmem:[#allocation18_spill] sm:$0xff] }
 0x3bb   : > { %v7627_v31 = vpop.eup %5165  ;;  %v2625_v47 = vpop.xlane.xlu1 %2624  ;;  %v2704_v30 = vsub.f32 %v8744_v63, %v2628_v61 }
 0x3bc   : > { %v2950_v9 = vadd.f32 %v7627_v31, %v7621_v17  ;;  %v7633_v11 = vpop.eup %5167  ;;  %5187 = vpow2.f32 %v2817_v58  ;;  %v2809_v58 = vmul.f32 1.442695, %v2705_v44 }
 0x3bd   : > { %8731 = vst [vmem:[#allocation29_spill] sm:$0xff] %v7633_v11  ;;  %v7637_v48 = vpop.eup %5169  ;;  %5189 = vpow2.f32 %v2819_v14  ;;  %v2811_v14 = vmul.f32 1.442695, %v2706_v26 }
 0x3be   : > { %8733 = vst [vmem:[#allocation30_spill] sm:$0xff] %v7637_v48  ;;  %2951 = vadd.xlane.f32.xlu0 %v2950_v9  ;;  %v7641_v55 = vpop.eup %5171  ;;  %v2938_v10 = vadd.f32 %v7637_v48, %v7633_v11  ;;  %v2813_v9 = vmul.f32 1.442695, %v2707_v50  ;;  %v8742_v50 = vld [vmem:[#allocation17_spill] sm:$0xff] }
 0x3bf   : > { %8735 = vst [vmem:[#allocation27_spill] sm:$0xff] %v7641_v55  ;;  %v7647_v13 = vpop.eup %5173  ;;  %v2622_v19 = vpop.xlane.xlu1 %2621 }
 0x3c0   : > { %8737 = vst [vmem:[#allocation28_spill] sm:$0xff] %v7647_v13  ;;  %v7650_v51 = vpop.eup %5175  ;;  %v2935_v34 = vadd.f32 %v7647_v13, %v7641_v55  ;;  %5191 = vpow2.f32 %v2813_v9  ;;  %v8745_v9 = vld [vmem:[#allocation15_spill] sm:$0xff] }
 0x3c1   : > { %8739 = vst [vmem:[#allocation25_spill] sm:$0xff] %v7650_v51  ;;  %v7658_v11 = vpop.eup %5177  ;;  %5193 = vpow2.f32 %v2815_v39  ;;  %v2701_v44 = vsub.f32 %v8745_v9, %v2625_v47 }
 0x3c2   : > { %2939 = vadd.xlane.f32.xlu0 %v2938_v10  ;;  %8741 = vst [vmem:[#allocation26_spill] sm:$0xff] %v7658_v11  ;;  %v2703_v10 = vsub.f32 %v8742_v50, %v2628_v61  ;;  %v7661_v27 = vpop.eup %5179  ;;  %v2932_v55 = vadd.f32 %v7658_v11, %v7650_v51  ;;  %5195 = vpow2.f32 %v2809_v58  ;;  %v8747_v50 = vld [vmem:[#allocation16_spill] sm:$0xff]  ;;  %v8751_v11 = vld [vmem:[#allocation14_spill] sm:$0xff] }
 0x3c3   : > { %8743 = vst [vmem:[#allocation23_spill] sm:$0xff] %v7661_v27  ;;  %v7666_v13 = vpop.eup %5181  ;;  %5197 = vpow2.f32 %v2811_v14  ;;  %v2702_v39 = vsub.f32 %v8747_v50, %v2625_v47  ;;  %v2619_v63 = vpop.xlane.xlu1 %2618  ;;  %v2801_v51 = vmul.f32 1.442695, %v2701_v44  ;;  %v2700_v14 = vsub.f32 %v8751_v11, %v2622_v19 }
 0x3c4   : > { %v7669_v48 = vpop.eup %5183  ;;  %v2929_v61 = vadd.f32 %v7666_v13, %v7661_v27 }
 0x3c5   : > { %8746 = vst [vmem:[#allocation24_spill] sm:$0xff] %v7669_v48  ;;  %v7674_v26 = vpop.eup %5185  ;;  %v2803_v9 = vmul.f32 1.442695, %v2702_v39 }
 0x3c6   : > { %2936 = vadd.xlane.f32.xlu0 %v2935_v34  ;;  %v2805_v34 = vmul.f32 1.442695, %v2703_v10  ;;  %8748 = vst [vmem:[#allocation21_spill] sm:$0xff] %v7674_v26  ;;  %v2926_v47 = vadd.f32 %v7674_v26, %v7669_v48 }
 0x3c8   : > { %1880 = vperm.xlu1 %5085, %v1862_v0   ;;  %v2807_v0 = vmul.f32 1.442695, %v2704_v30  ;;  %5199 = vpow2.f32 %v2805_v34  ;;  %v8753_v34 = vld [vmem:[#allocation11_spill] sm:$0xff] }
 0x3c9   : > { %v7677_v10 = vpop.eup %5187  ;;  %v2697_v44 = vsub.f32 %v8753_v34, %v2619_v63 }
 0x3ca   : > { %2933 = vadd.xlane.f32.xlu0 %v2932_v55  ;;  %v8749_v55 = vld [vmem:[#allocation13_spill] sm:$0xff]  ;;  %8750 = vst [vmem:[#allocation22_spill] sm:$0xff] %v7677_v10  ;;  %5201 = vpow2.f32 %v2807_v0  ;;  %v7682_v30 = vpop.eup %5189  ;;  %v8755_v0 = vld [vmem:[#allocation12_spill] sm:$0xff] }
 0x3cb   : > { %v2699_v58 = vsub.f32 %v8749_v55, %v2622_v19  ;;  %8752 = vst [vmem:[#allocation19_spill] sm:$0xff] %v7682_v30  ;;  %5203 = vpow2.f32 %v2801_v51  ;;  %v2799_v55 = vmul.f32 1.442695, %v2700_v14  ;;  %v2698_v39 = vsub.f32 %v8755_v0, %v2619_v63 }
 0x3cc   : > { %5205 = vpow2.f32 %v2803_v9  ;;  %v2923_v11 = vadd.f32 %v7682_v30, %v7677_v10 }
 0x3cd   : > { %v7687_v27 = vpop.eup %5191  ;;  %v2795_v51 = vmul.f32 1.442695, %v2698_v39 }
 0x3ce   : > { %2930 = vadd.xlane.f32.xlu0 %v2929_v61  ;;  %v2797_v61 = vmul.f32 1.442695, %v2699_v58  ;;  %8754 = vst [vmem:[#allocation20_spill] sm:$0xff] %v7687_v27  ;;  %v7692_v19 = vpop.eup %5193 }
 0x3cf   : > { %8756 = vst [vmem:[#allocation17_spill] sm:$0xff] %v7692_v19  ;;  %v7694_v26 = vpop.eup %5195  ;;  %v2920_v58 = vadd.f32 %v7692_v19, %v7687_v27  ;;  %v8765_v19 = vld [vmem:[#allocation51_spill] sm:$0xff] }
 0x3d0   : > { %5207 = vpow2.f32 %v2797_v61  ;;  %8757 = vst [vmem:[#allocation18_spill] sm:$0xff] %v7694_v26  ;;  %v7698_v9 = vpop.eup %5197 }
 0x3d1   : > { %5209 = vpow2.f32 %v2799_v55  ;;  %8758 = vst [vmem:[#allocation15_spill] sm:$0xff] %v7698_v9  ;;  %v2917_v61 = vadd.f32 %v7698_v9, %v7694_v26  ;;  %v1847_v55 = vld [vmem:[%s8436_s6 + $0x8] sm:$0xff] }
 0x3d2   : > { %2927 = vadd.xlane.f32.xlu0 %v2926_v47  ;;  %v2793_v47 = vmul.f32 1.442695, %v2697_v44  ;;  %4628 = vmatprep.mubr.f32.mxu0 %v1847_v55 }
 0x3d3   : > { %4629 = vmatmul.mubr.f32.gmra.mxu0 %v1847_v55 }
 0x3d4   : > { %v7684_v50 = vpop.xlane.xlu1 %3737  ;;  %5211 = vpow2.f32 %v2793_v47 }
 0x3d5   : > { %v7700_v14 = vpop.eup %5199  ;;  %5213 = vpow2.f32 %v2795_v51 }
 0x3d6   : > { %2924 = vadd.xlane.f32.xlu0 %v2923_v11  ;;  %8759 = vst [vmem:[#allocation16_spill] sm:$0xff] %v7700_v14  ;;  %v8761_v11 = vld [vmem:[#allocation49_spill] sm:$0xff] }
 0x3d7   : > { %v7705_v44 = vpop.eup %5201 }
 0x3d8   : > { %v3735_v48 = vpop.xlane.xlu1 %3734  ;;  %8760 = vst [vmem:[#allocation13_spill] sm:$0xff] %v7705_v44  ;;  %v2914_v26 = vadd.f32 %v7705_v44, %v7700_v14  ;;  %v8771_v44 = vld [vmem:[#allocation47_spill] sm:$0xff] }
 0x3d9   : > { %v3815_v10 = vsub.f32 %v8765_v19, %v3735_v48 }
 0x3da   : > { %2921 = vadd.xlane.f32.xlu0 %v2920_v58  ;;  %v8762_v58 = vld [vmem:[#allocation50_spill] sm:$0xff] }
 0x3db   : > { %v3907_v14 = vmul.f32 1.442695, %v3815_v10 }
 0x3dc   : > { %v3732_v63 = vpop.xlane.xlu1 %3731 }
 0x3dd   : > { %v3813_v34 = vsub.f32 %v7298_v60, %v3732_v63  ;;  %v3814_v0 = vsub.f32 %v7300_v46, %v3732_v63  ;;  %v7713_v60 = vpop.eup %5203  ;;  %v1848_v63 = vld [vmem:[%s8436_s6 + $0x10] sm:$0xff] }
 0x3de   : > { %2918 = vadd.xlane.f32.xlu0 %v2917_v61  ;;  %8763 = vst [vmem:[#allocation14_spill] sm:$0xff] %v7713_v60  ;;  %v7717_v9 = vpop.eup %5205  ;;  %v8766_v61 = vld [vmem:[#allocation52_spill] sm:$0xff]  ;;  %4630 = vmatprep.mubr.f32.mxu0 %v1848_v63 }
 0x3df   : > { %v3903_v27 = vmul.f32 1.442695, %v3813_v34  ;;  %8764 = vst [vmem:[#allocation11_spill] sm:$0xff] %v7717_v9  ;;  %4631 = vmatmul.mubr.f32.gmra.mxu0 %v1848_v63  ;;  %v7724_v34 = vpop.eup %5207  ;;  %v2911_v19 = vadd.f32 %v7717_v9, %v7713_v60 }
 0x3e0   : > { %v3729_v39 = vpop.xlane.xlu1 %3728 }
 0x3e1   : > { %v3811_v47 = vsub.f32 %v8761_v11, %v3729_v39  ;;  %v3812_v51 = vsub.f32 %v8762_v58, %v3729_v39  ;;  %v3816_v11 = vsub.f32 %v8766_v61, %v3735_v48  ;;  %v3905_v39 = vmul.f32 1.442695, %v3814_v0  ;;  %v8767_v58 = vld [vmem:[#allocation53_spill] sm:$0xff]  ;;  %v1849_v48 = vld [vmem:[%s8436_s6 + $0x18] sm:$0xff] }
 0x3e2   : > { %2915 = vadd.xlane.f32.xlu0 %v2914_v26  ;;  %v8768_v26 = vld [vmem:[#allocation54_spill] sm:$0xff]  ;;  %4632 = vmatprep.mubr.f32.mxu0 %v1849_v48 }
 0x3e3   : > { %v3899_v30 = vmul.f32 1.442695, %v3811_v47  ;;  %v3901_v46 = vmul.f32 1.442695, %v3812_v51  ;;  %v7728_v47 = vpop.eup %5209  ;;  %v3817_v51 = vsub.f32 %v8767_v58, %v7684_v50  ;;  %v3909_v0 = vmul.f32 1.442695, %v3816_v11  ;;  %4633 = vmatmul.mubr.f32.gmra.mxu0 %v1849_v48 }
 0x3e4   : > { %v3726_v55 = vpop.xlane.xlu1 %3725  ;;  %v7737_v63 = vpop.eup %5211  ;;  %v2908_v61 = vadd.f32 %v7728_v47, %v7724_v34  ;;  %v8770_v58 = vld [vmem:[#allocation57_spill] sm:$0xff] }
 0x3e5   : > { %5215 = vpow2.f32 %v3899_v30  ;;  %v3818_v30 = vsub.f32 %v8768_v26, %v7684_v50  ;;  %v7741_v10 = vpop.eup %5213  ;;  %v3911_v9 = vmul.f32 1.442695, %v3817_v51  ;;  %v3809_v50 = vsub.f32 %v8771_v44, %v3726_v55  ;;  %v1850_v11 = vld [vmem:[%s8436_s6 + $0x20] sm:$0xff] }
 0x3e6   : > { %5217 = vpow2.f32 %v3901_v46  ;;  %2912 = vadd.xlane.f32.xlu0 %v2911_v19  ;;  %v8772_v19 = vld [vmem:[#allocation48_spill] sm:$0xff]  ;;  %4634 = vmatprep.mubr.f32.mxu0 %v1850_v11  ;;  %v8773_v51 = vld [vmem:[#allocation45_spill] sm:$0xff] }
 0x3e7   : > { %5219 = vpow2.f32 %v3903_v27  ;;  %v8769_v27 = vld [vmem:[#allocation58_spill] sm:$0xff]  ;;  %v3810_v48 = vsub.f32 %v8772_v19, %v3726_v55  ;;  %4635 = vmatmul.mubr.f32.gmra.mxu0 %v1850_v11 }
 0x3e8   : > { %5221 = vpow2.f32 %v3905_v39  ;;  %v3723_v46 = vpop.xlane.xlu1 %3722  ;;  %v3742_v60 = vmax.f32 %v8770_v58, %v8769_v27  ;;  %v3913_v39 = vmul.f32 1.442695, %v3818_v30  ;;  %v2905_v27 = vadd.f32 %v7741_v10, %v7737_v63  ;;  %v1851_v58 = vld [vmem:[%s8436_s6 + $0x28] sm:$0xff] }
 0x3e9   : > { %5223 = vpow2.f32 %v3907_v14  ;;  %v3895_v14 = vmul.f32 1.442695, %v3809_v50  ;;  %v3807_v44 = vsub.f32 %v8773_v51, %v3723_v46  ;;  %v3897_v30 = vmul.f32 1.442695, %v3810_v48  ;;  %4636 = vmatprep.mubr.f32.mxu0 %v1851_v58  ;;  %v1852_v50 = vld [vmem:[%s8436_s6 + $0x30] sm:$0xff] }
 0x3ea   : > { %5225 = vpow2.f32 %v3909_v0  ;;  %2909 = vadd.xlane.f32.xlu0 %v2908_v61  ;;  %v8774_v0 = vld [vmem:[#allocation46_spill] sm:$0xff] }
 0x3eb   : > { %5227 = vpow2.f32 %v3911_v9  ;;  %v3808_v55 = vsub.f32 %v8774_v0, %v3723_v46  ;;  %4637 = vmatmul.mubr.f32.gmra.mxu0 %v1851_v58  ;;  %v3891_v9 = vmul.f32 1.442695, %v3807_v44 }
 0x3ec   : > { %v3720_v26 = vpop.xlane.xlu1 %3719  ;;  %3743 = vmax.xlane.f32.xlu1 %v3742_v60  ;;  %5229 = vpow2.f32 %v3913_v39  ;;  %4638 = vmatprep.mubr.f32.mxu0 %v1852_v50 }
 0x3ed   : > { %5231 = vpow2.f32 %v3895_v14  ;;  %v3893_v39 = vmul.f32 1.442695, %v3808_v55  ;;  %v3805_v58 = vsub.f32 %v7280_v5, %v3720_v26  ;;  %v1853_v14 = vld [vmem:[%s8436_s6 + $0x38] sm:$0xff]  ;;  %v3806_v44 = vsub.f32 %v7282_v23, %v3720_v26 }
 0x3ee   : > { %2906 = vadd.xlane.f32.xlu0 %v2905_v27  ;;  %5233 = vpow2.f32 %v3897_v30 }
 0x3ef   : > { %4639 = vmatmul.mubr.f32.gmra.mxu0 %v1852_v50  ;;  %5235 = vpow2.f32 %v3891_v9  ;;  %v3887_v5 = vmul.f32 1.442695, %v3805_v58  ;;  %v1854_v9 = vld [vmem:[%s8436_s6 + $0x40] sm:$0xff] }
 0x3f0   : > { %v3717_v61 = vpop.xlane.xlu1 %3716  ;;  %5237 = vpow2.f32 %v3893_v39  ;;  %4640 = vmatprep.mubr.f32.mxu0 %v1853_v14  ;;  %v3889_v39 = vmul.f32 1.442695, %v3806_v44 }
 0x3f1   : > { %5239 = vpow2.f32 %v3887_v5  ;;  %v3803_v58 = vsub.f32 %v7274_v7, %v3717_v61 }
 0x3f2   : > { %v7757_v60 = vpop.eup %5215  ;;  %5241 = vpow2.f32 %v3889_v39  ;;  %v1856_v39 = vld [vmem:[%s8436_s6 + $0x50] sm:$0xff] }
 0x3f3   : > { %8775 = vst [vmem:[#allocation12_spill] sm:$0xff] %v7757_v60  ;;  %v7759_v11 = vpop.eup %5217  ;;  %4641 = vmatmul.mubr.f32.gmra.mxu0 %v1853_v14  ;;  %v1855_v14 = vld [vmem:[%s8436_s6 + $0x48] sm:$0xff] }
 0x3f4   : > { %8776 = vst [vmem:[#allocation49_spill] sm:$0xff] %v7759_v11  ;;  %v7764_v19 = vpop.eup %5219  ;;  %v3714_v48 = vpop.xlane.xlu1 %3713  ;;  %v4015_v46 = vadd.f32 %v7759_v11, %v7757_v60  ;;  %4642 = vmatprep.mubr.f32.mxu0 %v1854_v9 }
 0x3f5   : > { %8777 = vst [vmem:[#allocation50_spill] sm:$0xff] %v7764_v19  ;;  %v7768_v27 = vpop.eup %5221  ;;  %v3801_v5 = vsub.f32 %v7268_v33, %v3714_v48 }
 0x3f6   : > { %8778 = vst [vmem:[#allocation51_spill] sm:$0xff] %v7768_v27  ;;  %4016 = vadd.xlane.f32.xlu0 %v4015_v46  ;;  %v7774_v51 = vpop.eup %5223  ;;  %v4018_v0 = vadd.f32 %v7768_v27, %v7764_v19 }
 0x3f7   : > { %8779 = vst [vmem:[#allocation52_spill] sm:$0xff] %v7774_v51  ;;  %v7781_v55 = vpop.eup %5225  ;;  %4643 = vmatmul.mubr.f32.gmra.mxu0 %v1854_v9 }
 0x3f8   : > { %v7777_v30 = vpop.xlane.xlu1 %3710  ;;  %8780 = vst [vmem:[#allocation53_spill] sm:$0xff] %v7781_v55  ;;  %v7786_v50 = vpop.eup %5227  ;;  %v4021_v23 = vadd.f32 %v7781_v55, %v7774_v51  ;;  %4644 = vmatprep.mubr.f32.mxu0 %v1855_v14 }
 0x3f9   : > { %v7792_v26 = vpop.eup %5229 }
 0x3fa   : > { %4019 = vadd.xlane.f32.xlu0 %v4018_v0  ;;  %v7800_v44 = vpop.eup %5231  ;;  %v3804_v0 = vsub.f32 %v7276_v35, %v3717_v61  ;;  %v4024_v19 = vadd.f32 %v7792_v26, %v7786_v50  ;;  %v3802_v61 = vsub.f32 %v7270_v49, %v3714_v48 }
 0x3fb   : > { %v7794_v60 = vpop.xlane.xlu0 %2894  ;;  %8781 = vst [vmem:[#allocation54_spill] sm:$0xff] %v7800_v44  ;;  %v7807_v9 = vpop.eup %5233  ;;  %4645 = vmatmul.mubr.f32.gmra.mxu0 %v1855_v14  ;;  %v3879_v14 = vmul.f32 1.442695, %v3801_v5  ;;  %v3799_v5 = vsub.f32 %v7262_v42, %v7777_v30 }
 0x3fc   : > { %v7788_v46 = vpop.xlane.xlu1 %3707  ;;  %v7813_v27 = vpop.eup %5235  ;;  %v3885_v35 = vmul.f32 1.442695, %v3804_v0  ;;  %v4012_v55 = vadd.f32 %v7807_v9, %v7800_v44  ;;  %4646 = vmatprep.mubr.f32.mxu0 %v1856_v39  ;;  %v3881_v0 = vmul.f32 1.442695, %v3802_v61  ;;  %v8786_v61 = vld [vmem:[#allocation61_spill] sm:$0xff] }
 0x3fd   : > { %8782 = vst [vmem:[#allocation47_spill] sm:$0xff] %v7813_v27  ;;  %v7820_v33 = vpop.eup %5237  ;;  %v3797_v42 = vsub.f32 %v7256_v59, %v7788_v46  ;;  %v1859_v59 = vld [vmem:[%s8436_s6 + $0x68] sm:$0xff] }
 0x3fe   : > { %4022 = vadd.xlane.f32.xlu0 %v4021_v23  ;;  %v3883_v23 = vmul.f32 1.442695, %v3803_v58  ;;  %8783 = vst [vmem:[#allocation48_spill] sm:$0xff] %v7820_v33  ;;  %v1857_v58 = vld [vmem:[%s8436_s6 + $0x58] sm:$0xff]  ;;  %v4009_v48 = vadd.f32 %v7820_v33, %v7813_v27 }
 0x3ff   : > { %v2898_v7 = vpop.xlane.xlu0 %2897  ;;  %4647 = vmatmul.mubr.f32.gmra.mxu0 %v1856_v39  ;;  %v7836_v39 = vpop.eup %5239 }
 0x400   : > { %v7803_v11 = vpop.xlane.xlu1 %3704  ;;  %5243 = vpow2.f32 %v3883_v23  ;;  %4648 = vmatprep.mubr.f32.mxu0 %v1857_v58  ;;  %v1858_v23 = vld [vmem:[%s8436_s6 + $0x60] sm:$0xff]  ;;  %8784 = vst [vmem:[#allocation45_spill] sm:$0xff] %v7836_v39 }
 0x401   : > { %5245 = vpow2.f32 %v3885_v35  ;;  %v8785_v35 = vld [vmem:[#allocation62_spill] sm:$0xff]  ;;  %v3795_v27 = vsub.f32 %v7250_v38, %v7803_v11  ;;  %v3796_v33 = vsub.f32 %v7252_v52, %v7803_v11  ;;  %v1860_v52 = vld [vmem:[%s8436_s6 + $0x70] sm:$0xff] }
 0x402   : > { %4025 = vadd.xlane.f32.xlu0 %v4024_v19  ;;  %5247 = vpow2.f32 %v3879_v14  ;;  %v3748_v14 = vmax.f32 %v8786_v61, %v8785_v35 }
 0x403   : > { %v2901_v19 = vpop.xlane.xlu0 %2900  ;;  %4649 = vmatmul.mubr.f32.gmra.mxu0 %v1857_v58 }
 0x404   : > { %v7816_v51 = vpop.xlane.xlu1 %3701  ;;  %5249 = vrcp.f32 %v2901_v19  ;;  %4650 = vmatprep.mubr.f32.mxu0 %v1858_v23 }
 0x405   : > { %v3793_v38 = vsub.f32 %v7244_v36, %v7816_v51  ;;  %v3869_v36 = vmul.f32 1.442695, %v3796_v33 }
 0x406   : > { %4013 = vadd.xlane.f32.xlu0 %v4012_v55  ;;  %v3800_v55 = vsub.f32 %v7264_v12, %v7777_v30  ;;  %v7844_v12 = vpop.eup %5241  ;;  %v3875_v30 = vmul.f32 1.442695, %v3799_v5 }
 0x407   : > { %v2904_v44 = vpop.xlane.xlu0 %2903  ;;  %8787 = vst [vmem:[#allocation46_spill] sm:$0xff] %v7844_v12  ;;  %4651 = vmatmul.mubr.f32.gmra.mxu0 %v1858_v23  ;;  %v3794_v23 = vsub.f32 %v7246_v25, %v7816_v51  ;;  %v3863_v25 = vmul.f32 1.442695, %v3793_v38 }
 0x408   : > { %v7825_v49 = vpop.xlane.xlu1 %3698  ;;  %5251 = vrcp.f32 %v2904_v44  ;;  %v3798_v44 = vsub.f32 %v7258_v6, %v7788_v46  ;;  %v4006_v6 = vadd.f32 %v7844_v12, %v7836_v39  ;;  %4652 = vmatprep.mubr.f32.mxu0 %v1859_v59 }
 0x409   : > { %5253 = vpow2.f32 %v3881_v0  ;;  %v3871_v0 = vmul.f32 1.442695, %v3797_v42  ;;  %v8790_v42 = vld [vmem:[#allocation59_spill] sm:$0xff] }
 0x40a   : > { %4010 = vadd.xlane.f32.xlu0 %v4009_v48  ;;  %v3877_v48 = vmul.f32 1.442695, %v3800_v55  ;;  %5255 = vrcp.f32 %v2898_v7  ;;  %v3873_v46 = vmul.f32 1.442695, %v3798_v44  ;;  %v3867_v55 = vmul.f32 1.442695, %v3795_v27 }
 0x40b   : > { %v2892_v19 = vpop.xlane.xlu0 %2891  ;;  %5257 = vpow2.f32 %v3875_v30  ;;  %4653 = vmatmul.mubr.f32.gmra.mxu0 %v1859_v59  ;;  %v3791_v27 = vsub.f32 %v7238_v32, %v7825_v49  ;;  %v1861_v32 = vld [vmem:[%s8436_s6 + $0x78] sm:$0xff] }
 0x40c   : > { %v7842_v58 = vpop.xlane.xlu1 %3695  ;;  %5259 = vpow2.f32 %v3877_v48  ;;  %4654 = vmatprep.mubr.f32.mxu0 %v1860_v52 }
 0x40d   : > { %5261 = vrcp.f32 %v7794_v60  ;;  %v7867_v11 = vpop.eup %5243  ;;  %v3792_v60 = vsub.f32 %v7240_v4, %v7825_v49  ;;  %v3789_v4 = vsub.f32 %v7232_v57, %v7842_v58  ;;  %v8795_v57 = vld [vmem:[#allocation70_spill] sm:$0xff] }
 0x40e   : > { %3749 = vmax.xlane.f32.xlu0 %v3748_v14  ;;  %8788 = vst [vmem:[#allocation62_spill] sm:$0xff] %v7867_v11  ;;  %v8789_v14 = vld [vmem:[#allocation60_spill] sm:$0xff]  ;;  %5263 = vpow2.f32 %v3871_v0  ;;  %v7873_v44 = vpop.eup %5245  ;;  %v3865_v0 = vmul.f32 1.442695, %v3794_v23 }
 0x40f   : > { %v2889_v7 = vpop.xlane.xlu0 %2888  ;;  %v3745_v30 = vmax.f32 %v8790_v42, %v8789_v14  ;;  %5265 = vpow2.f32 %v3873_v46  ;;  %4655 = vmatmul.mubr.f32.gmra.mxu0 %v1860_v52  ;;  %v7879_v59 = vpop.eup %5247  ;;  %v3859_v46 = vmul.f32 1.442695, %v3791_v27  ;;  %v4003_v49 = vadd.f32 %v7873_v44, %v7867_v11 }
 0x410   : > { %v7855_v5 = vpop.xlane.xlu1 %3692  ;;  %8791 = vst [vmem:[#allocation61_spill] sm:$0xff] %v7879_v59  ;;  %5267 = vpow2.f32 %v3867_v55  ;;  %4656 = vmatprep.mubr.f32.mxu0 %v1861_v32  ;;  %v3861_v55 = vmul.f32 1.442695, %v3792_v60  ;;  %v3855_v60 = vmul.f32 1.442695, %v3789_v4  ;;  %v8799_v4 = vld [vmem:[#allocation56_spill] sm:$0xff] }
 0x411   : > { %v5250_v33 = vpop.eup %5249  ;;  %5269 = vrcp.f32 %v2892_v19  ;;  %v8793_v19 = vld [vmem:[#allocation72_spill] sm:$0xff] }
 0x412   : > { %4007 = vadd.xlane.f32.xlu0 %v4006_v6  ;;  %5271 = vpow2.f32 %v3869_v36  ;;  %v3014_v36 = vmul.f32 %v5250_v33, %v8795_v57 }
 0x413   : > { %v2886_v51 = vpop.xlane.xlu0 %2885  ;;  %5273 = vpow2.f32 %v3863_v25  ;;  %4657 = vmatmul.mubr.f32.gmra.mxu0 %v1861_v32  ;;  %v3790_v25 = vsub.f32 %v7234_v43, %v7842_v58 }
 0x414   : > { %v7877_v48 = vpop.xlane.xlu1 %3785  ;;  %5275 = vpow2.f32 %v3865_v0 }
 0x415   : > { %v5252_v6 = vpop.eup %5251  ;;  %5277 = vrcp.f32 %v2889_v7  ;;  %v3857_v11 = vmul.f32 1.442695, %v3790_v25  ;;  %v8803_v25 = vld [vmem:[#allocation66_spill] sm:$0xff] }
 0x416   : > { %3746 = vmax.xlane.f32.xlu0 %v3745_v30  ;;  %v7888_v38 = vpop.eup %5253  ;;  %v3016_v52 = vmul.f32 %v5252_v6, %v8793_v19  ;;  %v8794_v30 = vld [vmem:[#allocation71_spill] sm:$0xff]  ;;  %5279 = vpow2.f32 %v3859_v46 }
 0x417   : > { %8792 = vst [vmem:[#allocation60_spill] sm:$0xff] %v7888_v38  ;;  %v2883_v23 = vpop.xlane.xlu0 %2882  ;;  %v3015_v39 = vmul.f32 %v5252_v6, %v8794_v30  ;;  %v5256_v27 = vpop.eup %5255  ;;  %v4000_v19 = vadd.f32 %v7888_v38, %v7879_v59  ;;  %5281 = vpow2.f32 %v3861_v55  ;;  %v8796_v6 = vld [vmem:[#allocation43_spill] sm:$0xff]  ;;  %v8798_v30 = vld [vmem:[#allocation69_spill] sm:$0xff] }
 0x418   : > { %v7892_v12 = vpop.xlane.xlu1 %3782  ;;  %3049 = vmatprep.subr.mxu0 %v3016_v52  ;;  %v3787_v32 = vsub.f32 %v8796_v6, %v7855_v5  ;;  %v8797_v52 = vld [vmem:[#allocation44_spill] sm:$0xff]  ;;  %v3013_v57 = vmul.f32 %v5250_v33, %v8798_v30  ;;  %v8800_v55 = vld [vmem:[#allocation55_spill] sm:$0xff]  ;;  %5283 = vrcp.f32 %v2886_v51 }
 0x419   : > { %3050 = vmatpush1.xpose.msra.mxu0 %v3015_v39  ;;  %v3788_v46 = vsub.f32 %v8797_v52, %v7855_v5  ;;  %v3739_v6 = vmax.f32 %v8800_v55, %v8799_v4  ;;  %5285 = vpow2.f32 %v3855_v60  ;;  %v8802_v51 = vld [vmem:[#allocation67_spill] sm:$0xff] }
 0x41a   : > { %4004 = vadd.xlane.f32.xlu0 %v4003_v49  ;;  %3051 = vmatprep.subr.mxu0 %v3014_v36  ;;  %v7901_v49 = vpop.eup %5257  ;;  %v8801_v36 = vld [vmem:[#allocation68_spill] sm:$0xff]  ;;  %5287 = vrcp.f32 %v2883_v23 }
 0x41b   : > { %v2880_v0 = vpop.xlane.xlu0 %2879  ;;  %v7908_v58 = vpop.eup %5259  ;;  %v3012_v59 = vmul.f32 %v5256_v27, %v8801_v36  ;;  %v3853_v30 = vmul.f32 1.442695, %v3788_v46  ;;  %v3011_v36 = vmul.f32 %v5256_v27, %v8802_v51  ;;  %v8804_v27 = vld [vmem:[#allocation78_spill] sm:$0xff] }
 0x41c   : > { %v3780_v7 = vpop.xlane.xlu1 %3779  ;;  %v5262_v38 = vpop.eup %5261  ;;  %v3997_v23 = vadd.f32 %v7908_v58, %v7901_v49  ;;  %v3848_v46 = vsub.f32 %v8804_v27, %v7892_v12 }
 0x41d   : > { %v3845_v43 = vsub.f32 %v7441_v29, %v3780_v7  ;;  %v3846_v39 = vsub.f32 %v7446_v37, %v3780_v7  ;;  %3052 = vmatpush1.xpose.msra.mxu0 %v3013_v57  ;;  %v7913_v33 = vpop.eup %5263  ;;  %v3851_v29 = vmul.f32 1.442695, %v3787_v32  ;;  %v3010_v57 = vmul.f32 %v5262_v38, %v8803_v25 }
 0x41e   : > { %4001 = vadd.xlane.f32.xlu0 %v4000_v19  ;;  %3053 = vmatprep.subr.mxu0 %v3012_v59  ;;  %v7917_v7 = vpop.eup %5265  ;;  %v3847_v59 = vsub.f32 %v7455_v45, %v7892_v12 }
 0x41f   : > { %v3967_v5 = vmul.f32 1.442695, %v3845_v43  ;;  %v3969_v52 = vmul.f32 1.442695, %v3846_v39  ;;  %v2877_v37 = vpop.xlane.xlu0 %2876  ;;  %v7920_v60 = vpop.eup %5267  ;;  %v3994_v12 = vadd.f32 %v7917_v7, %v7913_v33 }
 0x420   : > { %v7915_v19 = vpop.xlane.xlu1 %3776  ;;  %v5270_v43 = vpop.eup %5269  ;;  %v3971_v27 = vmul.f32 1.442695, %v3847_v59  ;;  %v8808_v59 = vld [vmem:[#allocation77_spill] sm:$0xff] }
 0x421   : > { %5289 = vpow2.f32 %v3967_v5  ;;  %3054 = vmatpush1.xpose.msra.mxu0 %v3011_v36  ;;  %v7927_v32 = vpop.eup %5271 }
 0x422   : > { %3740 = vmax.xlane.f32.xlu0 %v3739_v6  ;;  %5291 = vpow2.f32 %v3969_v52  ;;  %3055 = vmatprep.subr.mxu0 %v3010_v57  ;;  %v7931_v5 = vpop.eup %5273 }
 0x423   : > { %5293 = vpow2.f32 %v3857_v11  ;;  %v2874_v39 = vpop.xlane.xlu0 %2873  ;;  %v8805_v11 = vld [vmem:[#allocation65_spill] sm:$0xff]  ;;  %v7936_v36 = vpop.eup %5275 }
 0x424   : > { %5295 = vpow2.f32 %v3851_v29  ;;  %v3774_v6 = vpop.xlane.xlu1 %3773  ;;  %v3009_v52 = vmul.f32 %v5262_v38, %v8805_v11  ;;  %v8806_v29 = vld [vmem:[#allocation75_spill] sm:$0xff]  ;;  %v5278_v57 = vpop.eup %5277 }
 0x425   : > { %5297 = vpow2.f32 %v3853_v30  ;;  %v3841_v45 = vsub.f32 %v7413_v16, %v3774_v6  ;;  %v3842_v51 = vsub.f32 %v7418_v56, %v3774_v6  ;;  %v3008_v25 = vmul.f32 %v5270_v43, %v8806_v29  ;;  %v7943_v16 = vpop.eup %5279  ;;  %v8807_v29 = vld [vmem:[#allocation74_spill] sm:$0xff] }
 0x426   : > { %3998 = vadd.xlane.f32.xlu0 %v3997_v23  ;;  %5299 = vrcp.f32 %v2880_v0  ;;  %v3843_v30 = vsub.f32 %v7427_v40, %v7915_v19  ;;  %3056 = vmatpush1.xpose.msra.mxu0 %v3009_v52  ;;  %v3973_v56 = vmul.f32 1.442695, %v3848_v46  ;;  %v7945_v6 = vpop.eup %5281  ;;  %v3007_v4 = vmul.f32 %v5270_v43, %v8807_v29  ;;  %v8809_v52 = vld [vmem:[#allocation73_spill] sm:$0xff] }
 0x427   : > { %v3959_v38 = vmul.f32 1.442695, %v3841_v45  ;;  %v3961_v11 = vmul.f32 1.442695, %v3842_v51  ;;  %5301 = vrcp.f32 %v2877_v37  ;;  %3057 = vmatprep.subr.mxu0 %v3008_v25  ;;  %v2871_v23 = vpop.xlane.xlu0 %2870  ;;  %v3006_v55 = vmul.f32 %v5278_v57, %v8808_v59  ;;  %v5284_v40 = vpop.eup %5283  ;;  %v8812_v59 = vld [vmem:[#allocation80_spill] sm:$0xff] }
 0x428   : > { %v3771_v0 = vpop.xlane.xlu1 %3770  ;;  %v3844_v45 = vsub.f32 %v8809_v52, %v7915_v19  ;;  %v3963_v51 = vmul.f32 1.442695, %v3843_v30  ;;  %v3991_v37 = vadd.f32 %v7927_v32, %v7920_v60  ;;  %v7953_v46 = vpop.eup %5285 }
 0x429   : > { %5303 = vpow2.f32 %v3959_v38  ;;  %v3839_v25 = vsub.f32 %v7399_v21, %v3771_v0  ;;  %v5288_v38 = vpop.eup %5287  ;;  %v3988_v21 = vadd.f32 %v7936_v36, %v7931_v5 }
 0x42a   : > { %3995 = vadd.xlane.f32.xlu0 %v3994_v12  ;;  %5305 = vpow2.f32 %v3961_v11  ;;  %3058 = vmatpush1.xpose.msra.mxu0 %v3007_v4  ;;  %v3840_v11 = vsub.f32 %v7404_v53, %v3771_v0  ;;  %v3965_v52 = vmul.f32 1.442695, %v3844_v45 }
 0x42b   : > { %5307 = vpow2.f32 %v3971_v27  ;;  %3059 = vmatprep.subr.mxu0 %v3006_v55  ;;  %v2868_v43 = vpop.xlane.xlu0 %2867  ;;  %v8810_v27 = vld [vmem:[#allocation76_spill] sm:$0xff] }
 0x42c   : > { %5309 = vpow2.f32 %v3973_v56  ;;  %v3768_v12 = vpop.xlane.xlu1 %3767  ;;  %v3005_v29 = vmul.f32 %v5278_v57, %v8810_v27  ;;  %v3004_v56 = vmul.f32 %v5284_v40, %v8812_v59  ;;  %v3957_v27 = vmul.f32 1.442695, %v3840_v11  ;;  %v8813_v59 = vld [vmem:[#allocation79_spill] sm:$0xff] }
 0x42d   : > { %v3837_v19 = vsub.f32 %v7381_v22, %v3768_v12  ;;  %v3838_v4 = vsub.f32 %v7390_v18, %v3768_v12  ;;  %5311 = vrcp.f32 %v2874_v39  ;;  %v3955_v22 = vmul.f32 1.442695, %v3839_v25 }
 0x42e   : > { %3992 = vadd.xlane.f32.xlu0 %v3991_v37  ;;  %v7960_v30 = vpop.eup %5289  ;;  %5313 = vpow2.f32 %v3963_v51  ;;  %3060 = vmatpush1.xpose.msra.mxu0 %v3005_v29  ;;  %v3003_v51 = vmul.f32 %v5284_v40, %v8813_v59  ;;  %v3985_v11 = vadd.f32 %v7945_v6, %v7943_v16  ;;  %v8816_v59 = vld [vmem:[#allocation10_spill] sm:$0xff] }
 0x42f   : > { %8811 = vst [vmem:[#allocation59_spill] sm:$0xff] %v7960_v30  ;;  %v7965_v55 = vpop.eup %5291  ;;  %v3951_v53 = vmul.f32 1.442695, %v3837_v19  ;;  %v3953_v57 = vmul.f32 1.442695, %v3838_v4  ;;  %5315 = vrcp.f32 %v2871_v23  ;;  %3061 = vmatprep.subr.mxu0 %v3004_v56  ;;  %v2865_v18 = vpop.xlane.xlu0 %2864  ;;  %v8814_v23 = vld [vmem:[#allocation82_spill] sm:$0xff] }
 0x430   : > { %v7967_v0 = vpop.eup %5293  ;;  %v3765_v37 = vpop.xlane.xlu1 %3764  ;;  %v4066_v39 = vadd.f32 %v7965_v55, %v7960_v30  ;;  %v3002_v25 = vmul.f32 %v5288_v38, %v8814_v23  ;;  %v8815_v4 = vld [vmem:[#allocation64_spill] sm:$0xff] }
 0x431   : > { %v7971_v12 = vpop.eup %5295  ;;  %5317 = vpow2.f32 %v3951_v53  ;;  %v3835_v45 = vsub.f32 %v7373_v2, %v3765_v37  ;;  %v3836_v56 = vsub.f32 %v8815_v4, %v3765_v37  ;;  %v8819_v37 = vld [vmem:[#allocation8_spill] sm:$0xff] }
 0x432   : > { %3989 = vadd.xlane.f32.xlu0 %v3988_v21  ;;  %v7975_v29 = vpop.eup %5297  ;;  %5319 = vpow2.f32 %v3953_v57  ;;  %4067 = vadd.xlane.f32.xlu1 %v4066_v39  ;;  %v3001_v57 = vmul.f32 %v5288_v38, %v8816_v59  ;;  %v8817_v39 = vld [vmem:[#allocation63_spill] sm:$0xff]  ;;  %v8820_v59 = vld [vmem:[#allocation5_spill] sm:$0xff] }
 0x433   : > { %v5300_v19 = vpop.eup %5299  ;;  %5321 = vpow2.f32 %v3965_v52  ;;  %3062 = vmatpush1.xpose.msra.mxu0 %v3003_v51  ;;  %v3947_v53 = vmul.f32 1.442695, %v3835_v45  ;;  %v2862_v40 = vpop.xlane.xlu0 %2861 }
 0x434   : > { %5323 = vpow2.f32 %v3955_v22  ;;  %3063 = vmatprep.subr.mxu0 %v3002_v25  ;;  %v3762_v2 = vpop.xlane.xlu1 %3761  ;;  %v5302_v21 = vpop.eup %5301  ;;  %v3000_v51 = vmul.f32 %v5300_v19, %v8819_v37  ;;  %v3982_v22 = vadd.f32 %v7967_v0, %v7953_v46  ;;  %v3949_v25 = vmul.f32 1.442695, %v3836_v56 }
 0x435   : > { %5325 = vpow2.f32 %v3957_v27  ;;  %v3833_v23 = vsub.f32 %v7365_v3, %v3762_v2  ;;  %v3834_v30 = vsub.f32 %v8817_v39, %v3762_v2  ;;  %v2999_v39 = vmul.f32 %v5300_v19, %v8820_v59  ;;  %v8824_v59 = vld [vmem:[#allocation4_spill] sm:$0xff] }
 0x436   : > { %3986 = vadd.xlane.f32.xlu0 %v3985_v11  ;;  %v7984_v52 = vpop.eup %5303  ;;  %5327 = vrcp.f32 %v2868_v43 }
 0x437   : > { %8818 = vst [vmem:[#allocation72_spill] sm:$0xff] %v7984_v52  ;;  %v7989_v45 = vpop.eup %5305  ;;  %5329 = vrcp.f32 %v2865_v18  ;;  %3064 = vmatpush1.xpose.msra.mxu0 %v3001_v57  ;;  %v3943_v27 = vmul.f32 1.442695, %v3833_v23  ;;  %v3945_v38 = vmul.f32 1.442695, %v3834_v30  ;;  %v2859_v3 = vpop.xlane.xlu0 %2858  ;;  %v8821_v30 = vld [vmem:[#allocation3_spill] sm:$0xff] }
 0x438   : > { %v7991_v4 = vpop.eup %5307  ;;  %5331 = vpow2.f32 %v3947_v53  ;;  %3065 = vmatprep.subr.mxu0 %v3000_v51  ;;  %v3759_v11 = vpop.xlane.xlu1 %3758  ;;  %v4060_v43 = vadd.f32 %v7989_v45, %v7984_v52  ;;  %v2998_v57 = vmul.f32 %v5302_v21, %v8821_v30  ;;  %v3979_v51 = vadd.f32 %v7975_v29, %v7971_v12 }
 0x439   : > { %v7995_v2 = vpop.eup %5309  ;;  %5333 = vpow2.f32 %v3943_v27  ;;  %v3831_v18 = vsub.f32 %v7357_v15, %v3759_v11  ;;  %v3832_v56 = vsub.f32 %v7362_v24, %v3759_v11 }
 0x43a   : > { %3983 = vadd.xlane.f32.xlu0 %v3982_v22  ;;  %5335 = vpow2.f32 %v3945_v38  ;;  %4061 = vadd.xlane.f32.xlu1 %v4060_v43  ;;  %v5312_v53 = vpop.eup %5311  ;;  %v8822_v22 = vld [vmem:[#allocation6_spill] sm:$0xff] }
 0x43b   : > { %5337 = vpow2.f32 %v3949_v25  ;;  %3066 = vmatpush1.xpose.msra.mxu0 %v2999_v39  ;;  %v3939_v23 = vmul.f32 1.442695, %v3831_v18  ;;  %v3941_v37 = vmul.f32 1.442695, %v3832_v56  ;;  %v8003_v27 = vpop.eup %5313  ;;  %v8005_v19 = vpop.xlane.xlu0 %2942  ;;  %v2997_v38 = vmul.f32 %v5302_v21, %v8822_v22 }
 0x43c   : > { %3067 = vmatprep.subr.mxu0 %v2998_v57  ;;  %v3756_v15 = vpop.xlane.xlu1 %3755  ;;  %v5316_v24 = vpop.eup %5315  ;;  %5339 = vrcp.f32 %v2862_v40  ;;  %v2996_v39 = vmul.f32 %v5312_v53, %v8824_v59  ;;  %v4069_v40 = vadd.f32 %v7995_v2, %v7991_v4 }
 0x43d   : > { %v3829_v11 = vsub.f32 %v7349_v41, %v3756_v15  ;;  %v3830_v25 = vsub.f32 %v7354_v54, %v3756_v15  ;;  %5341 = vpow2.f32 %v3939_v23  ;;  %v2024_v21 = vpop.f32.mrf.mxu0 }
 0x43e   : > { %3980 = vadd.xlane.f32.xlu0 %v3979_v51  ;;  %v8010_v43 = vpop.eup %5317  ;;  %5343 = vpow2.f32 %v3941_v37  ;;  %v8826_v37 = vld [vmem:[#allocation7_spill] sm:$0xff] }
 0x43f   : > { %8823 = vst [vmem:[#allocation71_spill] sm:$0xff] %v8010_v43  ;;  %v8013_v18 = vpop.eup %5319  ;;  %3068 = vmatpush1.xpose.msra.mxu0 %v2997_v38  ;;  %v3935_v56 = vmul.f32 1.442695, %v3829_v11  ;;  %v3937_v30 = vmul.f32 1.442695, %v3830_v25  ;;  %5345 = vrcp.f32 %v2859_v3  ;;  %v2946_v41 = vpop.xlane.xlu0 %2945  ;;  %v2995_v15 = vmul.f32 %v5312_v53, %v8826_v37  ;;  %v8827_v3 = vld [vmem:[#allocation36_spill] sm:$0xff] }
 0x440   : > { %8825 = vst [vmem:[#allocation70_spill] sm:$0xff] %v8013_v18  ;;  %v8017_v57 = vpop.eup %5321  ;;  %3069 = vmatprep.subr.mxu0 %v2996_v39  ;;  %v3753_v54 = vpop.xlane.xlu1 %3752  ;;  %v4054_v23 = vadd.f32 %v8013_v18, %v8010_v43  ;;  %v2994_v25 = vmul.f32 %v5316_v24, %v8827_v3 }
 0x441   : > { %v8021_v51 = vpop.eup %5323  ;;  %5347 = vpow2.f32 %v3935_v56  ;;  %v3827_v22 = vsub.f32 %v7339_v8, %v3753_v54  ;;  %v3828_v38 = vsub.f32 %v7345_v1, %v3753_v54  ;;  %v4063_v56 = vadd.f32 %v8017_v57, %v8003_v27  ;;  %v2026_v18 = vpop.f32.mrf.mxu0 }
 0x442   : > { %4070 = vadd.xlane.f32.xlu0 %v4069_v40  ;;  %v8026_v11 = vpop.eup %5325  ;;  %5349 = vpow2.f32 %v3937_v30  ;;  %4055 = vadd.xlane.f32.xlu1 %v4054_v23  ;;  %v8828_v40 = vld [vmem:[#allocation35_spill] sm:$0xff] }
 0x443   : > { %v5328_v59 = vpop.eup %5327  ;;  %3070 = vmatpush1.xpose.msra.mxu0 %v2995_v15  ;;  %v3931_v39 = vmul.f32 1.442695, %v3827_v22  ;;  %v3933_v43 = vmul.f32 1.442695, %v3828_v38  ;;  %v2949_v8 = vpop.xlane.xlu0 %2948  ;;  %v2993_v30 = vmul.f32 %v5316_v24, %v8828_v40  ;;  %v8830_v15 = vld [vmem:[#allocation38_spill] sm:$0xff] }
 0x444   : > { %v5330_v53 = vpop.eup %5329  ;;  %3071 = vmatprep.subr.mxu0 %v2994_v25  ;;  %v1881_v37 = vpop.permute.xlu1 %1880  ;;  %v2992_v22 = vmul.f32 %v5328_v59, %v8830_v15  ;;  %v4057_v25 = vadd.f32 %v8026_v11, %v8021_v51 }
 0x445   : > { %v8031_v1 = vpop.eup %5331  ;;  %5351 = vpow2.f32 %v3931_v39  ;;  %v8034_v54 = vadd.f32 %v2024_v21, %v1881_v37  ;;  %v2027_v38 = vadd.f32 %v2026_v18, %v1881_v37  ;;  %v8831_v21 = vld [vmem:[#allocation37_spill] sm:$0xff]  ;;  %v8832_v18 = vld [vmem:[#allocation40_spill] sm:$0xff] }
 0x446   : > { %4064 = vadd.xlane.f32.xlu0 %v4063_v56  ;;  %v8036_v23 = vpop.eup %5333  ;;  %5353 = vpow2.f32 %v3933_v43  ;;  %v2991_v43 = vmul.f32 %v5328_v59, %v8831_v21  ;;  %v2990_v37 = vmul.f32 %v5330_v53, %v8832_v18  ;;  %v8834_v18 = vld [vmem:[#allocation83_spill] sm:$0xff] }
 0x447   : > { %8829 = vst [vmem:[#allocation43_spill] sm:$0xff] %v8036_v23  ;;  %v8039_v3 = vpop.eup %5335  ;;  %3072 = vmatpush1.xpose.msra.mxu0 %v2993_v30  ;;  %v2952_v39 = vpop.xlane.xlu0 %2951  ;;  %3113 = vmatprep.mubr.f32.mxu0 %v2027_v38 }
 0x448   : > { %v8043_v52 = vpop.eup %5337  ;;  %3073 = vmatprep.subr.mxu0 %v2992_v22  ;;  %v4048_v24 = vadd.f32 %v8039_v3, %v8036_v23  ;;  %5355 = vrcp.f32 %v2952_v39  ;;  %v8833_v39 = vld [vmem:[#allocation39_spill] sm:$0xff] }
 0x449   : > { %v5340_v56 = vpop.eup %5339  ;;  %5357 = vrcp.f32 %v2949_v8  ;;  %v4051_v30 = vadd.f32 %v8043_v52, %v8031_v1  ;;  %v2989_v23 = vmul.f32 %v5330_v53, %v8833_v39 }
 0x44a   : > { %4058 = vadd.xlane.f32.xlu0 %v4057_v25  ;;  %4049 = vadd.xlane.f32.xlu1 %v4048_v24  ;;  %v8049_v40 = vpop.eup %5341  ;;  %5359 = vrcp.f32 %v2946_v41  ;;  %v2988_v8 = vmul.f32 %v5340_v56, %v7565_v28 }
 0x44b   : > { %3074 = vmatpush1.xpose.msra.mxu0 %v2991_v43  ;;  %v8053_v15 = vpop.eup %5343  ;;  %v2940_v22 = vpop.xlane.xlu0 %2939  ;;  %5361 = vrcp.f32 %v8005_v19 }
 0x44c   : > { %3075 = vmatprep.subr.mxu0 %v2990_v37  ;;  %v5346_v38 = vpop.eup %5345  ;;  %v4045_v24 = vadd.f32 %v8053_v15, %v8049_v40  ;;  %v2987_v37 = vmul.f32 %v5340_v56, %v8834_v18  ;;  %5363 = vrcp.f32 %v2940_v22  ;;  %v8838_v22 = vld [vmem:[#allocation34_spill] sm:$0xff] }
 0x44d   : > { %v2986_v28 = vmul.f32 %v5346_v38, %v7583_v62  ;;  %v2985_v39 = vmul.f32 %v5346_v38, %v7575_v20 }
 0x44e   : > { %4052 = vadd.xlane.f32.xlu0 %v4051_v30  ;;  %v8056_v59 = vpop.eup %5347 }
 0x44f   : > { %v8059_v25 = vpop.eup %5349  ;;  %3076 = vmatpush1.xpose.msra.mxu0 %v2989_v23  ;;  %v2937_v21 = vpop.xlane.xlu0 %2936 }
 0x450   : > { %3077 = vmatprep.subr.mxu0 %v2988_v8  ;;  %v4042_v43 = vadd.f32 %v8059_v25, %v8056_v59  ;;  %5365 = vrcp.f32 %v2937_v21 }
 0x452   : > { %4046 = vadd.xlane.f32.xlu0 %v4045_v24  ;;  %v8066_v53 = vpop.eup %5351  ;;  %4043 = vadd.xlane.f32.xlu1 %v4042_v43  ;;  %v8836_v43 = vld [vmem:[#allocation32_spill] sm:$0xff] }
 0x453   : > { %8835 = vst [vmem:[#allocation44_spill] sm:$0xff] %v8066_v53  ;;  %v8070_v41 = vpop.eup %5353  ;;  %3078 = vmatpush1.xpose.msra.mxu0 %v2987_v37  ;;  %v2934_v23 = vpop.xlane.xlu0 %2933 }
 0x454   : > { %3079 = vmatprep.subr.mxu0 %v2986_v28  ;;  %v4039_v30 = vadd.f32 %v8070_v41, %v8066_v53  ;;  %v8837_v53 = vld [vmem:[#allocation31_spill] sm:$0xff]  ;;  %5367 = vrcp.f32 %v2934_v23 }
 0x455   : > { %v5356_v8 = vpop.eup %5355 }
 0x456   : > { %4040 = vadd.xlane.f32.xlu0 %v4039_v30  ;;  %v5358_v56 = vpop.eup %5357  ;;  %v3048_v19 = vmul.f32 %v5356_v8, %v7627_v31  ;;  %v3047_v62 = vmul.f32 %v5356_v8, %v7621_v17  ;;  %v8840_v8 = vld [vmem:[#allocation41_spill] sm:$0xff] }
 0x457   : > { %3080 = vmatpush1.xpose.msra.mxu0 %v2985_v39  ;;  %v2931_v24 = vpop.xlane.xlu0 %2930  ;;  %v3046_v18 = vmul.f32 %v5358_v56, %v8836_v43  ;;  %v5360_v37 = vpop.eup %5359  ;;  %v3045_v20 = vmul.f32 %v5358_v56, %v8837_v53  ;;  %v8839_v39 = vld [vmem:[#allocation42_spill] sm:$0xff]  ;;  %v8841_v43 = vld [vmem:[#allocation33_spill] sm:$0xff] }
 0x458   : > { %3081 = vmatprep.subr.mxu0 %v3048_v19  ;;  %v3044_v38 = vmul.f32 %v5360_v37, %v8838_v22  ;;  %v5362_v30 = vpop.eup %5361  ;;  %v3043_v17 = vmul.f32 %v5360_v37, %v8839_v39  ;;  %5369 = vrcp.f32 %v2931_v24  ;;  %v8842_v53 = vld [vmem:[#allocation30_spill] sm:$0xff]  ;;  %v8843_v22 = vld [vmem:[#allocation29_spill] sm:$0xff]  ;;  %v8844_v37 = vld [vmem:[#allocation28_spill] sm:$0xff] }
 0x459   : > { %v3042_v21 = vmul.f32 %v5362_v30, %v8840_v8  ;;  %v5364_v19 = vpop.eup %5363  ;;  %v8845_v8 = vld [vmem:[#allocation27_spill] sm:$0xff] }
 0x45a   : > { %v3040_v23 = vmul.f32 %v5364_v19, %v8842_v53  ;;  %v8847_v53 = vld [vmem:[#allocation25_spill] sm:$0xff] }
 0x45b   : > { %3082 = vmatpush2.xpose.msra.mxu0 %v3047_v62  ;;  %v2928_v28 = vpop.xlane.xlu0 %2927 }
 0x45c   : > { %3083 = vmatprep.subr.mxu0 %v3046_v18  ;;  %v3041_v18 = vmul.f32 %v5362_v30, %v8841_v43  ;;  %5371 = vrcp.f32 %v2928_v28  ;;  %v8846_v30 = vld [vmem:[#allocation26_spill] sm:$0xff] }
 0x45d   : > { %v5366_v56 = vpop.eup %5365 }
 0x45e   : > { %v3038_v24 = vmul.f32 %v5366_v56, %v8844_v37 }
 0x45f   : > { %3084 = vmatpush2.xpose.msra.mxu0 %v3045_v20  ;;  %v2925_v31 = vpop.xlane.xlu0 %2924 }
 0x460   : > { %3085 = vmatprep.subr.mxu0 %v3044_v38  ;;  %v3039_v38 = vmul.f32 %v5364_v19, %v8843_v22  ;;  %5373 = vrcp.f32 %v2925_v31 }
 0x461   : > { %v5368_v39 = vpop.eup %5367 }
 0x462   : > { %v3036_v28 = vmul.f32 %v5368_v39, %v8846_v30 }
 0x463   : > { %3086 = vmatpush2.xpose.msra.mxu0 %v3043_v17  ;;  %v2922_v62 = vpop.xlane.xlu0 %2921 }
 0x464   : > { %3087 = vmatprep.subr.mxu0 %v3042_v21  ;;  %v3037_v21 = vmul.f32 %v5366_v56, %v8845_v8  ;;  %5375 = vrcp.f32 %v2922_v62  ;;  %v8849_v56 = vld [vmem:[#allocation21_spill] sm:$0xff]  ;;  %v8850_v8 = vld [vmem:[#allocation24_spill] sm:$0xff] }
 0x465   : > { %v5370_v43 = vpop.eup %5369 }
 0x466   : > { %v3034_v31 = vmul.f32 %v5370_v43, %v7666_v13  ;;  %v8852_v13 = vld [vmem:[#allocation22_spill] sm:$0xff] }
 0x467   : > { %3088 = vmatpush2.xpose.msra.mxu0 %v3041_v18  ;;  %v2919_v20 = vpop.xlane.xlu0 %2918 }
 0x468   : > { %3089 = vmatprep.subr.mxu0 %v3040_v23  ;;  %v3035_v23 = vmul.f32 %v5368_v39, %v8847_v53  ;;  %5377 = vrcp.f32 %v2919_v20  ;;  %v8851_v39 = vld [vmem:[#allocation19_spill] sm:$0xff] }
 0x469   : > { %v5372_v19 = vpop.eup %5371 }
 0x46a   : > { %v3032_v62 = vmul.f32 %v5372_v19, %v8849_v56 }
 0x46b   : > { %3090 = vmatpush2.xpose.msra.mxu0 %v3039_v38  ;;  %v2916_v17 = vpop.xlane.xlu0 %2915  ;;  %v8848_v38 = vld [vmem:[#allocation23_spill] sm:$0xff] }
 0x46c   : > { %3091 = vmatprep.subr.mxu0 %v3038_v24  ;;  %v3033_v37 = vmul.f32 %v5370_v43, %v8848_v38  ;;  %5379 = vrcp.f32 %v2916_v17  ;;  %v8854_v38 = vld [vmem:[#allocation20_spill] sm:$0xff] }
 0x46d   : > { %v5374_v24 = vpop.eup %5373 }
 0x46e   : > { %v3030_v20 = vmul.f32 %v5374_v24, %v8851_v39  ;;  %v3029_v53 = vmul.f32 %v5374_v24, %v8852_v13  ;;  %v8857_v39 = vld [vmem:[#allocation13_spill] sm:$0xff]  ;;  %v8858_v13 = vld [vmem:[#allocation16_spill] sm:$0xff] }
 0x46f   : > { %3092 = vmatpush2.xpose.msra.mxu0 %v3037_v21  ;;  %v2913_v18 = vpop.xlane.xlu0 %2912  ;;  %v3031_v21 = vmul.f32 %v5372_v19, %v8850_v8  ;;  %v8855_v19 = vld [vmem:[#allocation15_spill] sm:$0xff]  ;;  %v8856_v8 = vld [vmem:[#allocation18_spill] sm:$0xff] }
 0x470   : > { %3093 = vmatprep.subr.mxu0 %v3036_v28  ;;  %5381 = vrcp.f32 %v2913_v18 }
 0x471   : > { %v5376_v28 = vpop.eup %5375 }
 0x473   : > { %3094 = vmatpush2.xpose.msra.mxu0 %v3035_v23  ;;  %v2910_v22 = vpop.xlane.xlu0 %2909  ;;  %v8853_v23 = vld [vmem:[#allocation17_spill] sm:$0xff] }
 0x474   : > { %3095 = vmatprep.subr.mxu0 %v3034_v31  ;;  %5383 = vrcp.f32 %v2910_v22  ;;  %v3028_v43 = vmul.f32 %v5376_v28, %v8853_v23  ;;  %v8859_v23 = vld [vmem:[#allocation11_spill] sm:$0xff] }
 0x475   : > { %v5378_v31 = vpop.eup %5377 }
 0x476   : > { %v3026_v18 = vmul.f32 %v5378_v31, %v8855_v19 }
 0x477   : > { %3096 = vmatpush2.xpose.msra.mxu0 %v3033_v37  ;;  %v2907_v30 = vpop.xlane.xlu0 %2906  ;;  %v3027_v37 = vmul.f32 %v5376_v28, %v8854_v38  ;;  %v8860_v38 = vld [vmem:[#allocation14_spill] sm:$0xff] }
 0x478   : > { %3097 = vmatprep.subr.mxu0 %v3032_v62  ;;  %5385 = vrcp.f32 %v2907_v30 }
 0x479   : > { %v5380_v62 = vpop.eup %5379 }
 0x47a   : > { %v3024_v24 = vmul.f32 %v5380_v62, %v8857_v39  ;;  %v8861_v39 = vld [vmem:[#allocation81_spill] sm:$0xff] }
 0x47b   : > { %3098 = vmatpush2.xpose.msra.mxu0 %v3031_v21  ;;  %v3025_v21 = vmul.f32 %v5378_v31, %v8856_v8 }
 0x47c   : > { %3099 = vmatprep.subr.mxu0 %v3030_v20 }
 0x47d   : > { %v5382_v20 = vpop.eup %5381 }
 0x47e   : > { %v3022_v28 = vmul.f32 %v5382_v20, %v8859_v23 }
 0x47f   : > { %v4017_v17 = vpop.xlane.xlu0 %4016  ;;  %3100 = vmatpush2.xpose.msra.mxu0 %v3029_v53  ;;  %v3023_v53 = vmul.f32 %v5380_v62, %v8858_v13 }
 0x480   : > { %3101 = vmatprep.subr.mxu0 %v3028_v43 }
 0x481   : > { %v5384_v43 = vpop.eup %5383 }
 0x482   : > { %v3020_v31 = vmul.f32 %v5384_v43, %v7728_v47  ;;  %v3019_v8 = vmul.f32 %v5384_v43, %v7724_v34  ;;  %v8862_v47 = vld [vmem:[#allocation9_spill] sm:$0xff] }
 0x483   : > { %v4020_v56 = vpop.xlane.xlu0 %4019  ;;  %3102 = vmatpush2.xpose.msra.mxu0 %v3027_v37  ;;  %v3021_v37 = vmul.f32 %v5382_v20, %v8860_v38  ;;  %v3850_v20 = vsub.f32 %v8862_v47, %v7877_v48 }
 0x484   : > { %3103 = vmatprep.subr.mxu0 %v3026_v18 }
 0x485   : > { %v5386_v18 = vpop.eup %5385  ;;  %v3977_v38 = vmul.f32 1.442695, %v3850_v20 }
 0x486   : > { %v3018_v62 = vmul.f32 %v5386_v18, %v7741_v10 }
 0x487   : > { %v4023_v22 = vpop.xlane.xlu0 %4022  ;;  %3104 = vmatpush2.xpose.msra.mxu0 %v3025_v21 }
 0x488   : > { %3105 = vmatprep.subr.mxu0 %v3024_v24  ;;  %5387 = vrcp.f32 %v4023_v22  ;;  %v3849_v24 = vsub.f32 %v8861_v39, %v7877_v48  ;;  %v3017_v22 = vmul.f32 %v5386_v18, %v7737_v63 }
 0x48a   : > { %v3975_v23 = vmul.f32 1.442695, %v3849_v24  ;;  %v8867_v24 = vld [vmem:[#allocation51_spill] sm:$0xff] }
 0x48b   : > { %v4026_v30 = vpop.xlane.xlu0 %4025  ;;  %3106 = vmatpush2.xpose.msra.mxu0 %v3023_v53  ;;  %v3744_v53 = vpop.xlane.xlu1 %3743 }
 0x48c   : > { %5389 = vrcp.f32 %v4026_v30  ;;  %3107 = vmatprep.subr.mxu0 %v3022_v28 }
 0x48d   : > { %5391 = vrcp.f32 %v4020_v56 }
 0x48e   : > { %5393 = vrcp.f32 %v4017_v17 }
 0x48f   : > { %v4014_v19 = vpop.xlane.xlu0 %4013  ;;  %3108 = vmatpush2.xpose.msra.mxu0 %v3021_v37  ;;  %v8863_v37 = vld [vmem:[#allocation57_spill] sm:$0xff] }
 0x490   : > { %3109 = vmatprep.subr.mxu0 %v3020_v31  ;;  %5395 = vrcp.f32 %v4014_v19  ;;  %v3821_v48 = vsub.f32 %v8863_v37, %v3744_v53 }
 0x492   : > { %v3919_v18 = vmul.f32 1.442695, %v3821_v48 }
 0x493   : > { %v4011_v21 = vpop.xlane.xlu0 %4010  ;;  %3110 = vmatpush2.xpose.msra.mxu0 %v3019_v8 }
 0x494   : > { %3111 = vmatprep.subr.mxu0 %v3018_v62  ;;  %5397 = vrcp.f32 %v4011_v21  ;;  %v8866_v62 = vld [vmem:[#allocation52_spill] sm:$0xff] }
 0x495   : > { %v5388_v56 = vpop.eup %5387 }
 0x496   : > { %v4135_v21 = vmul.f32 %v5388_v56, %v8866_v62 }
 0x497   : > { %v3750_v13 = vpop.xlane.xlu0 %3749  ;;  %3112 = vmatpush2.xpose.msra.mxu0 %v3017_v22 }
 0x498   : > { %v3825_v34 = vsub.f32 %v8786_v61, %v3750_v13  ;;  %v3826_v10 = vsub.f32 %v8785_v35, %v3750_v13  ;;  %v8864_v61 = vld [vmem:[#allocation53_spill] sm:$0xff] }
 0x499   : > { %v5390_v17 = vpop.eup %5389  ;;  %v4136_v35 = vmul.f32 %v5388_v56, %v8864_v61  ;;  %v8869_v56 = vld [vmem:[#allocation49_spill] sm:$0xff] }
 0x49a   : > { %v3927_v28 = vmul.f32 1.442695, %v3825_v34  ;;  %v3929_v30 = vmul.f32 1.442695, %v3826_v10  ;;  %v4138_v43 = vmul.f32 %v5390_v17, %v7792_v26  ;;  %v4137_v63 = vmul.f32 %v5390_v17, %v7786_v50  ;;  %3114 = vmatmul.mubr.f32.vlgmr.msra.gmra.mxu0 %v8034_v54  ;;  %v5392_v19 = vpop.eup %5391  ;;  %v8865_v50 = vld [vmem:[#allocation58_spill] sm:$0xff] }
 0x49b   : > { %v4008_v31 = vpop.xlane.xlu0 %4007  ;;  %v3822_v26 = vsub.f32 %v8865_v50, %v3744_v53  ;;  %v4134_v22 = vmul.f32 %v5392_v19, %v8867_v24  ;;  %v5394_v47 = vpop.eup %5393  ;;  %v8868_v10 = vld [vmem:[#allocation50_spill] sm:$0xff] }
 0x49c   : > { %5399 = vpow2.f32 %v3927_v28  ;;  %4171 = vmatprep.subr.mxu0 %v4138_v43  ;;  %5010 = vmatprep.subr.mxu1 %v4138_v43  ;;  %v4133_v17 = vmul.f32 %v5392_v19, %v8868_v10  ;;  %v8870_v28 = vld [vmem:[#allocation12_spill] sm:$0xff]  ;;  %v8874_v24 = vld [vmem:[#allocation46_spill] sm:$0xff]  ;;  %v8875_v10 = vld [vmem:[#allocation45_spill] sm:$0xff] }
 0x49d   : > { %5401 = vpow2.f32 %v3929_v30  ;;  %4172 = vmatpush1.xpose.msra.mxu0 %v4137_v63  ;;  %5042 = vmatpush1.xpose.msra.mxu1 %v4137_v63  ;;  %v3921_v53 = vmul.f32 1.442695, %v3822_v26  ;;  %v4131_v30 = vmul.f32 %v5394_v47, %v8870_v28 }
 0x49e   : > { %5403 = vpow2.f32 %v3975_v23  ;;  %4173 = vmatprep.subr.mxu0 %v4136_v35  ;;  %5011 = vmatprep.subr.mxu1 %v4136_v35  ;;  %v4132_v23 = vmul.f32 %v5394_v47, %v8869_v56  ;;  %v8871_v35 = vld [vmem:[#allocation54_spill] sm:$0xff] }
 0x49f   : > { %5405 = vpow2.f32 %v3977_v38  ;;  %v3747_v8 = vpop.xlane.xlu0 %3746 }
 0x4a0   : > { %5407 = vrcp.f32 %v4008_v31  ;;  %v3823_v54 = vsub.f32 %v8790_v42, %v3747_v8  ;;  %v3824_v39 = vsub.f32 %v8789_v14, %v3747_v8  ;;  %v5396_v42 = vpop.eup %5395 }
 0x4a1   : > { %4174 = vmatpush1.xpose.msra.mxu0 %v4135_v21  ;;  %5043 = vmatpush1.xpose.msra.mxu1 %v4135_v21  ;;  %5409 = vpow2.f32 %v3919_v18  ;;  %v5398_v43 = vpop.eup %5397  ;;  %v4130_v63 = vmul.f32 %v5396_v42, %v7807_v9  ;;  %v4129_v19 = vmul.f32 %v5396_v42, %v8871_v35  ;;  %v8872_v9 = vld [vmem:[#allocation48_spill] sm:$0xff]  ;;  %v8873_v21 = vld [vmem:[#allocation47_spill] sm:$0xff]  ;;  %v8878_v35 = vld [vmem:[#allocation61_spill] sm:$0xff] }
 0x4a2   : > { %v3923_v20 = vmul.f32 1.442695, %v3823_v54  ;;  %v3925_v13 = vmul.f32 1.442695, %v3824_v39  ;;  %4175 = vmatprep.subr.mxu0 %v4134_v22  ;;  %5012 = vmatprep.subr.mxu1 %v4134_v22  ;;  %v4128_v26 = vmul.f32 %v5398_v43, %v8872_v9  ;;  %v4127_v54 = vmul.f32 %v5398_v43, %v8873_v21 }
 0x4a3   : > { %v4005_v34 = vpop.xlane.xlu0 %4004 }
 0x4a4   : > { %5411 = vpow2.f32 %v3923_v20 }
 0x4a5   : > { %5413 = vpow2.f32 %v3925_v13  ;;  %4176 = vmatpush1.xpose.msra.mxu0 %v4133_v17  ;;  %5044 = vmatpush1.xpose.msra.mxu1 %v4133_v17 }
 0x4a6   : > { %5415 = vrcp.f32 %v4005_v34  ;;  %4177 = vmatprep.subr.mxu0 %v4132_v23  ;;  %5013 = vmatprep.subr.mxu1 %v4132_v23 }
 0x4a7   : > { %5417 = vpow2.f32 %v3921_v53  ;;  %v4002_v14 = vpop.xlane.xlu0 %4001 }
 0x4a8   : > { %5419 = vrcp.f32 %v4002_v14 }
 0x4a9   : > { %v8127_v38 = vpop.eup %5399  ;;  %4178 = vmatpush1.xpose.msra.mxu0 %v4131_v30  ;;  %5045 = vmatpush1.xpose.msra.mxu1 %v4131_v30  ;;  %v8876_v30 = vld [vmem:[#allocation62_spill] sm:$0xff] }
 0x4aa   : > { %v8129_v37 = vpop.eup %5401  ;;  %4179 = vmatprep.subr.mxu0 %v4130_v63  ;;  %5014 = vmatprep.subr.mxu1 %v4130_v63  ;;  %v8877_v63 = vld [vmem:[#allocation60_spill] sm:$0xff] }
 0x4ab   : > { %v8131_v48 = vpop.eup %5403  ;;  %v8133_v31 = vpop.xlane.xlu0 %3740  ;;  %v4036_v61 = vadd.f32 %v8129_v37, %v8127_v38 }
 0x4ac   : > { %v8138_v50 = vpop.eup %5405 }
 0x4ad   : > { %v5408_v18 = vpop.eup %5407  ;;  %4037 = vadd.xlane.f32.xlu1 %v4036_v61  ;;  %4180 = vmatpush1.xpose.msra.mxu0 %v4129_v19  ;;  %v4072_v62 = vadd.f32 %v8138_v50, %v8131_v48 }
 0x4ae   : > { %5046 = vmatpush1.xpose.msra.mxu1 %v4129_v19  ;;  %4181 = vmatprep.subr.mxu0 %v4128_v26  ;;  %v8144_v39 = vpop.eup %5409  ;;  %v4126_v22 = vmul.f32 %v5408_v18, %v8874_v24  ;;  %v4125_v17 = vmul.f32 %v5408_v18, %v8875_v10  ;;  %v8879_v10 = vld [vmem:[#allocation55_spill] sm:$0xff] }
 0x4af   : > { %5015 = vmatprep.subr.mxu1 %v4128_v26  ;;  %v3999_v8 = vpop.xlane.xlu0 %3998 }
 0x4b0   : > { %5421 = vrcp.f32 %v3999_v8 }
 0x4b1   : > { %v8147_v47 = vpop.eup %5411  ;;  %4073 = vadd.xlane.f32.xlu1 %v4072_v62  ;;  %4182 = vmatpush1.xpose.msra.mxu0 %v4127_v54  ;;  %v1863_v62 = vld [vmem:[%s8437_s7 + $0x8] sm:$0xff] }
 0x4b2   : > { %v8149_v20 = vpop.eup %5413  ;;  %5047 = vmatpush1.xpose.msra.mxu1 %v4127_v54  ;;  %4183 = vmatprep.subr.mxu0 %v4126_v22 }
 0x4b3   : > { %v5416_v13 = vpop.eup %5415  ;;  %5016 = vmatprep.subr.mxu1 %v4126_v22  ;;  %v3996_v53 = vpop.xlane.xlu0 %3995  ;;  %v4033_v34 = vadd.f32 %v8149_v20, %v8147_v47 }
 0x4b4   : > { %v8154_v56 = vpop.eup %5417  ;;  %5423 = vrcp.f32 %v3996_v53  ;;  %v4124_v23 = vmul.f32 %v5416_v13, %v7873_v44  ;;  %v4123_v43 = vmul.f32 %v5416_v13, %v8876_v30 }
 0x4b5   : > { %v5420_v42 = vpop.eup %5419  ;;  %4034 = vadd.xlane.f32.xlu0 %v4033_v34  ;;  %4184 = vmatpush1.xpose.msra.mxu0 %v4125_v17  ;;  %v4030_v28 = vadd.f32 %v8154_v56, %v8144_v39 }
 0x4b6   : > { %5048 = vmatpush1.xpose.msra.mxu1 %v4125_v17  ;;  %4185 = vmatprep.subr.mxu0 %v4124_v23  ;;  %v4122_v61 = vmul.f32 %v5420_v42, %v8877_v63  ;;  %v4121_v19 = vmul.f32 %v5420_v42, %v8878_v35  ;;  %v3819_v17 = vsub.f32 %v8879_v10, %v8133_v31 }
 0x4b7   : > { %5017 = vmatprep.subr.mxu1 %v4124_v23  ;;  %v3993_v14 = vpop.xlane.xlu0 %3992  ;;  %v8880_v23 = vld [vmem:[#allocation56_spill] sm:$0xff] }
 0x4b8   : > { %5425 = vrcp.f32 %v3993_v14  ;;  %v3820_v42 = vsub.f32 %v8880_v23, %v8133_v31 }
 0x4b9   : > { %4031 = vadd.xlane.f32.xlu0 %v4030_v28  ;;  %4186 = vmatpush1.xpose.msra.mxu0 %v4123_v43  ;;  %v1865_v28 = vld [vmem:[%s8437_s7 + $0x18] sm:$0xff] }
 0x4ba   : > { %5049 = vmatpush1.xpose.msra.mxu1 %v4123_v43  ;;  %4187 = vmatprep.subr.mxu0 %v4122_v61  ;;  %v3917_v43 = vmul.f32 1.442695, %v3820_v42 }
 0x4bb   : > { %5018 = vmatprep.subr.mxu1 %v4122_v61  ;;  %v3990_v44 = vpop.xlane.xlu0 %3989 }
 0x4bc   : > { %5427 = vrcp.f32 %v3990_v44 }
 0x4bd   : > { %4188 = vmatpush1.xpose.msra.mxu0 %v4121_v19  ;;  %v5422_v9 = vpop.eup %5421 }
 0x4be   : > { %5050 = vmatpush1.xpose.msra.mxu1 %v4121_v19  ;;  %v4120_v18 = vmul.f32 %v5422_v9, %v7908_v58  ;;  %v4119_v8 = vmul.f32 %v5422_v9, %v7901_v49  ;;  %v2030_v19 = vpop.f32.mrf.mxu0  ;;  %v1874_v9 = vld [vmem:[%s8437_s7 + $0x60] sm:$0xff] }
 0x4bf   : > { %v3987_v26 = vpop.xlane.xlu0 %3986 }
 0x4c0   : > { %5429 = vrcp.f32 %v3987_v26  ;;  %4189 = vmatprep.subr.mxu0 %v4120_v18  ;;  %5019 = vmatprep.subr.mxu1 %v4120_v18  ;;  %v2032_v18 = vpop.f32.mrf.mxu0 }
 0x4c1   : > { %v5424_v21 = vpop.eup %5423  ;;  %4190 = vmatpush1.xpose.msra.mxu0 %v4119_v8 }
 0x4c2   : > { %v4118_v54 = vmul.f32 %v5424_v21, %v7917_v7  ;;  %5051 = vmatpush1.xpose.msra.mxu1 %v4119_v8  ;;  %1885 = vperm.xlu1 %5085, %v1863_v62   ;;  %v4117_v22 = vmul.f32 %v5424_v21, %v7913_v33  ;;  %v1875_v8 = vld [vmem:[%s8437_s7 + $0x68] sm:$0xff]  ;;  %v8213_v62 = vpop.f32.mrf.mxu0  ;;  %v1876_v21 = vld [vmem:[%s8437_s7 + $0x70] sm:$0xff] }
 0x4c3   : > { %v3984_v24 = vpop.xlane.xlu0 %3983 }
 0x4c4   : > { %5431 = vrcp.f32 %v3984_v24  ;;  %5020 = vmatprep.subr.mxu1 %v4118_v54  ;;  %4191 = vmatprep.subr.mxu0 %v4118_v54  ;;  %v8218_v54 = vpop.f32.mrf.mxu0  ;;  %v1877_v24 = vld [vmem:[%s8437_s7 + $0x78] sm:$0xff] }
 0x4c5   : > { %v5426_v58 = vpop.eup %5425  ;;  %4192 = vmatpush1.xpose.msra.mxu0 %v4117_v22 }
 0x4c6   : > { %v4116_v49 = vmul.f32 %v5426_v58, %v7927_v32  ;;  %5052 = vmatpush1.xpose.msra.mxu1 %v4117_v22  ;;  %v4115_v53 = vmul.f32 %v5426_v58, %v7920_v60  ;;  %v1864_v32 = vld [vmem:[%s8437_s7 + $0x10] sm:$0xff]  ;;  %v8223_v22 = vpop.f32.mrf.mxu0  ;;  %v1866_v58 = vld [vmem:[%s8437_s7 + $0x20] sm:$0xff] }
 0x4c7   : > { %v3981_v13 = vpop.xlane.xlu0 %3980 }
 0x4c8   : > { %5433 = vrcp.f32 %v3981_v13  ;;  %5021 = vmatprep.subr.mxu1 %v4116_v49  ;;  %4193 = vmatprep.subr.mxu0 %v4116_v49  ;;  %v8228_v49 = vpop.f32.mrf.mxu0  ;;  %v1871_v13 = vld [vmem:[%s8437_s7 + $0x48] sm:$0xff] }
 0x4c9   : > { %v5428_v7 = vpop.eup %5427  ;;  %4194 = vmatpush1.xpose.msra.mxu0 %v4115_v53 }
 0x4ca   : > { %v4114_v34 = vmul.f32 %v5428_v7, %v7936_v36  ;;  %5053 = vmatpush1.xpose.msra.mxu1 %v4115_v53  ;;  %v4113_v33 = vmul.f32 %v5428_v7, %v7931_v5  ;;  %v3915_v5 = vmul.f32 1.442695, %v3819_v17  ;;  %v8233_v53 = vpop.f32.mrf.mxu0  ;;  %v1872_v7 = vld [vmem:[%s8437_s7 + $0x50] sm:$0xff] }
 0x4cc   : > { %5022 = vmatprep.subr.mxu1 %v4114_v34  ;;  %4195 = vmatprep.subr.mxu0 %v4114_v34  ;;  %5435 = vpow2.f32 %v3915_v5  ;;  %v8238_v34 = vpop.f32.mrf.mxu0 }
 0x4cd   : > { %v5430_v60 = vpop.eup %5429  ;;  %4196 = vmatpush1.xpose.msra.mxu0 %v4113_v33  ;;  %5437 = vpow2.f32 %v3917_v43 }
 0x4ce   : > { %v4112_v14 = vmul.f32 %v5430_v60, %v7945_v6  ;;  %5054 = vmatpush1.xpose.msra.mxu1 %v4113_v33  ;;  %v4111_v36 = vmul.f32 %v5430_v60, %v7943_v16  ;;  %v1867_v16 = vld [vmem:[%s8437_s7 + $0x28] sm:$0xff]  ;;  %v1873_v33 = vld [vmem:[%s8437_s7 + $0x58] sm:$0xff]  ;;  %v8243_v10 = vpop.f32.mrf.mxu0 }
 0x4cf   : > { %1890 = vperm.xlu0 %5086, %v1864_v32  }
 0x4d0   : > { %5023 = vmatprep.subr.mxu1 %v4112_v14  ;;  %4197 = vmatprep.subr.mxu0 %v4112_v14  ;;  %v8245_v17 = vpop.f32.mrf.mxu0 }
 0x4d1   : > { %v5432_v30 = vpop.eup %5431  ;;  %4198 = vmatpush1.xpose.msra.mxu0 %v4111_v36 }
 0x4d2   : > { %v4110_v63 = vmul.f32 %v5432_v30, %v7967_v0  ;;  %5055 = vmatpush1.xpose.msra.mxu1 %v4111_v36  ;;  %v4109_v31 = vmul.f32 %v5432_v30, %v7953_v46  ;;  %v1868_v46 = vld [vmem:[%s8437_s7 + $0x30] sm:$0xff]  ;;  %v1869_v0 = vld [vmem:[%s8437_s7 + $0x38] sm:$0xff]  ;;  %v8247_v32 = vpop.f32.mrf.mxu0  ;;  %v4071_v36 = vpop.xlane.xlu0 %4070 }
 0x4d3   : > { %1895 = vperm.xlu0 %5086, %v1865_v28   ;;  %v4068_v28 = vpop.xlane.xlu1 %4067  ;;  %5439 = vrcp.f32 %v4071_v36 }
 0x4d4   : > { %5024 = vmatprep.subr.mxu1 %v4110_v63  ;;  %4199 = vmatprep.subr.mxu0 %v4110_v63  ;;  %v8249_v60 = vpop.f32.mrf.mxu0 }
 0x4d5   : > { %v5434_v6 = vpop.eup %5433  ;;  %4200 = vmatpush1.xpose.msra.mxu0 %v4109_v31 }
 0x4d6   : > { %v4108_v61 = vmul.f32 %v5434_v6, %v7975_v29  ;;  %5056 = vmatpush1.xpose.msra.mxu1 %v4109_v31  ;;  %v4107_v44 = vmul.f32 %v5434_v6, %v7971_v12  ;;  %v1870_v12 = vld [vmem:[%s8437_s7 + $0x40] sm:$0xff]  ;;  %v8251_v23 = vpop.f32.mrf.mxu0  ;;  %v4065_v43 = vpop.xlane.xlu0 %4064 }
 0x4d7   : > { %1905 = vperm.xlu0 %5086, %v1867_v16   ;;  %v4062_v63 = vpop.xlane.xlu1 %4061 }
 0x4d8   : > { %5025 = vmatprep.subr.mxu1 %v4108_v61  ;;  %4201 = vmatprep.subr.mxu0 %v4108_v61  ;;  %v8253_v42 = vpop.f32.mrf.mxu0 }
 0x4d9   : > { %4202 = vmatpush1.xpose.msra.mxu0 %v4107_v44  ;;  %v8201_v29 = vpop.eup %5435 }
 0x4da   : > { %5057 = vmatpush1.xpose.msra.mxu1 %v4107_v44  ;;  %v8203_v35 = vpop.eup %5437  ;;  %v8255_v14 = vpop.f32.mrf.mxu0 }
 0x4db   : > { %1910 = vperm.xlu0 %5086, %v1868_v46   ;;  %v4027_v26 = vadd.f32 %v8203_v35, %v8201_v29  ;;  %v4056_v16 = vpop.xlane.xlu1 %4055  ;;  %v4059_v6 = vpop.xlane.xlu0 %4058 }
 0x4dc   : > { %v8257_v5 = vpop.f32.mrf.mxu0 }
 0x4de   : > { %v8259_v30 = vpop.f32.mrf.mxu0 }
 0x4df   : > { %1915 = vperm.xlu0 %5086, %v1869_v0   ;;  %8881 = vst [vmem:[#allocation69_spill] sm:$0xff] %v8259_v30  ;;  %v8265_v44 = vpop.xlane.xlu1 %4049  ;;  %v4053_v0 = vpop.xlane.xlu0 %4052 }
 0x4e0   : > { %v8261_v31 = vpop.f32.mrf.mxu0 }
 0x4e1   : > { %8882 = vst [vmem:[#allocation68_spill] sm:$0xff] %v8261_v31 }
 0x4e2   : > { %v8263_v61 = vpop.f32.mrf.mxu0 }
 0x4e3   : > { %1920 = vperm.xlu0 %5086, %v1870_v12   ;;  %8883 = vst [vmem:[#allocation67_spill] sm:$0xff] %v8263_v61  ;;  %v8269_v12 = vpop.xlane.xlu1 %4043 }
 0x4e4   : > { %v8267_v46 = vpop.f32.mrf.mxu0 }
 0x4e5   : > { %8884 = vst [vmem:[#allocation66_spill] sm:$0xff] %v8267_v46 }
 0x4e6   : > { %4028 = vadd.xlane.f32.xlu1 %v4027_v26  ;;  %v8273_v26 = vpop.xlane.xlu0 %4046 }
 0x4e7   : > { %1940 = vperm.xlu0 %5086, %v1874_v9   ;;  %v8271_v9 = vpop.f32.mrf.mxu0 }
 0x4e8   : > { %8885 = vst [vmem:[#allocation78_spill] sm:$0xff] %v8271_v9 }
 0x4eb   : > { %1945 = vperm.xlu0 %5086, %v1875_v8  }
 0x4ef   : > { %1950 = vperm.xlu0 %5086, %v1876_v21   ;;  %v8277_v21 = vpop.f32.mrf.mxu0 }
 0x4f0   : > { %8886 = vst [vmem:[#allocation65_spill] sm:$0xff] %v8277_v21 }
 0x4f3   : > { %1955 = vperm.xlu0 %5086, %v1877_v24  }
 0x4f7   : > { %1900 = vperm.xlu1 %5085, %v1866_v58   ;;  %v8279_v58 = vpop.f32.mrf.mxu0 }
 0x4f9   : > { %v8283_v46 = vpop.f32.mrf.mxu0 }
 0x4fb   : > { %1925 = vperm.xlu1 %5085, %v1871_v13   ;;  %v8281_v13 = vpop.xlane.xlu0 %4040  ;;  %v8287_v30 = vpop.f32.mrf.mxu0 }
 0x4fd   : > { %v8291_v21 = vpop.f32.mrf.mxu0 }
 0x4ff   : > { %1930 = vperm.xlu1 %5085, %v1872_v7  }
 0x503   : > { %1935 = vperm.xlu1 %5085, %v1873_v33  }
 0x536   : > { %v8275_v8 = vpop.xlane.xlu1 %4037 }
 0x53a   : > { %v4074_v24 = vpop.xlane.xlu1 %4073 }
 0x53b   : > { %5441 = vrcp.f32 %v4074_v24  ;;  %v5440_v24 = vpop.eup %5439 }
 0x53c   : > { %5443 = vrcp.f32 %v4068_v28 }
 0x53d   : > { %5445 = vrcp.f32 %v4065_v43 }
 0x53e   : > { %v1886_v7 = vpop.permute.xlu1 %1885  ;;  %v8285_v9 = vpop.xlane.xlu0 %4034  ;;  %5447 = vrcp.f32 %v4062_v63 }
 0x53f   : > { %v2031_v33 = vadd.f32 %v2030_v19, %v1886_v7  ;;  %v2033_v61 = vadd.f32 %v2032_v18, %v1886_v7  ;;  %5449 = vrcp.f32 %v4059_v6 }
 0x540   : > { %5451 = vrcp.f32 %v4056_v16 }
 0x541   : > { %3119 = vmatprep.mubr.f32.mxu0 %v2033_v61  ;;  %v4168_v61 = vmul.f32 %v5440_v24, %v7995_v2  ;;  %5453 = vrcp.f32 %v4053_v0 }
 0x542   : > { %3120 = vmatmul.mubr.f32.gmra.mxu0 %v2031_v33  ;;  %v8289_v36 = vpop.xlane.xlu0 %4031  ;;  %v8298_v33 = vpop.f32.mrf.mxu0  ;;  %5455 = vrcp.f32 %v8265_v44 }
 0x543   : > { %5457 = vrcp.f32 %v8273_v26 }
 0x544   : > { %5459 = vrcp.f32 %v8269_v12 }
 0x545   : > { %5461 = vrcp.f32 %v8281_v13 }
 0x546   : > { %5463 = vrcp.f32 %v8275_v8 }
 0x547   : > { %5465 = vrcp.f32 %v8285_v9 }
 0x548   : > { %v5442_v31 = vpop.eup %5441  ;;  %5467 = vrcp.f32 %v8289_v36 }
 0x549   : > { %v4170_v28 = vmul.f32 %v5442_v31, %v8138_v50  ;;  %v4169_v19 = vmul.f32 %v5442_v31, %v8131_v48  ;;  %v5444_v63 = vpop.eup %5443  ;;  %v4167_v50 = vmul.f32 %v5440_v24, %v7991_v4 }
 0x54a   : > { %v1891_v18 = vpop.permute.xlu0 %1890  ;;  %v4166_v31 = vmul.f32 %v5444_v63, %v7965_v55  ;;  %v5446_v6 = vpop.eup %5445 }
 0x54b   : > { %4203 = vmatprep.subr.mxu0 %v4170_v28  ;;  %5026 = vmatprep.subr.mxu1 %v4170_v28  ;;  %v2037_v43 = vadd.f32 %v8213_v62, %v1891_v18  ;;  %v2039_v7 = vadd.f32 %v8218_v54, %v1891_v18  ;;  %v8304_v54 = vpop.f32.mrf.mxu0  ;;  %v8887_v28 = vld [vmem:[#allocation59_spill] sm:$0xff]  ;;  %v4164_v55 = vmul.f32 %v5446_v6, %v8017_v57 }
 0x54c   : > { %4204 = vmatpush2.xpose.msra.mxu0 %v4169_v19  ;;  %5058 = vmatpush2.xpose.msra.mxu1 %v4169_v19  ;;  %v4165_v19 = vmul.f32 %v5444_v63, %v8887_v28  ;;  %v4163_v16 = vmul.f32 %v5446_v6, %v8003_v27  ;;  %v8888_v27 = vld [vmem:[#allocation72_spill] sm:$0xff] }
 0x54d   : > { %4205 = vmatprep.subr.mxu0 %v4168_v61  ;;  %5027 = vmatprep.subr.mxu1 %v4168_v61 }
 0x54e   : > { %3125 = vmatprep.mubr.f32.mxu0 %v2039_v7  ;;  %v1896_v48 = vpop.permute.xlu0 %1895 }
 0x54f   : > { %v2043_v2 = vadd.f32 %v8223_v22, %v1896_v48  ;;  %v2045_v62 = vadd.f32 %v8228_v49, %v1896_v48  ;;  %3126 = vmatmul.mubr.f32.gmra.mxu0 %v2037_v43  ;;  %v8310_v22 = vpop.f32.mrf.mxu0  ;;  %v5448_v49 = vpop.eup %5447 }
 0x550   : > { %4206 = vmatpush2.xpose.msra.mxu0 %v4167_v50  ;;  %5059 = vmatpush2.xpose.msra.mxu1 %v4167_v50  ;;  %v4162_v18 = vmul.f32 %v5448_v49, %v7989_v45  ;;  %v5450_v57 = vpop.eup %5449  ;;  %v4161_v61 = vmul.f32 %v5448_v49, %v8888_v27 }
 0x551   : > { %4207 = vmatprep.subr.mxu0 %v4166_v31  ;;  %5028 = vmatprep.subr.mxu1 %v4166_v31  ;;  %v8317_v0 = vpop.f32.mrf.mxu0  ;;  %v4160_v45 = vmul.f32 %v5450_v57, %v8026_v11  ;;  %v5452_v7 = vpop.eup %5451  ;;  %v4159_v50 = vmul.f32 %v5450_v57, %v8021_v51  ;;  %v8889_v31 = vld [vmem:[#allocation70_spill] sm:$0xff]  ;;  %v8890_v11 = vld [vmem:[#allocation71_spill] sm:$0xff] }
 0x552   : > { %3131 = vmatprep.mubr.f32.mxu0 %v2045_v62  ;;  %v8307_v4 = vpop.permute.xlu0 %1905  ;;  %v5454_v26 = vpop.eup %5453  ;;  %v4157_v62 = vmul.f32 %v5452_v7, %v8890_v11 }
 0x553   : > { %3132 = vmatmul.mubr.f32.gmra.mxu0 %v2043_v2  ;;  %v4158_v2 = vmul.f32 %v5452_v7, %v8889_v31  ;;  %v4156_v51 = vmul.f32 %v5454_v26, %v8043_v52  ;;  %v4155_v12 = vmul.f32 %v5454_v26, %v8031_v1  ;;  %v8891_v52 = vld [vmem:[#allocation43_spill] sm:$0xff] }
 0x554   : > { %4208 = vmatpush2.xpose.msra.mxu0 %v4165_v19  ;;  %5060 = vmatpush2.xpose.msra.mxu1 %v4165_v19  ;;  %v5456_v19 = vpop.eup %5455 }
 0x555   : > { %4209 = vmatprep.subr.mxu0 %v4164_v55  ;;  %5029 = vmatprep.subr.mxu1 %v4164_v55  ;;  %v4154_v55 = vmul.f32 %v5456_v19, %v8039_v3  ;;  %v5458_v49 = vpop.eup %5457  ;;  %v4153_v13 = vmul.f32 %v5456_v19, %v8891_v52 }
 0x556   : > { %v8313_v24 = vpop.permute.xlu0 %1910  ;;  %v4151_v1 = vmul.f32 %v5458_v49, %v8049_v40 }
 0x558   : > { %4210 = vmatpush2.xpose.msra.mxu0 %v4163_v16  ;;  %5061 = vmatpush2.xpose.msra.mxu1 %v4163_v16  ;;  %v5460_v16 = vpop.eup %5459 }
 0x559   : > { %4211 = vmatprep.subr.mxu0 %v4162_v18  ;;  %5030 = vmatprep.subr.mxu1 %v4162_v18  ;;  %v4150_v3 = vmul.f32 %v5460_v16, %v8059_v25  ;;  %v5462_v8 = vpop.eup %5461  ;;  %v4149_v9 = vmul.f32 %v5460_v16, %v8056_v59  ;;  %v8892_v25 = vld [vmem:[#allocation44_spill] sm:$0xff]  ;;  %v2057_v59 = vadd.f32 %v8245_v17, %v8307_v4 }
 0x55a   : > { %v8327_v44 = vpop.permute.xlu0 %1915  ;;  %v3115_v43 = vpop.f32.mrf.mxu0  ;;  %v2061_v17 = vadd.f32 %v8247_v32, %v8313_v24 }
 0x55b   : > { %3162 = vst [vmem:[%s8324_s23] sm:$0xff] %v3115_v43  ;;  %v5464_v57 = vpop.eup %5463 }
 0x55c   : > { %4212 = vmatpush2.xpose.msra.mxu0 %v4161_v61  ;;  %5062 = vmatpush2.xpose.msra.mxu1 %v4161_v61  ;;  %v3117_v63 = vpop.f32.mrf.mxu0  ;;  %v4147_v61 = vmul.f32 %v5462_v8, %v8892_v25  ;;  %v5466_v43 = vpop.eup %5465 }
 0x55d   : > { %4213 = vmatprep.subr.mxu0 %v4160_v45  ;;  %5031 = vmatprep.subr.mxu1 %v4160_v45  ;;  %3163 = vst [vmem:[%s8324_s23 + $0x8] sm:$0xff] %v3117_v63  ;;  %v4146_v45 = vmul.f32 %v5464_v57, %v8129_v37  ;;  %v5468_v7 = vpop.eup %5467  ;;  %v2063_v37 = vadd.f32 %v8249_v60, %v8313_v24 }
 0x55e   : > { %v8333_v48 = vpop.permute.xlu0 %1920  ;;  %v4143_v63 = vmul.f32 %v5466_v43, %v8147_v47  ;;  %v2067_v60 = vadd.f32 %v8251_v23, %v8327_v44 }
 0x560   : > { %4214 = vmatpush2.xpose.msra.mxu0 %v4159_v50  ;;  %5063 = vmatpush2.xpose.msra.mxu1 %v4159_v50 }
 0x561   : > { %4215 = vmatprep.subr.mxu0 %v4158_v2  ;;  %5032 = vmatprep.subr.mxu1 %v4158_v2  ;;  %v8894_v2 = vld [vmem:[#allocation69_spill] sm:$0xff] }
 0x562   : > { %v8339_v6 = vpop.permute.xlu0 %1940 }
 0x563   : > { %v2099_v28 = vadd.f32 %v8283_v46, %v8339_v6  ;;  %v4152_v46 = vmul.f32 %v5458_v49, %v8053_v15  ;;  %v4148_v15 = vmul.f32 %v5462_v8, %v8070_v41  ;;  %v2055_v41 = vadd.f32 %v8243_v10, %v8307_v4 }
 0x564   : > { %4216 = vmatpush2.xpose.msra.mxu0 %v4157_v62  ;;  %5064 = vmatpush2.xpose.msra.mxu1 %v4157_v62  ;;  %v4141_v4 = vmul.f32 %v5468_v7, %v8144_v39  ;;  %v2097_v39 = vadd.f32 %v8279_v58, %v8339_v6  ;;  %v8895_v58 = vld [vmem:[#allocation66_spill] sm:$0xff] }
 0x565   : > { %4217 = vmatprep.subr.mxu0 %v4156_v51  ;;  %5033 = vmatprep.subr.mxu1 %v4156_v51 }
 0x566   : > { %4259 = vmatprep.mubr.f32.mxu1 %v2099_v28  ;;  %v1946_v32 = vpop.permute.xlu0 %1945  ;;  %v8897_v28 = vld [vmem:[#allocation65_spill] sm:$0xff] }
 0x567   : > { %v2105_v50 = vadd.f32 %v8291_v21, %v1946_v32  ;;  %v8896_v21 = vld [vmem:[#allocation67_spill] sm:$0xff] }
 0x568   : > { %4218 = vmatpush2.xpose.msra.mxu0 %v4155_v12  ;;  %5065 = vmatpush2.xpose.msra.mxu1 %v4155_v12  ;;  %v8898_v12 = vld [vmem:[#allocation78_spill] sm:$0xff] }
 0x569   : > { %4219 = vmatprep.subr.mxu0 %v4154_v55  ;;  %5034 = vmatprep.subr.mxu1 %v4154_v55 }
 0x56a   : > { %v1951_v23 = vpop.permute.xlu0 %1950 }
 0x56b   : > { %v2111_v11 = vadd.f32 %v8304_v54, %v1951_v23 }
 0x56c   : > { %4220 = vmatpush2.xpose.msra.mxu0 %v4153_v13  ;;  %5066 = vmatpush2.xpose.msra.mxu1 %v4153_v13 }
 0x56d   : > { %4221 = vmatprep.subr.mxu0 %v4152_v46  ;;  %5035 = vmatprep.subr.mxu1 %v4152_v46 }
 0x56e   : > { %v1956_v6 = vpop.permute.xlu0 %1955 }
 0x56f   : > { %v4029_v18 = vpop.xlane.xlu1 %4028  ;;  %v2115_v54 = vadd.f32 %v8310_v22, %v1956_v6 }
 0x570   : > { %4222 = vmatpush2.xpose.msra.mxu0 %v4151_v1  ;;  %5067 = vmatpush2.xpose.msra.mxu1 %v4151_v1  ;;  %5469 = vrcp.f32 %v4029_v18 }
 0x571   : > { %4223 = vmatprep.subr.mxu0 %v4150_v3  ;;  %5036 = vmatprep.subr.mxu1 %v4150_v3 }
 0x573   : > { %v1901_v27 = vpop.permute.xlu1 %1900 }
 0x574   : > { %4224 = vmatpush2.xpose.msra.mxu0 %v4149_v9  ;;  %5068 = vmatpush2.xpose.msra.mxu1 %v4149_v9  ;;  %v2049_v40 = vadd.f32 %v8233_v53, %v1901_v27  ;;  %v2051_v36 = vadd.f32 %v8238_v34, %v1901_v27  ;;  %v4145_v53 = vmul.f32 %v5464_v57, %v8127_v38 }
 0x575   : > { %4225 = vmatprep.subr.mxu0 %v4148_v15  ;;  %5037 = vmatprep.subr.mxu1 %v4148_v15  ;;  %v4144_v34 = vmul.f32 %v5466_v43, %v8149_v20  ;;  %v4142_v38 = vmul.f32 %v5468_v7, %v8154_v56  ;;  %v2069_v20 = vadd.f32 %v8253_v42, %v8327_v44 }
 0x576   : > { %3137 = vmatprep.mubr.f32.mxu0 %v2051_v36  ;;  %v2075_v56 = vadd.f32 %v8257_v5, %v8333_v48  ;;  %v2073_v44 = vadd.f32 %v8255_v14, %v8333_v48  ;;  %v8893_v5 = vld [vmem:[#allocation68_spill] sm:$0xff]  ;;  %v2109_v14 = vadd.f32 %v8298_v33, %v1951_v23 }
 0x577   : > { %3138 = vmatmul.mubr.f32.gmra.mxu0 %v2049_v40  ;;  %v1926_v24 = vpop.permute.xlu1 %1925 }
 0x578   : > { %5069 = vmatpush2.xpose.msra.mxu1 %v4147_v61  ;;  %4226 = vmatpush2.xpose.msra.mxu0 %v4147_v61  ;;  %v2081_v31 = vadd.f32 %v8893_v5, %v1926_v24  ;;  %v2079_v26 = vadd.f32 %v8894_v2, %v1926_v24 }
 0x579   : > { %5038 = vmatprep.subr.mxu1 %v4146_v45  ;;  %4227 = vmatprep.subr.mxu0 %v4146_v45 }
 0x57a   : > { %3143 = vmatprep.mubr.f32.mxu0 %v2057_v59 }
 0x57b   : > { %3144 = vmatmul.mubr.f32.gmra.mxu0 %v2055_v41 }
 0x57c   : > { %5070 = vmatpush2.xpose.msra.mxu1 %v4145_v53  ;;  %4228 = vmatpush2.xpose.msra.mxu0 %v4145_v53 }
 0x57d   : > { %5039 = vmatprep.subr.mxu1 %v4144_v34  ;;  %4229 = vmatprep.subr.mxu0 %v4144_v34  ;;  %v5470_v10 = vpop.eup %5469 }
 0x57e   : > { %3149 = vmatprep.mubr.f32.mxu0 %v2063_v37  ;;  %v4140_v47 = vmul.f32 %v5470_v10, %v8203_v35  ;;  %v4139_v42 = vmul.f32 %v5470_v10, %v8201_v29  ;;  %v1931_v35 = vpop.permute.xlu1 %1930  ;;  %v2103_v29 = vadd.f32 %v8287_v30, %v1946_v32  ;;  %v2117_v30 = vadd.f32 %v8317_v0, %v1956_v6 }
 0x57f   : > { %3150 = vmatmul.mubr.f32.gmra.mxu0 %v2061_v17  ;;  %v2087_v62 = vadd.f32 %v8895_v58, %v1931_v35  ;;  %v2085_v48 = vadd.f32 %v8896_v21, %v1931_v35 }
 0x580   : > { %5071 = vmatpush2.xpose.msra.mxu1 %v4143_v63  ;;  %4230 = vmatpush2.xpose.msra.mxu0 %v4143_v63 }
 0x581   : > { %5040 = vmatprep.subr.mxu1 %v4142_v38  ;;  %4231 = vmatprep.subr.mxu0 %v4142_v38 }
 0x582   : > { %3155 = vmatprep.mubr.f32.mxu0 %v2069_v20  ;;  %v1936_v51 = vpop.permute.xlu1 %1935 }
 0x583   : > { %3156 = vmatmul.mubr.f32.gmra.mxu0 %v2067_v60  ;;  %v2093_v19 = vadd.f32 %v8897_v28, %v1936_v51  ;;  %v2091_v55 = vadd.f32 %v8898_v12, %v1936_v51 }
 0x584   : > { %5072 = vmatpush2.xpose.msra.mxu1 %v4141_v4  ;;  %4232 = vmatpush2.xpose.msra.mxu0 %v4141_v4 }
 0x585   : > { %5041 = vmatprep.subr.mxu1 %v4140_v47  ;;  %4233 = vmatprep.subr.mxu0 %v4140_v47 }
 0x586   : > { %4235 = vmatprep.mubr.f32.mxu0 %v2075_v56 }
 0x588   : > { %5073 = vmatpush2.xpose.msra.mxu1 %v4139_v42  ;;  %4234 = vmatpush2.xpose.msra.mxu0 %v4139_v42 }
 0x58b   : > { %4260 = vmatmul.mubr.f32.vlgmr.msra.gmra.mxu1 %v2097_v39  ;;  %4236 = vmatmul.mubr.f32.vlgmr.msra.gmra.mxu0 %v2073_v44 }
 0x58c   : > { %4265 = vmatprep.mubr.f32.mxu1 %v2105_v50  ;;  %4241 = vmatprep.mubr.f32.mxu0 %v2081_v31 }
 0x58f   : > { %4266 = vmatmul.mubr.f32.gmra.mxu1 %v2103_v29  ;;  %4242 = vmatmul.mubr.f32.gmra.mxu0 %v2079_v26 }
 0x590   : > { %4271 = vmatprep.mubr.f32.mxu1 %v2111_v11  ;;  %4247 = vmatprep.mubr.f32.mxu0 %v2087_v62 }
 0x593   : > { %4272 = vmatmul.mubr.f32.gmra.mxu1 %v2109_v14  ;;  %4248 = vmatmul.mubr.f32.gmra.mxu0 %v2085_v48 }
 0x594   : > { %4277 = vmatprep.mubr.f32.mxu1 %v2117_v30  ;;  %4253 = vmatprep.mubr.f32.mxu0 %v2093_v19 }
 0x597   : > { %4278 = vmatmul.mubr.f32.gmra.mxu1 %v2115_v54  ;;  %4254 = vmatmul.mubr.f32.gmra.mxu0 %v2091_v55 }
 0x602   : > { %v3121_v33 = vpop.f32.mrf.mxu0 }
 0x603   : > { %3164 = vst [vmem:[%s8324_s23 + $0x10] sm:$0xff] %v3121_v33 }
 0x604   : > { %v3123_v0 = vpop.f32.mrf.mxu0 }
 0x605   : > { %3165 = vst [vmem:[%s8324_s23 + $0x18] sm:$0xff] %v3123_v0 }
 0x60f   : > { %v3127_v49 = vpop.f32.mrf.mxu0 }
 0x610   : > { %3166 = vst [vmem:[%s8324_s23 + $0x20] sm:$0xff] %v3127_v49 }
 0x611   : > { %v3129_v52 = vpop.f32.mrf.mxu0 }
 0x612   : > { %3167 = vst [vmem:[%s8324_s23 + $0x28] sm:$0xff] %v3129_v52 }
 0x613   : > { %v3133_v13 = vpop.f32.mrf.mxu0 }
 0x614   : > { %3168 = vst [vmem:[%s8324_s23 + $0x30] sm:$0xff] %v3133_v13 }
 0x615   : > { %v3135_v22 = vpop.f32.mrf.mxu0 }
 0x616   : > { %3169 = vst [vmem:[%s8324_s23 + $0x38] sm:$0xff] %v3135_v22 }
 0x637   : > { %v3139_v46 = vpop.f32.mrf.mxu0 }
 0x638   : > { %3170 = vst [vmem:[%s8324_s23 + $0x40] sm:$0xff] %v3139_v46 }
 0x639   : > { %v3141_v16 = vpop.f32.mrf.mxu0 }
 0x63a   : > { %3171 = vst [vmem:[%s8324_s23 + $0x48] sm:$0xff] %v3141_v16 }
 0x63b   : > { %v3145_v1 = vpop.f32.mrf.mxu0 }
 0x63c   : > { %3172 = vst [vmem:[%s8324_s23 + $0x50] sm:$0xff] %v3145_v1 }
 0x63d   : > { %v3147_v3 = vpop.f32.mrf.mxu0 }
 0x63e   : > { %3173 = vst [vmem:[%s8324_s23 + $0x58] sm:$0xff] %v3147_v3 }
 0x63f   : > { %v3151_v8 = vpop.f32.mrf.mxu0 }
 0x640   : > { %3174 = vst [vmem:[%s8324_s23 + $0x60] sm:$0xff] %v3151_v8 }
 0x641   : > { %v3153_v18 = vpop.f32.mrf.mxu0 }
 0x642   : > { %3175 = vst [vmem:[%s8324_s23 + $0x68] sm:$0xff] %v3153_v18 }
 0x643   : > { %v3157_v9 = vpop.f32.mrf.mxu0 }
 0x644   : > { %3176 = vst [vmem:[%s8324_s23 + $0x70] sm:$0xff] %v3157_v9 }
 0x645   : > { %v3159_v15 = vpop.f32.mrf.mxu0 }
 0x646   : > { %3177 = vst [vmem:[%s8324_s23 + $0x78] sm:$0xff] %v3159_v15 }
 0x64b   : > { %v4261_v57 = vpop.f32.mrf.mxu1  ;;  %v4237_v27 = vpop.f32.mrf.mxu0 }
 0x64c   : > { %4292 = vst [vmem:[%s8324_s23 + $0xc0] sm:$0xff] %v4261_v57  ;;  %4284 = vst [vmem:[%s8324_s23 + $0x80] sm:$0xff] %v4237_v27 }
 0x64d   : > { %v4263_v40 = vpop.f32.mrf.mxu1  ;;  %v4239_v36 = vpop.f32.mrf.mxu0 }
 0x64e   : > { %4293 = vst [vmem:[%s8324_s23 + $0xc8] sm:$0xff] %v4263_v40  ;;  %4285 = vst [vmem:[%s8324_s23 + $0x88] sm:$0xff] %v4239_v36 }
 0x64f   : > { %v4267_v25 = vpop.f32.mrf.mxu1  ;;  %v4243_v61 = vpop.f32.mrf.mxu0 }
 0x650   : > { %4294 = vst [vmem:[%s8324_s23 + $0xd0] sm:$0xff] %v4267_v25  ;;  %4286 = vst [vmem:[%s8324_s23 + $0x90] sm:$0xff] %v4243_v61 }
 0x651   : > { %v4269_v45 = vpop.f32.mrf.mxu1  ;;  %v4245_v43 = vpop.f32.mrf.mxu0 }
 0x652   : > { %4295 = vst [vmem:[%s8324_s23 + $0xd8] sm:$0xff] %v4269_v45  ;;  %4287 = vst [vmem:[%s8324_s23 + $0x98] sm:$0xff] %v4245_v43 }
 0x653   : > { %v4273_v59 = vpop.f32.mrf.mxu1  ;;  %v4249_v41 = vpop.f32.mrf.mxu0 }
 0x654   : > { %4296 = vst [vmem:[%s8324_s23 + $0xe0] sm:$0xff] %v4273_v59  ;;  %4288 = vst [vmem:[%s8324_s23 + $0xa0] sm:$0xff] %v4249_v41 }
 0x655   : > { %v4275_v53 = vpop.f32.mrf.mxu1  ;;  %v4251_v34 = vpop.f32.mrf.mxu0 }
 0x656   : > { %4297 = vst [vmem:[%s8324_s23 + $0xe8] sm:$0xff] %v4275_v53  ;;  %4289 = vst [vmem:[%s8324_s23 + $0xa8] sm:$0xff] %v4251_v34 }
 0x657   : > { %v4279_v7 = vpop.f32.mrf.mxu1  ;;  %v4255_v37 = vpop.f32.mrf.mxu0 }
 0x658   : > { %4298 = vst [vmem:[%s8324_s23 + $0xf0] sm:$0xff] %v4279_v7  ;;  %4290 = vst [vmem:[%s8324_s23 + $0xb0] sm:$0xff] %v4255_v37 }
 0x659   : > { %v4281_v17 = vpop.f32.mrf.mxu1  ;;  %v4257_v63 = vpop.f32.mrf.mxu0 }
 0x65a   : > { %4299 = vst [vmem:[%s8324_s23 + $0xf8] sm:$0xff] %v4281_v17  ;;  %4291 = vst [vmem:[%s8324_s23 + $0xb8] sm:$0xff] %v4257_v63 }
 0x65b PF: > { %s18_s27 = sadd.s32 1, %s5508_s27  }
 0x65c   : > { %p15_p4 = scmp.ge.s32.totalorder %s18_s27, 4  }
 0x65e   :  { %17 = sbr.rel (!%p15_p4) target bundleno = 1 (0x1), region = 85 }

</bundles_post_ra>
